<compile_context>
chip_gen: v6e
topology: v6e:2x2x1
jax: 0.10.0
libtpu: 0.0.40
codegen_flags: <defaults>
</compile_context>

<pallas_src>
import math

import jax
import jax.numpy as jnp
from jax import lax
from jax.experimental import pallas as pl
from jax.experimental.pallas import tpu as pltpu

D_MODEL = 32
NUM_HEADS = 4
HEAD_DIM = D_MODEL // NUM_HEADS
NUM_LAYERS = 2
LN_EPS = 1e-5          # torch.nn.LayerNorm default
NEG_INF = -1e30        # large finite mask bias (avoids -inf -> NaN rows)


# --------------------------------------------------------------------------
# In-kernel math helpers (pure jnp/lax; also reused by the JAX reference)
# --------------------------------------------------------------------------
def _layernorm(x, gamma, beta):
    """LayerNorm over last axis (biased variance, like torch)."""
    mu = jnp.mean(x, axis=-1, keepdims=True)
    var = jnp.mean((x - mu) ** 2, axis=-1, keepdims=True)
    return (x - mu) * lax.rsqrt(var + LN_EPS) * gamma + beta


def _erf_poly(x):
    """erf via Abramowitz & Stegun 7.1.26 (|abs err| <= 1.5e-7); only exp/mul/select."""
    a1, a2, a3, a4, a5 = 0.254829592, -0.284496736, 1.421413741, -1.453152027, 1.061405429
    p = 0.3275911
    ax = jnp.abs(x)
    t = 1.0 / (1.0 + p * ax)
    poly = ((((a5 * t + a4) * t + a3) * t + a2) * t + a1) * t
    y = 1.0 - poly * jnp.exp(-(ax * ax))
    return jnp.where(x < 0.0, -y, y)


def _gelu_exact(x):
    """Exact (erf-based) GELU, matching torch nn.GELU() default."""
    return 0.5 * x * (1.0 + _erf_poly(x * (1.0 / math.sqrt(2.0))))


def _attention(q, k, v, bias_t, hmask, bones, wo, bo):
    """Multi-head attention with ALL heads batched into lane-dense matmuls.

    q:      (Nq, D)  already scaled by 1/sqrt(head_dim) (folded into Wq).
    k, v:   (Nk, D).
    bias_t: (Nq, H*Nk) additive bias, already tiled per head along lanes
            (encodes user mask + batch block-diagonal structure).
    hmask:  (H*Nk, D) constant; row block h keeps only head-h feature columns.
    bones:  (H*Nk, H*Nk) constant block-diagonal ones (per-head softmax denominators).
    """
    # Block-structured K/V packs: sublane-tile + constant mask (VPU work, no transpose).
    k_pack = jnp.concatenate([k] * NUM_HEADS, axis=0) * hmask      # (H*Nk, D)
    v_pack = jnp.concatenate([v] * NUM_HEADS, axis=0) * hmask      # (H*Nk, D)

    # All-head scores in ONE push; contraction on dim 1 of both operands (no .T).
    s = lax.dot_general(q, k_pack, (((1,), (1,)), ((), ())),
                        preferred_element_type=jnp.float32) + bias_t   # (Nq, H*Nk)

    # Per-row global max is a valid (exact) shift for every head block's softmax.
    s = s - jnp.max(s, axis=-1, keepdims=True)
    p = jnp.exp(s)
    # Per-head denominators, broadcast back over each block, via one small matmul.
    denom = jnp.dot(p, bones, preferred_element_type=jnp.float32)      # (Nq, H*Nk)
    p = p * pl.reciprocal(denom, approx=True)

    # Concatenated head outputs in one push, then a single Wo matmul.
    ctx = jnp.dot(p, v_pack, preferred_element_type=jnp.float32)       # (Nq, D)
    return jnp.dot(ctx, wo, preferred_element_type=jnp.float32) + bo


# --------------------------------------------------------------------------
# Single fused kernel: whole TransformerDecoder forward (all layers)
# --------------------------------------------------------------------------
def decoder_kernel(x_ref, enc_ref, sbias_ref, cbias_ref,
                   hms_ref, bones_s_ref, hmc_ref, bones_c_ref,
                   wqkv_ref, bqkv_ref, wos_ref, bos_ref,
                   wqc_ref, bqc_ref, wkvc_ref, bkvc_ref, woc_ref, boc_ref,
                   w1_ref, b1_ref, w2_ref, b2_ref, gff_ref, bff_ref,
                   g1_ref, be1_ref, g2_ref, be2_ref, g3_ref, be3_ref,
                   out_ref):
    D = D_MODEL
    x = x_ref[...]            # (B*Ld, D)
    enc = enc_ref[...]        # (B*Le, D)
    sbias = sbias_ref[...]    # (B*Ld, H*B*Ld)
    cbias = cbias_ref[...]    # (B*Ld, H*B*Le)
    hmask_s = hms_ref[...]    # (H*B*Ld, D)
    bones_s = bones_s_ref[...]
    hmask_c = hmc_ref[...]    # (H*B*Le, D)
    bones_c = bones_c_ref[...]

    # Cross-attn K/V projection of the loop-invariant encoder output, fused across
    # ALL layers: one lane-dense (Ne, NUM_LAYERS*2*D = 128) matmul, computed once.
    kv_all = jnp.dot(enc, wkvc_ref[...],
                     preferred_element_type=jnp.float32) + bkvc_ref[...]

    for l in range(NUM_LAYERS):          # static unroll: both layers in one kernel
        # ---- self-attention (fused QKV projection, scale folded into Wq) ----
        qkv = jnp.dot(x, wqkv_ref[l], preferred_element_type=jnp.float32) + bqkv_ref[l]
        sa = _attention(qkv[:, 0:D], qkv[:, D:2 * D], qkv[:, 2 * D:3 * D],
                        sbias, hmask_s, bones_s, wos_ref[l], bos_ref[l])
        x = _layernorm(x + sa, g1_ref[l], be1_ref[l])

        # ---- cross-attention (K/V already projected above, sliced per layer) ----
        qc = jnp.dot(x, wqc_ref[l], preferred_element_type=jnp.float32) + bqc_ref[l]
        kc = kv_all[:, l * 2 * D: l * 2 * D + D]
        vc = kv_all[:, l * 2 * D + D: (l + 1) * 2 * D]
        ca = _attention(qc, kc, vc, cbias, hmask_c, bones_c, woc_ref[l], boc_ref[l])
        x = _layernorm(x + ca, g2_ref[l], be2_ref[l])

        # ---- feed-forward: ff(x) = x + LN_ff(fc2(gelu(fc1(x)))); then LN3(x + ff) ----
        # (the double residual matches FeedForwardLayer + DecoderLayer exactly)
        h = _gelu_exact(jnp.dot(x, w1_ref[l],
                                preferred_element_type=jnp.float32) + b1_ref[l])
        y = jnp.dot(h, w2_ref[l], preferred_element_type=jnp.float32) + b2_ref[l]
        ff = x + _layernorm(y, gff_ref[l], bff_ref[l])
        x = _layernorm(x + ff, g3_ref[l], be3_ref[l])

    out_ref[...] = x


# --------------------------------------------------------------------------
# Wrapper: pack weights, build additive mask biases + constant head masks
# --------------------------------------------------------------------------
def _build_block_bias(mask):
    """(B, Lq, Lk) 0/1 mask -> (B*Lq, H*B*Lk) additive bias (tiled per head):
    0 where attendable (same batch AND mask != 0), NEG_INF elsewhere."""
    B, Lq, Lk = mask.shape
    same = jnp.arange(B)[:, None, None, None] == jnp.arange(B)[None, None, :, None]
    valid = jnp.logical_and(same, (mask != 0.0)[:, :, None, :])       # (B,Lq,B,Lk)
    bias = jnp.where(valid, 0.0, NEG_INF).astype(jnp.float32).reshape(B * Lq, B * Lk)
    return jnp.tile(bias, (1, NUM_HEADS))                              # (B*Lq, H*B*Lk)


def _head_mask(nk):
    """(H*nk, D): 1 where row block h selects head-h feature columns."""
    r = jnp.repeat(jnp.arange(NUM_HEADS), nk)[:, None]                 # head id per row
    c = (jnp.arange(D_MODEL) // HEAD_DIM)[None, :]                     # head id per col
    return (r == c).astype(jnp.float32)


def _block_ones(nk):
    """(H*nk, H*nk) block-diagonal ones (per-head softmax-denominator broadcast)."""
    r = jnp.repeat(jnp.arange(NUM_HEADS), nk)
    return (r[:, None] == r[None, :]).astype(jnp.float32)


def _pack_params(params):
    """Fuse QKV weights, fold attention scale into Wq, hoist+fuse cross-KV across
    layers, stack the rest over layers."""
    scale = 1.0 / math.sqrt(HEAD_DIM)

    def stack(fn):
        return jnp.stack([fn(p) for p in params], axis=0)

    wkvc_all = jnp.concatenate(
        [jnp.concatenate([p["cross_attn"]["wk"], p["cross_attn"]["wv"]], axis=1)
         for p in params], axis=1)                                     # (D, L*2D)
    bkvc_all = jnp.concatenate(
        [jnp.concatenate([p["cross_attn"]["bk"], p["cross_attn"]["bv"]], axis=1)
         for p in params], axis=1)                                     # (1, L*2D)

    return [
        # self-attention: fused QKV (scale folded into Wq / bq)
        stack(lambda p: jnp.concatenate([p["self_attn"]["wq"] * scale,
                                         p["self_attn"]["wk"],
                                         p["self_attn"]["wv"]], axis=1)),
        stack(lambda p: jnp.concatenate([p["self_attn"]["bq"] * scale,
                                         p["self_attn"]["bk"],
                                         p["self_attn"]["bv"]], axis=1)),
        stack(lambda p: p["self_attn"]["wo"]),
        stack(lambda p: p["self_attn"]["bo"]),
        # cross-attention: scaled Q, fused-across-layers KV, output proj
        stack(lambda p: p["cross_attn"]["wq"] * scale),
        stack(lambda p: p["cross_attn"]["bq"] * scale),
        wkvc_all,
        bkvc_all,
        stack(lambda p: p["cross_attn"]["wo"]),
        stack(lambda p: p["cross_attn"]["bo"]),
        # feed-forward
        stack(lambda p: p["ffn"]["w1"]),
        stack(lambda p: p["ffn"]["b1"]),
        stack(lambda p: p["ffn"]["w2"]),
        stack(lambda p: p["ffn"]["b2"]),
        stack(lambda p: p["ffn"]["g"]),
        stack(lambda p: p["ffn"]["b"]),
        # layer norms
        stack(lambda p: p["ln1_g"]), stack(lambda p: p["ln1_b"]),
        stack(lambda p: p["ln2_g"]), stack(lambda p: p["ln2_b"]),
        stack(lambda p: p["ln3_g"]), stack(lambda p: p["ln3_b"]),
    ]


@jax.jit
def transformer_decoder(x, enc_outputs, src_mask, tgt_mask, params):
    B, Ld, D = x.shape
    Le = enc_outputs.shape[1]
    x_flat = x.reshape(B * Ld, D)
    enc_flat = enc_outputs.reshape(B * Le, D)

    sbias = _build_block_bias(tgt_mask)      # (B*Ld, H*B*Ld)
    cbias = _build_block_bias(src_mask)      # (B*Ld, H*B*Le)
    hmask_s = _head_mask(B * Ld)
    bones_s = _block_ones(B * Ld)
    hmask_c = _head_mask(B * Le)
    bones_c = _block_ones(B * Le)
    packed = _pack_params(params)

    inputs = [x_flat, enc_flat, sbias, cbias,
              hmask_s, bones_s, hmask_c, bones_c] + packed

    vmem = pl.BlockSpec(memory_space=pltpu.MemorySpace.VMEM)
    out_flat = pl.pallas_call(
        decoder_kernel,
        out_shape=jax.ShapeDtypeStruct((B * Ld, D), jnp.float32),
        in_specs=[vmem] * len(inputs),       # everything resident in VMEM (no grid)
        out_specs=vmem,
        compiler_params=pltpu.CompilerParams(vmem_limit_bytes=16 * 1024 * 1024),
    )(*inputs)
    return out_flat.reshape(B, Ld, D)


# --------------------------------------------------------------------------
# Pure-JAX reference (same math as the torch module) for a sanity check
# --------------------------------------------------------------------------
def mha_ref(q, kv, mask, p):
    B, Lq, D = q.shape
    Lk = kv.shape[1]
    qp = (q @ p["wq"] + p["bq"]).reshape(B, Lq, NUM_HEADS, HEAD_DIM).transpose(0, 2, 1, 3)
    kp = (kv @ p["wk"] + p["bk"]).reshape(B, Lk, NUM_HEADS, HEAD_DIM).transpose(0, 2, 1, 3)
    vp = (kv @ p["wv"] + p["bv"]).reshape(B, Lk, NUM_HEADS, HEAD_DIM).transpose(0, 2, 1, 3)
    s = jnp.einsum("bhqd,bhkd->bhqk", qp, kp) / math.sqrt(HEAD_DIM)
    s = jnp.where(mask[:, None, :, :] == 0.0, -jnp.inf, s)
    a = jax.nn.softmax(s, axis=-1)
    o = jnp.einsum("bhqk,bhkd->bhqd", a, vp).transpose(0, 2, 1, 3).reshape(B, Lq, D)
    return o @ p["wo"] + p["bo"]


def decoder_layer_ref(x, enc, src_mask, tgt_mask, p):
    x = _layernorm(x + mha_ref(x, x, tgt_mask, p["self_attn"]), p["ln1_g"], p["ln1_b"])
    x = _layernorm(x + mha_ref(x, enc, src_mask, p["cross_attn"]), p["ln2_g"], p["ln2_b"])
    fp = p["ffn"]
    h = jax.nn.gelu(x @ fp["w1"] + fp["b1"], approximate=False)
    ff_out = x + _layernorm(h @ fp["w2"] + fp["b2"], fp["g"], fp["b"])
    x = _layernorm(x + ff_out, p["ln3_g"], p["ln3_b"])
    return x


def transformer_decoder_ref(x, enc, src_mask, tgt_mask, params):
    for p in params:
        x = decoder_layer_ref(x, enc, src_mask, tgt_mask, p)
    return x


# --------------------------------------------------------------------------
# Deterministic parameter init
# --------------------------------------------------------------------------
def _linear(key, din, dout, scale=0.08):
    kw, kb = jax.random.split(key)
    return (jax.random.normal(kw, (din, dout), jnp.float32) * scale,
            jax.random.normal(kb, (1, dout), jnp.float32) * scale)


def _mha_params(key, d):
    k = jax.random.split(key, 4)
    wq, bq = _linear(k[0], d, d)
    wk, bk = _linear(k[1], d, d)
    wv, bv = _linear(k[2], d, d)
    wo, bo = _linear(k[3], d, d)
    return dict(wq=wq, bq=bq, wk=wk, bk=bk, wv=wv, bv=bv, wo=wo, bo=bo)


def _ln_params(key, d):
    kg, kb = jax.random.split(key)
    g = 1.0 + 0.05 * jax.random.normal(kg, (1, d), jnp.float32)
    b = 0.05 * jax.random.normal(kb, (1, d), jnp.float32)
    return g, b


def _layer_params(key, d):
    k = jax.random.split(key, 8)
    w1, b1 = _linear(k[2], d, d)     # hidden_features defaults to in_features
    w2, b2 = _linear(k[3], d, d)
    gff, bff = _ln_params(k[4], d)
    g1, bb1 = _ln_params(k[5], d)
    g2, bb2 = _ln_params(k[6], d)
    g3, bb3 = _ln_params(k[7], d)
    return dict(
        self_attn=_mha_params(k[0], d),
        cross_attn=_mha_params(k[1], d),
        ffn=dict(w1=w1, b1=b1, w2=w2, b2=b2, g=gff, b=bff),
        ln1_g=g1, ln1_b=bb1, ln2_g=g2, ln2_b=bb2, ln3_g=g3, ln3_b=bb3,
    )


if __name__ == "__main__":
    B, L_DEC, L_ENC = 2, 8, 8
    key = jax.random.PRNGKey(0)
    kx, kenc, kp = jax.random.split(key, 3)

    x = jax.random.normal(kx, (B, L_DEC, D_MODEL), jnp.float32)
    enc_outputs = jax.random.normal(kenc, (B, L_ENC, D_MODEL), jnp.float32)

    # tgt_mask: causal; src_mask: all-ones (values 0/1, broadcast over heads)
    tgt_mask = jnp.tril(jnp.ones((L_DEC, L_DEC), jnp.float32))[None].repeat(B, axis=0)
    src_mask = jnp.ones((B, L_DEC, L_ENC), jnp.float32)

    params = [_layer_params(k, D_MODEL) for k in jax.random.split(kp, NUM_LAYERS)]

    out = jax.block_until_ready(
        transformer_decoder(x, enc_outputs, src_mask, tgt_mask, params))
    ref = jax.block_until_ready(
        transformer_decoder_ref(x, enc_outputs, src_mask, tgt_mask, params))

    assert out.shape == (B, L_DEC, D_MODEL)
    assert bool(jnp.all(jnp.isfinite(out)))
    assert bool(jnp.allclose(out, ref, atol=2e-2, rtol=2e-2)), "mismatch vs JAX reference"

    print("KERNEL_OK")
</pallas_src>

<mosaic_0001>
module attributes {stable_mosaic.version = 11 : i64} {
  func.func @decoder_kernel(%arg0: memref<16x32xf32, #tpu.memory_space<vmem>>, %arg1: memref<16x32xf32, #tpu.memory_space<vmem>>, %arg2: memref<16x64xf32, #tpu.memory_space<vmem>>, %arg3: memref<16x64xf32, #tpu.memory_space<vmem>>, %arg4: memref<64x32xf32, #tpu.memory_space<vmem>>, %arg5: memref<64x64xf32, #tpu.memory_space<vmem>>, %arg6: memref<64x32xf32, #tpu.memory_space<vmem>>, %arg7: memref<64x64xf32, #tpu.memory_space<vmem>>, %arg8: memref<2x32x96xf32, #tpu.memory_space<vmem>>, %arg9: memref<2x1x96xf32, #tpu.memory_space<vmem>>, %arg10: memref<2x32x32xf32, #tpu.memory_space<vmem>>, %arg11: memref<2x1x32xf32, #tpu.memory_space<vmem>>, %arg12: memref<2x32x32xf32, #tpu.memory_space<vmem>>, %arg13: memref<2x1x32xf32, #tpu.memory_space<vmem>>, %arg14: memref<32x128xf32, #tpu.memory_space<vmem>>, %arg15: memref<1x128xf32, #tpu.memory_space<vmem>>, %arg16: memref<2x32x32xf32, #tpu.memory_space<vmem>>, %arg17: memref<2x1x32xf32, #tpu.memory_space<vmem>>, %arg18: memref<2x32x32xf32, #tpu.memory_space<vmem>>, %arg19: memref<2x1x32xf32, #tpu.memory_space<vmem>>, %arg20: memref<2x32x32xf32, #tpu.memory_space<vmem>>, %arg21: memref<2x1x32xf32, #tpu.memory_space<vmem>>, %arg22: memref<2x1x32xf32, #tpu.memory_space<vmem>>, %arg23: memref<2x1x32xf32, #tpu.memory_space<vmem>>, %arg24: memref<2x1x32xf32, #tpu.memory_space<vmem>>, %arg25: memref<2x1x32xf32, #tpu.memory_space<vmem>>, %arg26: memref<2x1x32xf32, #tpu.memory_space<vmem>>, %arg27: memref<2x1x32xf32, #tpu.memory_space<vmem>>, %arg28: memref<2x1x32xf32, #tpu.memory_space<vmem>>, %arg29: memref<2x1x32xf32, #tpu.memory_space<vmem>>, %arg30: memref<16x32xf32, #tpu.memory_space<vmem>>) attributes {dimension_semantics = [], scalar_prefetch = 0 : i64, scratch_operands = 0 : i64, tpu.core_type = #tpu.core_type<tc>} {
    %c0 = arith.constant 0 : index
    %c0_0 = arith.constant 0 : index
    %0 = vector.load %arg0[%c0, %c0_0] : memref<16x32xf32, #tpu.memory_space<vmem>>, vector<16x32xf32>
    %c0_1 = arith.constant 0 : index
    %c0_2 = arith.constant 0 : index
    %1 = vector.load %arg1[%c0_1, %c0_2] : memref<16x32xf32, #tpu.memory_space<vmem>>, vector<16x32xf32>
    %c0_3 = arith.constant 0 : index
    %c0_4 = arith.constant 0 : index
    %2 = vector.load %arg2[%c0_3, %c0_4] : memref<16x64xf32, #tpu.memory_space<vmem>>, vector<16x64xf32>
    %c0_5 = arith.constant 0 : index
    %c0_6 = arith.constant 0 : index
    %3 = vector.load %arg3[%c0_5, %c0_6] : memref<16x64xf32, #tpu.memory_space<vmem>>, vector<16x64xf32>
    %c0_7 = arith.constant 0 : index
    %c0_8 = arith.constant 0 : index
    %4 = vector.load %arg4[%c0_7, %c0_8] : memref<64x32xf32, #tpu.memory_space<vmem>>, vector<64x32xf32>
    %c0_9 = arith.constant 0 : index
    %c0_10 = arith.constant 0 : index
    %5 = vector.load %arg5[%c0_9, %c0_10] : memref<64x64xf32, #tpu.memory_space<vmem>>, vector<64x64xf32>
    %c0_11 = arith.constant 0 : index
    %c0_12 = arith.constant 0 : index
    %6 = vector.load %arg6[%c0_11, %c0_12] : memref<64x32xf32, #tpu.memory_space<vmem>>, vector<64x32xf32>
    %c0_13 = arith.constant 0 : index
    %c0_14 = arith.constant 0 : index
    %7 = vector.load %arg7[%c0_13, %c0_14] : memref<64x64xf32, #tpu.memory_space<vmem>>, vector<64x64xf32>
    %c0_15 = arith.constant 0 : index
    %c0_16 = arith.constant 0 : index
    %8 = vector.load %arg14[%c0_15, %c0_16] : memref<32x128xf32, #tpu.memory_space<vmem>>, vector<32x128xf32>
    %cst = arith.constant dense<0.000000e+00> : vector<16x128xf32>
    %9 = tpu.matmul %1, %8, %cst {dimension_numbers = #tpu.dot_dimension_numbers<[1], [0], [0], [1], [0, 0, 1, 1], [], []>} : vector<16x32xf32>, vector<32x128xf32>, vector<16x128xf32> -> vector<16x128xf32>
    %c0_17 = arith.constant 0 : index
    %c0_18 = arith.constant 0 : index
    %10 = vector.load %arg15[%c0_17, %c0_18] : memref<1x128xf32, #tpu.memory_space<vmem>>, vector<1x128xf32>
    %11 = vector.broadcast %10 : vector<1x128xf32> to vector<16x128xf32>
    %12 = arith.addf %9, %11 : vector<16x128xf32>
    %c0_19 = arith.constant 0 : index
    %c0_20 = arith.constant 0 : index
    %c0_21 = arith.constant 0 : index
    %13 = vector.load %arg8[%c0_19, %c0_20, %c0_21] : memref<2x32x96xf32, #tpu.memory_space<vmem>>, vector<1x32x96xf32>
    %14 = vector.shape_cast %13 : vector<1x32x96xf32> to vector<32x96xf32>
    %cst_22 = arith.constant dense<0.000000e+00> : vector<16x96xf32>
    %15 = tpu.matmul %0, %14, %cst_22 {dimension_numbers = #tpu.dot_dimension_numbers<[1], [0], [0], [1], [0, 0, 1, 1], [], []>} : vector<16x32xf32>, vector<32x96xf32>, vector<16x96xf32> -> vector<16x96xf32>
    %c0_23 = arith.constant 0 : index
    %c0_24 = arith.constant 0 : index
    %c0_25 = arith.constant 0 : index
    %16 = vector.load %arg9[%c0_23, %c0_24, %c0_25] : memref<2x1x96xf32, #tpu.memory_space<vmem>>, vector<1x1x96xf32>
    %17 = vector.shape_cast %16 : vector<1x1x96xf32> to vector<1x96xf32>
    %18 = vector.broadcast %17 : vector<1x96xf32> to vector<16x96xf32>
    %19 = arith.addf %15, %18 : vector<16x96xf32>
    %20 = vector.extract_strided_slice %19 {offsets = [0, 0], sizes = [16, 32], strides = [1, 1]} : vector<16x96xf32> to vector<16x32xf32>
    %21 = vector.extract_strided_slice %19 {offsets = [0, 32], sizes = [16, 32], strides = [1, 1]} : vector<16x96xf32> to vector<16x32xf32>
    %22 = vector.extract_strided_slice %19 {offsets = [0, 64], sizes = [16, 32], strides = [1, 1]} : vector<16x96xf32> to vector<16x32xf32>
    %c0_26 = arith.constant 0 : index
    %c0_27 = arith.constant 0 : index
    %c0_28 = arith.constant 0 : index
    %23 = vector.load %arg10[%c0_26, %c0_27, %c0_28] : memref<2x32x32xf32, #tpu.memory_space<vmem>>, vector<1x32x32xf32>
    %24 = vector.shape_cast %23 : vector<1x32x32xf32> to vector<32x32xf32>
    %c0_29 = arith.constant 0 : index
    %c0_30 = arith.constant 0 : index
    %c0_31 = arith.constant 0 : index
    %25 = vector.load %arg11[%c0_29, %c0_30, %c0_31] : memref<2x1x32xf32, #tpu.memory_space<vmem>>, vector<1x1x32xf32>
    %26 = vector.shape_cast %25 : vector<1x1x32xf32> to vector<1x32xf32>
    %27 = tpu.concatenate %21, %21, %21, %21 in 0 : vector<16x32xf32>, vector<16x32xf32>, vector<16x32xf32>, vector<16x32xf32> -> vector<64x32xf32>
    %28 = arith.mulf %27, %4 : vector<64x32xf32>
    %29 = tpu.concatenate %22, %22, %22, %22 in 0 : vector<16x32xf32>, vector<16x32xf32>, vector<16x32xf32>, vector<16x32xf32> -> vector<64x32xf32>
    %30 = arith.mulf %29, %4 : vector<64x32xf32>
    %cst_32 = arith.constant dense<0.000000e+00> : vector<16x64xf32>
    %31 = tpu.matmul %20, %28, %cst_32 {dimension_numbers = #tpu.dot_dimension_numbers<[1], [1], [0], [0], [0, 0, 1, 0], [], []>} : vector<16x32xf32>, vector<64x32xf32>, vector<16x64xf32> -> vector<16x64xf32>
    %32 = arith.addf %31, %2 : vector<16x64xf32>
    %cst_33 = arith.constant dense<0xFF800000> : vector<16xf32>
    %33 = vector.multi_reduction <maximumf>, %32, %cst_33 [1] : vector<16x64xf32> to vector<16xf32>
    %34 = vector.shape_cast %33 : vector<16xf32> to vector<16x1xf32>
    %35 = vector.broadcast %34 : vector<16x1xf32> to vector<16x64xf32>
    %36 = arith.subf %32, %35 : vector<16x64xf32>
    %37 = math.exp %36 : vector<16x64xf32>
    %cst_34 = arith.constant dense<0.000000e+00> : vector<16x64xf32>
    %38 = tpu.matmul %37, %5, %cst_34 {dimension_numbers = #tpu.dot_dimension_numbers<[1], [0], [0], [1], [0, 0, 1, 1], [], []>} : vector<16x64xf32>, vector<64x64xf32>, vector<16x64xf32> -> vector<16x64xf32>
    %39 = tpu.reciprocal %38 {approx = true} : vector<16x64xf32> -> vector<16x64xf32>
    %40 = arith.mulf %37, %39 : vector<16x64xf32>
    %cst_35 = arith.constant dense<0.000000e+00> : vector<16x32xf32>
    %41 = tpu.matmul %40, %30, %cst_35 {dimension_numbers = #tpu.dot_dimension_numbers<[1], [0], [0], [1], [0, 0, 1, 1], [], []>} : vector<16x64xf32>, vector<64x32xf32>, vector<16x32xf32> -> vector<16x32xf32>
    %cst_36 = arith.constant dense<0.000000e+00> : vector<16x32xf32>
    %42 = tpu.matmul %41, %24, %cst_36 {dimension_numbers = #tpu.dot_dimension_numbers<[1], [0], [0], [1], [0, 0, 1, 1], [], []>} : vector<16x32xf32>, vector<32x32xf32>, vector<16x32xf32> -> vector<16x32xf32>
    %43 = vector.broadcast %26 : vector<1x32xf32> to vector<16x32xf32>
    %44 = arith.addf %42, %43 : vector<16x32xf32>
    %45 = arith.addf %0, %44 : vector<16x32xf32>
    %c0_37 = arith.constant 0 : index
    %c0_38 = arith.constant 0 : index
    %c0_39 = arith.constant 0 : index
    %46 = vector.load %arg24[%c0_37, %c0_38, %c0_39] : memref<2x1x32xf32, #tpu.memory_space<vmem>>, vector<1x1x32xf32>
    %47 = vector.shape_cast %46 : vector<1x1x32xf32> to vector<1x32xf32>
    %c0_40 = arith.constant 0 : index
    %c0_41 = arith.constant 0 : index
    %c0_42 = arith.constant 0 : index
    %48 = vector.load %arg25[%c0_40, %c0_41, %c0_42] : memref<2x1x32xf32, #tpu.memory_space<vmem>>, vector<1x1x32xf32>
    %49 = vector.shape_cast %48 : vector<1x1x32xf32> to vector<1x32xf32>
    %cst_43 = arith.constant dense<0.000000e+00> : vector<16xf32>
    %50 = vector.multi_reduction <add>, %45, %cst_43 [1] : vector<16x32xf32> to vector<16xf32>
    %51 = vector.shape_cast %50 : vector<16xf32> to vector<16x1xf32>
    %cst_44 = arith.constant 3.200000e+01 : f32
    %52 = vector.broadcast %cst_44 : f32 to vector<16x1xf32>
    %53 = arith.divf %51, %52 : vector<16x1xf32>
    %54 = vector.broadcast %53 : vector<16x1xf32> to vector<16x32xf32>
    %55 = arith.subf %45, %54 : vector<16x32xf32>
    %56 = arith.mulf %55, %55 : vector<16x32xf32>
    %cst_45 = arith.constant dense<0.000000e+00> : vector<16xf32>
    %57 = vector.multi_reduction <add>, %56, %cst_45 [1] : vector<16x32xf32> to vector<16xf32>
    %58 = vector.shape_cast %57 : vector<16xf32> to vector<16x1xf32>
    %cst_46 = arith.constant 3.200000e+01 : f32
    %59 = vector.broadcast %cst_46 : f32 to vector<16x1xf32>
    %60 = arith.divf %58, %59 : vector<16x1xf32>
    %61 = vector.broadcast %53 : vector<16x1xf32> to vector<16x32xf32>
    %62 = arith.subf %45, %61 : vector<16x32xf32>
    %cst_47 = arith.constant 9.99999974E-6 : f32
    %63 = vector.broadcast %cst_47 : f32 to vector<16x1xf32>
    %64 = arith.addf %60, %63 : vector<16x1xf32>
    %65 = math.rsqrt %64 : vector<16x1xf32>
    %66 = vector.broadcast %65 : vector<16x1xf32> to vector<16x32xf32>
    %67 = arith.mulf %62, %66 : vector<16x32xf32>
    %68 = vector.broadcast %47 : vector<1x32xf32> to vector<16x32xf32>
    %69 = arith.mulf %67, %68 : vector<16x32xf32>
    %70 = vector.broadcast %49 : vector<1x32xf32> to vector<16x32xf32>
    %71 = arith.addf %69, %70 : vector<16x32xf32>
    %c0_48 = arith.constant 0 : index
    %c0_49 = arith.constant 0 : index
    %c0_50 = arith.constant 0 : index
    %72 = vector.load %arg12[%c0_48, %c0_49, %c0_50] : memref<2x32x32xf32, #tpu.memory_space<vmem>>, vector<1x32x32xf32>
    %73 = vector.shape_cast %72 : vector<1x32x32xf32> to vector<32x32xf32>
    %cst_51 = arith.constant dense<0.000000e+00> : vector<16x32xf32>
    %74 = tpu.matmul %71, %73, %cst_51 {dimension_numbers = #tpu.dot_dimension_numbers<[1], [0], [0], [1], [0, 0, 1, 1], [], []>} : vector<16x32xf32>, vector<32x32xf32>, vector<16x32xf32> -> vector<16x32xf32>
    %c0_52 = arith.constant 0 : index
    %c0_53 = arith.constant 0 : index
    %c0_54 = arith.constant 0 : index
    %75 = vector.load %arg13[%c0_52, %c0_53, %c0_54] : memref<2x1x32xf32, #tpu.memory_space<vmem>>, vector<1x1x32xf32>
    %76 = vector.shape_cast %75 : vector<1x1x32xf32> to vector<1x32xf32>
    %77 = vector.broadcast %76 : vector<1x32xf32> to vector<16x32xf32>
    %78 = arith.addf %74, %77 : vector<16x32xf32>
    %79 = vector.extract_strided_slice %12 {offsets = [0, 0], sizes = [16, 32], strides = [1, 1]} : vector<16x128xf32> to vector<16x32xf32>
    %80 = vector.extract_strided_slice %12 {offsets = [0, 32], sizes = [16, 32], strides = [1, 1]} : vector<16x128xf32> to vector<16x32xf32>
    %c0_55 = arith.constant 0 : index
    %c0_56 = arith.constant 0 : index
    %c0_57 = arith.constant 0 : index
    %81 = vector.load %arg16[%c0_55, %c0_56, %c0_57] : memref<2x32x32xf32, #tpu.memory_space<vmem>>, vector<1x32x32xf32>
    %82 = vector.shape_cast %81 : vector<1x32x32xf32> to vector<32x32xf32>
    %c0_58 = arith.constant 0 : index
    %c0_59 = arith.constant 0 : index
    %c0_60 = arith.constant 0 : index
    %83 = vector.load %arg17[%c0_58, %c0_59, %c0_60] : memref<2x1x32xf32, #tpu.memory_space<vmem>>, vector<1x1x32xf32>
    %84 = vector.shape_cast %83 : vector<1x1x32xf32> to vector<1x32xf32>
    %85 = tpu.concatenate %79, %79, %79, %79 in 0 : vector<16x32xf32>, vector<16x32xf32>, vector<16x32xf32>, vector<16x32xf32> -> vector<64x32xf32>
    %86 = arith.mulf %85, %6 : vector<64x32xf32>
    %87 = tpu.concatenate %80, %80, %80, %80 in 0 : vector<16x32xf32>, vector<16x32xf32>, vector<16x32xf32>, vector<16x32xf32> -> vector<64x32xf32>
    %88 = arith.mulf %87, %6 : vector<64x32xf32>
    %cst_61 = arith.constant dense<0.000000e+00> : vector<16x64xf32>
    %89 = tpu.matmul %78, %86, %cst_61 {dimension_numbers = #tpu.dot_dimension_numbers<[1], [1], [0], [0], [0, 0, 1, 0], [], []>} : vector<16x32xf32>, vector<64x32xf32>, vector<16x64xf32> -> vector<16x64xf32>
    %90 = arith.addf %89, %3 : vector<16x64xf32>
    %cst_62 = arith.constant dense<0xFF800000> : vector<16xf32>
    %91 = vector.multi_reduction <maximumf>, %90, %cst_62 [1] : vector<16x64xf32> to vector<16xf32>
    %92 = vector.shape_cast %91 : vector<16xf32> to vector<16x1xf32>
    %93 = vector.broadcast %92 : vector<16x1xf32> to vector<16x64xf32>
    %94 = arith.subf %90, %93 : vector<16x64xf32>
    %95 = math.exp %94 : vector<16x64xf32>
    %cst_63 = arith.constant dense<0.000000e+00> : vector<16x64xf32>
    %96 = tpu.matmul %95, %7, %cst_63 {dimension_numbers = #tpu.dot_dimension_numbers<[1], [0], [0], [1], [0, 0, 1, 1], [], []>} : vector<16x64xf32>, vector<64x64xf32>, vector<16x64xf32> -> vector<16x64xf32>
    %97 = tpu.reciprocal %96 {approx = true} : vector<16x64xf32> -> vector<16x64xf32>
    %98 = arith.mulf %95, %97 : vector<16x64xf32>
    %cst_64 = arith.constant dense<0.000000e+00> : vector<16x32xf32>
    %99 = tpu.matmul %98, %88, %cst_64 {dimension_numbers = #tpu.dot_dimension_numbers<[1], [0], [0], [1], [0, 0, 1, 1], [], []>} : vector<16x64xf32>, vector<64x32xf32>, vector<16x32xf32> -> vector<16x32xf32>
    %cst_65 = arith.constant dense<0.000000e+00> : vector<16x32xf32>
    %100 = tpu.matmul %99, %82, %cst_65 {dimension_numbers = #tpu.dot_dimension_numbers<[1], [0], [0], [1], [0, 0, 1, 1], [], []>} : vector<16x32xf32>, vector<32x32xf32>, vector<16x32xf32> -> vector<16x32xf32>
    %101 = vector.broadcast %84 : vector<1x32xf32> to vector<16x32xf32>
    %102 = arith.addf %100, %101 : vector<16x32xf32>
    %103 = arith.addf %71, %102 : vector<16x32xf32>
    %c0_66 = arith.constant 0 : index
    %c0_67 = arith.constant 0 : index
    %c0_68 = arith.constant 0 : index
    %104 = vector.load %arg26[%c0_66, %c0_67, %c0_68] : memref<2x1x32xf32, #tpu.memory_space<vmem>>, vector<1x1x32xf32>
    %105 = vector.shape_cast %104 : vector<1x1x32xf32> to vector<1x32xf32>
    %c0_69 = arith.constant 0 : index
    %c0_70 = arith.constant 0 : index
    %c0_71 = arith.constant 0 : index
    %106 = vector.load %arg27[%c0_69, %c0_70, %c0_71] : memref<2x1x32xf32, #tpu.memory_space<vmem>>, vector<1x1x32xf32>
    %107 = vector.shape_cast %106 : vector<1x1x32xf32> to vector<1x32xf32>
    %cst_72 = arith.constant dense<0.000000e+00> : vector<16xf32>
    %108 = vector.multi_reduction <add>, %103, %cst_72 [1] : vector<16x32xf32> to vector<16xf32>
    %109 = vector.shape_cast %108 : vector<16xf32> to vector<16x1xf32>
    %cst_73 = arith.constant 3.200000e+01 : f32
    %110 = vector.broadcast %cst_73 : f32 to vector<16x1xf32>
    %111 = arith.divf %109, %110 : vector<16x1xf32>
    %112 = vector.broadcast %111 : vector<16x1xf32> to vector<16x32xf32>
    %113 = arith.subf %103, %112 : vector<16x32xf32>
    %114 = arith.mulf %113, %113 : vector<16x32xf32>
    %cst_74 = arith.constant dense<0.000000e+00> : vector<16xf32>
    %115 = vector.multi_reduction <add>, %114, %cst_74 [1] : vector<16x32xf32> to vector<16xf32>
    %116 = vector.shape_cast %115 : vector<16xf32> to vector<16x1xf32>
    %cst_75 = arith.constant 3.200000e+01 : f32
    %117 = vector.broadcast %cst_75 : f32 to vector<16x1xf32>
    %118 = arith.divf %116, %117 : vector<16x1xf32>
    %119 = vector.broadcast %111 : vector<16x1xf32> to vector<16x32xf32>
    %120 = arith.subf %103, %119 : vector<16x32xf32>
    %cst_76 = arith.constant 9.99999974E-6 : f32
    %121 = vector.broadcast %cst_76 : f32 to vector<16x1xf32>
    %122 = arith.addf %118, %121 : vector<16x1xf32>
    %123 = math.rsqrt %122 : vector<16x1xf32>
    %124 = vector.broadcast %123 : vector<16x1xf32> to vector<16x32xf32>
    %125 = arith.mulf %120, %124 : vector<16x32xf32>
    %126 = vector.broadcast %105 : vector<1x32xf32> to vector<16x32xf32>
    %127 = arith.mulf %125, %126 : vector<16x32xf32>
    %128 = vector.broadcast %107 : vector<1x32xf32> to vector<16x32xf32>
    %129 = arith.addf %127, %128 : vector<16x32xf32>
    %c0_77 = arith.constant 0 : index
    %c0_78 = arith.constant 0 : index
    %c0_79 = arith.constant 0 : index
    %130 = vector.load %arg18[%c0_77, %c0_78, %c0_79] : memref<2x32x32xf32, #tpu.memory_space<vmem>>, vector<1x32x32xf32>
    %131 = vector.shape_cast %130 : vector<1x32x32xf32> to vector<32x32xf32>
    %cst_80 = arith.constant dense<0.000000e+00> : vector<16x32xf32>
    %132 = tpu.matmul %129, %131, %cst_80 {dimension_numbers = #tpu.dot_dimension_numbers<[1], [0], [0], [1], [0, 0, 1, 1], [], []>} : vector<16x32xf32>, vector<32x32xf32>, vector<16x32xf32> -> vector<16x32xf32>
    %c0_81 = arith.constant 0 : index
    %c0_82 = arith.constant 0 : index
    %c0_83 = arith.constant 0 : index
    %133 = vector.load %arg19[%c0_81, %c0_82, %c0_83] : memref<2x1x32xf32, #tpu.memory_space<vmem>>, vector<1x1x32xf32>
    %134 = vector.shape_cast %133 : vector<1x1x32xf32> to vector<1x32xf32>
    %135 = vector.broadcast %134 : vector<1x32xf32> to vector<16x32xf32>
    %136 = arith.addf %132, %135 : vector<16x32xf32>
    %cst_84 = arith.constant 5.000000e-01 : f32
    %137 = vector.broadcast %cst_84 : f32 to vector<16x32xf32>
    %138 = arith.mulf %137, %136 : vector<16x32xf32>
    %cst_85 = arith.constant 0.707106769 : f32
    %139 = vector.broadcast %cst_85 : f32 to vector<16x32xf32>
    %140 = arith.mulf %136, %139 : vector<16x32xf32>
    %141 = math.absf %140 : vector<16x32xf32>
    %cst_86 = arith.constant 0.327591091 : f32
    %142 = vector.broadcast %cst_86 : f32 to vector<16x32xf32>
    %143 = arith.mulf %142, %141 : vector<16x32xf32>
    %cst_87 = arith.constant 1.000000e+00 : f32
    %144 = vector.broadcast %cst_87 : f32 to vector<16x32xf32>
    %145 = arith.addf %144, %143 : vector<16x32xf32>
    %cst_88 = arith.constant 1.000000e+00 : f32
    %146 = vector.broadcast %cst_88 : f32 to vector<16x32xf32>
    %147 = arith.divf %146, %145 : vector<16x32xf32>
    %cst_89 = arith.constant 1.06140542 : f32
    %148 = vector.broadcast %cst_89 : f32 to vector<16x32xf32>
    %149 = arith.mulf %148, %147 : vector<16x32xf32>
    %cst_90 = arith.constant -1.45315206 : f32
    %150 = vector.broadcast %cst_90 : f32 to vector<16x32xf32>
    %151 = arith.addf %149, %150 : vector<16x32xf32>
    %152 = arith.mulf %151, %147 : vector<16x32xf32>
    %cst_91 = arith.constant 1.42141378 : f32
    %153 = vector.broadcast %cst_91 : f32 to vector<16x32xf32>
    %154 = arith.addf %152, %153 : vector<16x32xf32>
    %155 = arith.mulf %154, %147 : vector<16x32xf32>
    %cst_92 = arith.constant -0.284496725 : f32
    %156 = vector.broadcast %cst_92 : f32 to vector<16x32xf32>
    %157 = arith.addf %155, %156 : vector<16x32xf32>
    %158 = arith.mulf %157, %147 : vector<16x32xf32>
    %cst_93 = arith.constant 0.254829586 : f32
    %159 = vector.broadcast %cst_93 : f32 to vector<16x32xf32>
    %160 = arith.addf %158, %159 : vector<16x32xf32>
    %161 = arith.mulf %160, %147 : vector<16x32xf32>
    %162 = arith.mulf %141, %141 : vector<16x32xf32>
    %cst_94 = arith.constant 0.000000e+00 : f32
    %163 = vector.broadcast %cst_94 : f32 to vector<16x32xf32>
    %164 = arith.subf %163, %162 : vector<16x32xf32>
    %165 = math.exp %164 : vector<16x32xf32>
    %166 = arith.mulf %161, %165 : vector<16x32xf32>
    %cst_95 = arith.constant 1.000000e+00 : f32
    %167 = vector.broadcast %cst_95 : f32 to vector<16x32xf32>
    %168 = arith.subf %167, %166 : vector<16x32xf32>
    %cst_96 = arith.constant 0.000000e+00 : f32
    %169 = vector.broadcast %cst_96 : f32 to vector<16x32xf32>
    %170 = arith.cmpf olt, %140, %169 : vector<16x32xf32>
    %cst_97 = arith.constant 0.000000e+00 : f32
    %171 = vector.broadcast %cst_97 : f32 to vector<16x32xf32>
    %172 = arith.subf %171, %168 : vector<16x32xf32>
    %173 = arith.select %170, %172, %168 : vector<16x32xi1>, vector<16x32xf32>
    %cst_98 = arith.constant 1.000000e+00 : f32
    %174 = vector.broadcast %cst_98 : f32 to vector<16x32xf32>
    %175 = arith.addf %174, %173 : vector<16x32xf32>
    %176 = arith.mulf %138, %175 : vector<16x32xf32>
    %c0_99 = arith.constant 0 : index
    %c0_100 = arith.constant 0 : index
    %c0_101 = arith.constant 0 : index
    %177 = vector.load %arg20[%c0_99, %c0_100, %c0_101] : memref<2x32x32xf32, #tpu.memory_space<vmem>>, vector<1x32x32xf32>
    %178 = vector.shape_cast %177 : vector<1x32x32xf32> to vector<32x32xf32>
    %cst_102 = arith.constant dense<0.000000e+00> : vector<16x32xf32>
    %179 = tpu.matmul %176, %178, %cst_102 {dimension_numbers = #tpu.dot_dimension_numbers<[1], [0], [0], [1], [0, 0, 1, 1], [], []>} : vector<16x32xf32>, vector<32x32xf32>, vector<16x32xf32> -> vector<16x32xf32>
    %c0_103 = arith.constant 0 : index
    %c0_104 = arith.constant 0 : index
    %c0_105 = arith.constant 0 : index
    %180 = vector.load %arg21[%c0_103, %c0_104, %c0_105] : memref<2x1x32xf32, #tpu.memory_space<vmem>>, vector<1x1x32xf32>
    %181 = vector.shape_cast %180 : vector<1x1x32xf32> to vector<1x32xf32>
    %182 = vector.broadcast %181 : vector<1x32xf32> to vector<16x32xf32>
    %183 = arith.addf %179, %182 : vector<16x32xf32>
    %c0_106 = arith.constant 0 : index
    %c0_107 = arith.constant 0 : index
    %c0_108 = arith.constant 0 : index
    %184 = vector.load %arg22[%c0_106, %c0_107, %c0_108] : memref<2x1x32xf32, #tpu.memory_space<vmem>>, vector<1x1x32xf32>
    %185 = vector.shape_cast %184 : vector<1x1x32xf32> to vector<1x32xf32>
    %c0_109 = arith.constant 0 : index
    %c0_110 = arith.constant 0 : index
    %c0_111 = arith.constant 0 : index
    %186 = vector.load %arg23[%c0_109, %c0_110, %c0_111] : memref<2x1x32xf32, #tpu.memory_space<vmem>>, vector<1x1x32xf32>
    %187 = vector.shape_cast %186 : vector<1x1x32xf32> to vector<1x32xf32>
    %cst_112 = arith.constant dense<0.000000e+00> : vector<16xf32>
    %188 = vector.multi_reduction <add>, %183, %cst_112 [1] : vector<16x32xf32> to vector<16xf32>
    %189 = vector.shape_cast %188 : vector<16xf32> to vector<16x1xf32>
    %cst_113 = arith.constant 3.200000e+01 : f32
    %190 = vector.broadcast %cst_113 : f32 to vector<16x1xf32>
    %191 = arith.divf %189, %190 : vector<16x1xf32>
    %192 = vector.broadcast %191 : vector<16x1xf32> to vector<16x32xf32>
    %193 = arith.subf %183, %192 : vector<16x32xf32>
    %194 = arith.mulf %193, %193 : vector<16x32xf32>
    %cst_114 = arith.constant dense<0.000000e+00> : vector<16xf32>
    %195 = vector.multi_reduction <add>, %194, %cst_114 [1] : vector<16x32xf32> to vector<16xf32>
    %196 = vector.shape_cast %195 : vector<16xf32> to vector<16x1xf32>
    %cst_115 = arith.constant 3.200000e+01 : f32
    %197 = vector.broadcast %cst_115 : f32 to vector<16x1xf32>
    %198 = arith.divf %196, %197 : vector<16x1xf32>
    %199 = vector.broadcast %191 : vector<16x1xf32> to vector<16x32xf32>
    %200 = arith.subf %183, %199 : vector<16x32xf32>
    %cst_116 = arith.constant 9.99999974E-6 : f32
    %201 = vector.broadcast %cst_116 : f32 to vector<16x1xf32>
    %202 = arith.addf %198, %201 : vector<16x1xf32>
    %203 = math.rsqrt %202 : vector<16x1xf32>
    %204 = vector.broadcast %203 : vector<16x1xf32> to vector<16x32xf32>
    %205 = arith.mulf %200, %204 : vector<16x32xf32>
    %206 = vector.broadcast %185 : vector<1x32xf32> to vector<16x32xf32>
    %207 = arith.mulf %205, %206 : vector<16x32xf32>
    %208 = vector.broadcast %187 : vector<1x32xf32> to vector<16x32xf32>
    %209 = arith.addf %207, %208 : vector<16x32xf32>
    %210 = arith.addf %129, %209 : vector<16x32xf32>
    %211 = arith.addf %129, %210 : vector<16x32xf32>
    %c0_117 = arith.constant 0 : index
    %c0_118 = arith.constant 0 : index
    %c0_119 = arith.constant 0 : index
    %212 = vector.load %arg28[%c0_117, %c0_118, %c0_119] : memref<2x1x32xf32, #tpu.memory_space<vmem>>, vector<1x1x32xf32>
    %213 = vector.shape_cast %212 : vector<1x1x32xf32> to vector<1x32xf32>
    %c0_120 = arith.constant 0 : index
    %c0_121 = arith.constant 0 : index
    %c0_122 = arith.constant 0 : index
    %214 = vector.load %arg29[%c0_120, %c0_121, %c0_122] : memref<2x1x32xf32, #tpu.memory_space<vmem>>, vector<1x1x32xf32>
    %215 = vector.shape_cast %214 : vector<1x1x32xf32> to vector<1x32xf32>
    %cst_123 = arith.constant dense<0.000000e+00> : vector<16xf32>
    %216 = vector.multi_reduction <add>, %211, %cst_123 [1] : vector<16x32xf32> to vector<16xf32>
    %217 = vector.shape_cast %216 : vector<16xf32> to vector<16x1xf32>
    %cst_124 = arith.constant 3.200000e+01 : f32
    %218 = vector.broadcast %cst_124 : f32 to vector<16x1xf32>
    %219 = arith.divf %217, %218 : vector<16x1xf32>
    %220 = vector.broadcast %219 : vector<16x1xf32> to vector<16x32xf32>
    %221 = arith.subf %211, %220 : vector<16x32xf32>
    %222 = arith.mulf %221, %221 : vector<16x32xf32>
    %cst_125 = arith.constant dense<0.000000e+00> : vector<16xf32>
    %223 = vector.multi_reduction <add>, %222, %cst_125 [1] : vector<16x32xf32> to vector<16xf32>
    %224 = vector.shape_cast %223 : vector<16xf32> to vector<16x1xf32>
    %cst_126 = arith.constant 3.200000e+01 : f32
    %225 = vector.broadcast %cst_126 : f32 to vector<16x1xf32>
    %226 = arith.divf %224, %225 : vector<16x1xf32>
    %227 = vector.broadcast %219 : vector<16x1xf32> to vector<16x32xf32>
    %228 = arith.subf %211, %227 : vector<16x32xf32>
    %cst_127 = arith.constant 9.99999974E-6 : f32
    %229 = vector.broadcast %cst_127 : f32 to vector<16x1xf32>
    %230 = arith.addf %226, %229 : vector<16x1xf32>
    %231 = math.rsqrt %230 : vector<16x1xf32>
    %232 = vector.broadcast %231 : vector<16x1xf32> to vector<16x32xf32>
    %233 = arith.mulf %228, %232 : vector<16x32xf32>
    %234 = vector.broadcast %213 : vector<1x32xf32> to vector<16x32xf32>
    %235 = arith.mulf %233, %234 : vector<16x32xf32>
    %236 = vector.broadcast %215 : vector<1x32xf32> to vector<16x32xf32>
    %237 = arith.addf %235, %236 : vector<16x32xf32>
    %c1 = arith.constant 1 : index
    %c0_128 = arith.constant 0 : index
    %c0_129 = arith.constant 0 : index
    %238 = vector.load %arg8[%c1, %c0_128, %c0_129] : memref<2x32x96xf32, #tpu.memory_space<vmem>>, vector<1x32x96xf32>
    %239 = vector.shape_cast %238 : vector<1x32x96xf32> to vector<32x96xf32>
    %cst_130 = arith.constant dense<0.000000e+00> : vector<16x96xf32>
    %240 = tpu.matmul %237, %239, %cst_130 {dimension_numbers = #tpu.dot_dimension_numbers<[1], [0], [0], [1], [0, 0, 1, 1], [], []>} : vector<16x32xf32>, vector<32x96xf32>, vector<16x96xf32> -> vector<16x96xf32>
    %c1_131 = arith.constant 1 : index
    %c0_132 = arith.constant 0 : index
    %c0_133 = arith.constant 0 : index
    %241 = vector.load %arg9[%c1_131, %c0_132, %c0_133] : memref<2x1x96xf32, #tpu.memory_space<vmem>>, vector<1x1x96xf32>
    %242 = vector.shape_cast %241 : vector<1x1x96xf32> to vector<1x96xf32>
    %243 = vector.broadcast %242 : vector<1x96xf32> to vector<16x96xf32>
    %244 = arith.addf %240, %243 : vector<16x96xf32>
    %245 = vector.extract_strided_slice %244 {offsets = [0, 0], sizes = [16, 32], strides = [1, 1]} : vector<16x96xf32> to vector<16x32xf32>
    %246 = vector.extract_strided_slice %244 {offsets = [0, 32], sizes = [16, 32], strides = [1, 1]} : vector<16x96xf32> to vector<16x32xf32>
    %247 = vector.extract_strided_slice %244 {offsets = [0, 64], sizes = [16, 32], strides = [1, 1]} : vector<16x96xf32> to vector<16x32xf32>
    %c1_134 = arith.constant 1 : index
    %c0_135 = arith.constant 0 : index
    %c0_136 = arith.constant 0 : index
    %248 = vector.load %arg10[%c1_134, %c0_135, %c0_136] : memref<2x32x32xf32, #tpu.memory_space<vmem>>, vector<1x32x32xf32>
    %249 = vector.shape_cast %248 : vector<1x32x32xf32> to vector<32x32xf32>
    %c1_137 = arith.constant 1 : index
    %c0_138 = arith.constant 0 : index
    %c0_139 = arith.constant 0 : index
    %250 = vector.load %arg11[%c1_137, %c0_138, %c0_139] : memref<2x1x32xf32, #tpu.memory_space<vmem>>, vector<1x1x32xf32>
    %251 = vector.shape_cast %250 : vector<1x1x32xf32> to vector<1x32xf32>
    %252 = tpu.concatenate %246, %246, %246, %246 in 0 : vector<16x32xf32>, vector<16x32xf32>, vector<16x32xf32>, vector<16x32xf32> -> vector<64x32xf32>
    %253 = arith.mulf %252, %4 : vector<64x32xf32>
    %254 = tpu.concatenate %247, %247, %247, %247 in 0 : vector<16x32xf32>, vector<16x32xf32>, vector<16x32xf32>, vector<16x32xf32> -> vector<64x32xf32>
    %255 = arith.mulf %254, %4 : vector<64x32xf32>
    %cst_140 = arith.constant dense<0.000000e+00> : vector<16x64xf32>
    %256 = tpu.matmul %245, %253, %cst_140 {dimension_numbers = #tpu.dot_dimension_numbers<[1], [1], [0], [0], [0, 0, 1, 0], [], []>} : vector<16x32xf32>, vector<64x32xf32>, vector<16x64xf32> -> vector<16x64xf32>
    %257 = arith.addf %256, %2 : vector<16x64xf32>
    %cst_141 = arith.constant dense<0xFF800000> : vector<16xf32>
    %258 = vector.multi_reduction <maximumf>, %257, %cst_141 [1] : vector<16x64xf32> to vector<16xf32>
    %259 = vector.shape_cast %258 : vector<16xf32> to vector<16x1xf32>
    %260 = vector.broadcast %259 : vector<16x1xf32> to vector<16x64xf32>
    %261 = arith.subf %257, %260 : vector<16x64xf32>
    %262 = math.exp %261 : vector<16x64xf32>
    %cst_142 = arith.constant dense<0.000000e+00> : vector<16x64xf32>
    %263 = tpu.matmul %262, %5, %cst_142 {dimension_numbers = #tpu.dot_dimension_numbers<[1], [0], [0], [1], [0, 0, 1, 1], [], []>} : vector<16x64xf32>, vector<64x64xf32>, vector<16x64xf32> -> vector<16x64xf32>
    %264 = tpu.reciprocal %263 {approx = true} : vector<16x64xf32> -> vector<16x64xf32>
    %265 = arith.mulf %262, %264 : vector<16x64xf32>
    %cst_143 = arith.constant dense<0.000000e+00> : vector<16x32xf32>
    %266 = tpu.matmul %265, %255, %cst_143 {dimension_numbers = #tpu.dot_dimension_numbers<[1], [0], [0], [1], [0, 0, 1, 1], [], []>} : vector<16x64xf32>, vector<64x32xf32>, vector<16x32xf32> -> vector<16x32xf32>
    %cst_144 = arith.constant dense<0.000000e+00> : vector<16x32xf32>
    %267 = tpu.matmul %266, %249, %cst_144 {dimension_numbers = #tpu.dot_dimension_numbers<[1], [0], [0], [1], [0, 0, 1, 1], [], []>} : vector<16x32xf32>, vector<32x32xf32>, vector<16x32xf32> -> vector<16x32xf32>
    %268 = vector.broadcast %251 : vector<1x32xf32> to vector<16x32xf32>
    %269 = arith.addf %267, %268 : vector<16x32xf32>
    %270 = arith.addf %237, %269 : vector<16x32xf32>
    %c1_145 = arith.constant 1 : index
    %c0_146 = arith.constant 0 : index
    %c0_147 = arith.constant 0 : index
    %271 = vector.load %arg24[%c1_145, %c0_146, %c0_147] : memref<2x1x32xf32, #tpu.memory_space<vmem>>, vector<1x1x32xf32>
    %272 = vector.shape_cast %271 : vector<1x1x32xf32> to vector<1x32xf32>
    %c1_148 = arith.constant 1 : index
    %c0_149 = arith.constant 0 : index
    %c0_150 = arith.constant 0 : index
    %273 = vector.load %arg25[%c1_148, %c0_149, %c0_150] : memref<2x1x32xf32, #tpu.memory_space<vmem>>, vector<1x1x32xf32>
    %274 = vector.shape_cast %273 : vector<1x1x32xf32> to vector<1x32xf32>
    %cst_151 = arith.constant dense<0.000000e+00> : vector<16xf32>
    %275 = vector.multi_reduction <add>, %270, %cst_151 [1] : vector<16x32xf32> to vector<16xf32>
    %276 = vector.shape_cast %275 : vector<16xf32> to vector<16x1xf32>
    %cst_152 = arith.constant 3.200000e+01 : f32
    %277 = vector.broadcast %cst_152 : f32 to vector<16x1xf32>
    %278 = arith.divf %276, %277 : vector<16x1xf32>
    %279 = vector.broadcast %278 : vector<16x1xf32> to vector<16x32xf32>
    %280 = arith.subf %270, %279 : vector<16x32xf32>
    %281 = arith.mulf %280, %280 : vector<16x32xf32>
    %cst_153 = arith.constant dense<0.000000e+00> : vector<16xf32>
    %282 = vector.multi_reduction <add>, %281, %cst_153 [1] : vector<16x32xf32> to vector<16xf32>
    %283 = vector.shape_cast %282 : vector<16xf32> to vector<16x1xf32>
    %cst_154 = arith.constant 3.200000e+01 : f32
    %284 = vector.broadcast %cst_154 : f32 to vector<16x1xf32>
    %285 = arith.divf %283, %284 : vector<16x1xf32>
    %286 = vector.broadcast %278 : vector<16x1xf32> to vector<16x32xf32>
    %287 = arith.subf %270, %286 : vector<16x32xf32>
    %cst_155 = arith.constant 9.99999974E-6 : f32
    %288 = vector.broadcast %cst_155 : f32 to vector<16x1xf32>
    %289 = arith.addf %285, %288 : vector<16x1xf32>
    %290 = math.rsqrt %289 : vector<16x1xf32>
    %291 = vector.broadcast %290 : vector<16x1xf32> to vector<16x32xf32>
    %292 = arith.mulf %287, %291 : vector<16x32xf32>
    %293 = vector.broadcast %272 : vector<1x32xf32> to vector<16x32xf32>
    %294 = arith.mulf %292, %293 : vector<16x32xf32>
    %295 = vector.broadcast %274 : vector<1x32xf32> to vector<16x32xf32>
    %296 = arith.addf %294, %295 : vector<16x32xf32>
    %c1_156 = arith.constant 1 : index
    %c0_157 = arith.constant 0 : index
    %c0_158 = arith.constant 0 : index
    %297 = vector.load %arg12[%c1_156, %c0_157, %c0_158] : memref<2x32x32xf32, #tpu.memory_space<vmem>>, vector<1x32x32xf32>
    %298 = vector.shape_cast %297 : vector<1x32x32xf32> to vector<32x32xf32>
    %cst_159 = arith.constant dense<0.000000e+00> : vector<16x32xf32>
    %299 = tpu.matmul %296, %298, %cst_159 {dimension_numbers = #tpu.dot_dimension_numbers<[1], [0], [0], [1], [0, 0, 1, 1], [], []>} : vector<16x32xf32>, vector<32x32xf32>, vector<16x32xf32> -> vector<16x32xf32>
    %c1_160 = arith.constant 1 : index
    %c0_161 = arith.constant 0 : index
    %c0_162 = arith.constant 0 : index
    %300 = vector.load %arg13[%c1_160, %c0_161, %c0_162] : memref<2x1x32xf32, #tpu.memory_space<vmem>>, vector<1x1x32xf32>
    %301 = vector.shape_cast %300 : vector<1x1x32xf32> to vector<1x32xf32>
    %302 = vector.broadcast %301 : vector<1x32xf32> to vector<16x32xf32>
    %303 = arith.addf %299, %302 : vector<16x32xf32>
    %304 = vector.extract_strided_slice %12 {offsets = [0, 64], sizes = [16, 32], strides = [1, 1]} : vector<16x128xf32> to vector<16x32xf32>
    %305 = vector.extract_strided_slice %12 {offsets = [0, 96], sizes = [16, 32], strides = [1, 1]} : vector<16x128xf32> to vector<16x32xf32>
    %c1_163 = arith.constant 1 : index
    %c0_164 = arith.constant 0 : index
    %c0_165 = arith.constant 0 : index
    %306 = vector.load %arg16[%c1_163, %c0_164, %c0_165] : memref<2x32x32xf32, #tpu.memory_space<vmem>>, vector<1x32x32xf32>
    %307 = vector.shape_cast %306 : vector<1x32x32xf32> to vector<32x32xf32>
    %c1_166 = arith.constant 1 : index
    %c0_167 = arith.constant 0 : index
    %c0_168 = arith.constant 0 : index
    %308 = vector.load %arg17[%c1_166, %c0_167, %c0_168] : memref<2x1x32xf32, #tpu.memory_space<vmem>>, vector<1x1x32xf32>
    %309 = vector.shape_cast %308 : vector<1x1x32xf32> to vector<1x32xf32>
    %310 = tpu.concatenate %304, %304, %304, %304 in 0 : vector<16x32xf32>, vector<16x32xf32>, vector<16x32xf32>, vector<16x32xf32> -> vector<64x32xf32>
    %311 = arith.mulf %310, %6 : vector<64x32xf32>
    %312 = tpu.concatenate %305, %305, %305, %305 in 0 : vector<16x32xf32>, vector<16x32xf32>, vector<16x32xf32>, vector<16x32xf32> -> vector<64x32xf32>
    %313 = arith.mulf %312, %6 : vector<64x32xf32>
    %cst_169 = arith.constant dense<0.000000e+00> : vector<16x64xf32>
    %314 = tpu.matmul %303, %311, %cst_169 {dimension_numbers = #tpu.dot_dimension_numbers<[1], [1], [0], [0], [0, 0, 1, 0], [], []>} : vector<16x32xf32>, vector<64x32xf32>, vector<16x64xf32> -> vector<16x64xf32>
    %315 = arith.addf %314, %3 : vector<16x64xf32>
    %cst_170 = arith.constant dense<0xFF800000> : vector<16xf32>
    %316 = vector.multi_reduction <maximumf>, %315, %cst_170 [1] : vector<16x64xf32> to vector<16xf32>
    %317 = vector.shape_cast %316 : vector<16xf32> to vector<16x1xf32>
    %318 = vector.broadcast %317 : vector<16x1xf32> to vector<16x64xf32>
    %319 = arith.subf %315, %318 : vector<16x64xf32>
    %320 = math.exp %319 : vector<16x64xf32>
    %cst_171 = arith.constant dense<0.000000e+00> : vector<16x64xf32>
    %321 = tpu.matmul %320, %7, %cst_171 {dimension_numbers = #tpu.dot_dimension_numbers<[1], [0], [0], [1], [0, 0, 1, 1], [], []>} : vector<16x64xf32>, vector<64x64xf32>, vector<16x64xf32> -> vector<16x64xf32>
    %322 = tpu.reciprocal %321 {approx = true} : vector<16x64xf32> -> vector<16x64xf32>
    %323 = arith.mulf %320, %322 : vector<16x64xf32>
    %cst_172 = arith.constant dense<0.000000e+00> : vector<16x32xf32>
    %324 = tpu.matmul %323, %313, %cst_172 {dimension_numbers = #tpu.dot_dimension_numbers<[1], [0], [0], [1], [0, 0, 1, 1], [], []>} : vector<16x64xf32>, vector<64x32xf32>, vector<16x32xf32> -> vector<16x32xf32>
    %cst_173 = arith.constant dense<0.000000e+00> : vector<16x32xf32>
    %325 = tpu.matmul %324, %307, %cst_173 {dimension_numbers = #tpu.dot_dimension_numbers<[1], [0], [0], [1], [0, 0, 1, 1], [], []>} : vector<16x32xf32>, vector<32x32xf32>, vector<16x32xf32> -> vector<16x32xf32>
    %326 = vector.broadcast %309 : vector<1x32xf32> to vector<16x32xf32>
    %327 = arith.addf %325, %326 : vector<16x32xf32>
    %328 = arith.addf %296, %327 : vector<16x32xf32>
    %c1_174 = arith.constant 1 : index
    %c0_175 = arith.constant 0 : index
    %c0_176 = arith.constant 0 : index
    %329 = vector.load %arg26[%c1_174, %c0_175, %c0_176] : memref<2x1x32xf32, #tpu.memory_space<vmem>>, vector<1x1x32xf32>
    %330 = vector.shape_cast %329 : vector<1x1x32xf32> to vector<1x32xf32>
    %c1_177 = arith.constant 1 : index
    %c0_178 = arith.constant 0 : index
    %c0_179 = arith.constant 0 : index
    %331 = vector.load %arg27[%c1_177, %c0_178, %c0_179] : memref<2x1x32xf32, #tpu.memory_space<vmem>>, vector<1x1x32xf32>
    %332 = vector.shape_cast %331 : vector<1x1x32xf32> to vector<1x32xf32>
    %cst_180 = arith.constant dense<0.000000e+00> : vector<16xf32>
    %333 = vector.multi_reduction <add>, %328, %cst_180 [1] : vector<16x32xf32> to vector<16xf32>
    %334 = vector.shape_cast %333 : vector<16xf32> to vector<16x1xf32>
    %cst_181 = arith.constant 3.200000e+01 : f32
    %335 = vector.broadcast %cst_181 : f32 to vector<16x1xf32>
    %336 = arith.divf %334, %335 : vector<16x1xf32>
    %337 = vector.broadcast %336 : vector<16x1xf32> to vector<16x32xf32>
    %338 = arith.subf %328, %337 : vector<16x32xf32>
    %339 = arith.mulf %338, %338 : vector<16x32xf32>
    %cst_182 = arith.constant dense<0.000000e+00> : vector<16xf32>
    %340 = vector.multi_reduction <add>, %339, %cst_182 [1] : vector<16x32xf32> to vector<16xf32>
    %341 = vector.shape_cast %340 : vector<16xf32> to vector<16x1xf32>
    %cst_183 = arith.constant 3.200000e+01 : f32
    %342 = vector.broadcast %cst_183 : f32 to vector<16x1xf32>
    %343 = arith.divf %341, %342 : vector<16x1xf32>
    %344 = vector.broadcast %336 : vector<16x1xf32> to vector<16x32xf32>
    %345 = arith.subf %328, %344 : vector<16x32xf32>
    %cst_184 = arith.constant 9.99999974E-6 : f32
    %346 = vector.broadcast %cst_184 : f32 to vector<16x1xf32>
    %347 = arith.addf %343, %346 : vector<16x1xf32>
    %348 = math.rsqrt %347 : vector<16x1xf32>
    %349 = vector.broadcast %348 : vector<16x1xf32> to vector<16x32xf32>
    %350 = arith.mulf %345, %349 : vector<16x32xf32>
    %351 = vector.broadcast %330 : vector<1x32xf32> to vector<16x32xf32>
    %352 = arith.mulf %350, %351 : vector<16x32xf32>
    %353 = vector.broadcast %332 : vector<1x32xf32> to vector<16x32xf32>
    %354 = arith.addf %352, %353 : vector<16x32xf32>
    %c1_185 = arith.constant 1 : index
    %c0_186 = arith.constant 0 : index
    %c0_187 = arith.constant 0 : index
    %355 = vector.load %arg18[%c1_185, %c0_186, %c0_187] : memref<2x32x32xf32, #tpu.memory_space<vmem>>, vector<1x32x32xf32>
    %356 = vector.shape_cast %355 : vector<1x32x32xf32> to vector<32x32xf32>
    %cst_188 = arith.constant dense<0.000000e+00> : vector<16x32xf32>
    %357 = tpu.matmul %354, %356, %cst_188 {dimension_numbers = #tpu.dot_dimension_numbers<[1], [0], [0], [1], [0, 0, 1, 1], [], []>} : vector<16x32xf32>, vector<32x32xf32>, vector<16x32xf32> -> vector<16x32xf32>
    %c1_189 = arith.constant 1 : index
    %c0_190 = arith.constant 0 : index
    %c0_191 = arith.constant 0 : index
    %358 = vector.load %arg19[%c1_189, %c0_190, %c0_191] : memref<2x1x32xf32, #tpu.memory_space<vmem>>, vector<1x1x32xf32>
    %359 = vector.shape_cast %358 : vector<1x1x32xf32> to vector<1x32xf32>
    %360 = vector.broadcast %359 : vector<1x32xf32> to vector<16x32xf32>
    %361 = arith.addf %357, %360 : vector<16x32xf32>
    %cst_192 = arith.constant 5.000000e-01 : f32
    %362 = vector.broadcast %cst_192 : f32 to vector<16x32xf32>
    %363 = arith.mulf %362, %361 : vector<16x32xf32>
    %cst_193 = arith.constant 0.707106769 : f32
    %364 = vector.broadcast %cst_193 : f32 to vector<16x32xf32>
    %365 = arith.mulf %361, %364 : vector<16x32xf32>
    %366 = math.absf %365 : vector<16x32xf32>
    %cst_194 = arith.constant 0.327591091 : f32
    %367 = vector.broadcast %cst_194 : f32 to vector<16x32xf32>
    %368 = arith.mulf %367, %366 : vector<16x32xf32>
    %cst_195 = arith.constant 1.000000e+00 : f32
    %369 = vector.broadcast %cst_195 : f32 to vector<16x32xf32>
    %370 = arith.addf %369, %368 : vector<16x32xf32>
    %cst_196 = arith.constant 1.000000e+00 : f32
    %371 = vector.broadcast %cst_196 : f32 to vector<16x32xf32>
    %372 = arith.divf %371, %370 : vector<16x32xf32>
    %cst_197 = arith.constant 1.06140542 : f32
    %373 = vector.broadcast %cst_197 : f32 to vector<16x32xf32>
    %374 = arith.mulf %373, %372 : vector<16x32xf32>
    %cst_198 = arith.constant -1.45315206 : f32
    %375 = vector.broadcast %cst_198 : f32 to vector<16x32xf32>
    %376 = arith.addf %374, %375 : vector<16x32xf32>
    %377 = arith.mulf %376, %372 : vector<16x32xf32>
    %cst_199 = arith.constant 1.42141378 : f32
    %378 = vector.broadcast %cst_199 : f32 to vector<16x32xf32>
    %379 = arith.addf %377, %378 : vector<16x32xf32>
    %380 = arith.mulf %379, %372 : vector<16x32xf32>
    %cst_200 = arith.constant -0.284496725 : f32
    %381 = vector.broadcast %cst_200 : f32 to vector<16x32xf32>
    %382 = arith.addf %380, %381 : vector<16x32xf32>
    %383 = arith.mulf %382, %372 : vector<16x32xf32>
    %cst_201 = arith.constant 0.254829586 : f32
    %384 = vector.broadcast %cst_201 : f32 to vector<16x32xf32>
    %385 = arith.addf %383, %384 : vector<16x32xf32>
    %386 = arith.mulf %385, %372 : vector<16x32xf32>
    %387 = arith.mulf %366, %366 : vector<16x32xf32>
    %cst_202 = arith.constant 0.000000e+00 : f32
    %388 = vector.broadcast %cst_202 : f32 to vector<16x32xf32>
    %389 = arith.subf %388, %387 : vector<16x32xf32>
    %390 = math.exp %389 : vector<16x32xf32>
    %391 = arith.mulf %386, %390 : vector<16x32xf32>
    %cst_203 = arith.constant 1.000000e+00 : f32
    %392 = vector.broadcast %cst_203 : f32 to vector<16x32xf32>
    %393 = arith.subf %392, %391 : vector<16x32xf32>
    %cst_204 = arith.constant 0.000000e+00 : f32
    %394 = vector.broadcast %cst_204 : f32 to vector<16x32xf32>
    %395 = arith.cmpf olt, %365, %394 : vector<16x32xf32>
    %cst_205 = arith.constant 0.000000e+00 : f32
    %396 = vector.broadcast %cst_205 : f32 to vector<16x32xf32>
    %397 = arith.subf %396, %393 : vector<16x32xf32>
    %398 = arith.select %395, %397, %393 : vector<16x32xi1>, vector<16x32xf32>
    %cst_206 = arith.constant 1.000000e+00 : f32
    %399 = vector.broadcast %cst_206 : f32 to vector<16x32xf32>
    %400 = arith.addf %399, %398 : vector<16x32xf32>
    %401 = arith.mulf %363, %400 : vector<16x32xf32>
    %c1_207 = arith.constant 1 : index
    %c0_208 = arith.constant 0 : index
    %c0_209 = arith.constant 0 : index
    %402 = vector.load %arg20[%c1_207, %c0_208, %c0_209] : memref<2x32x32xf32, #tpu.memory_space<vmem>>, vector<1x32x32xf32>
    %403 = vector.shape_cast %402 : vector<1x32x32xf32> to vector<32x32xf32>
    %cst_210 = arith.constant dense<0.000000e+00> : vector<16x32xf32>
    %404 = tpu.matmul %401, %403, %cst_210 {dimension_numbers = #tpu.dot_dimension_numbers<[1], [0], [0], [1], [0, 0, 1, 1], [], []>} : vector<16x32xf32>, vector<32x32xf32>, vector<16x32xf32> -> vector<16x32xf32>
    %c1_211 = arith.constant 1 : index
    %c0_212 = arith.constant 0 : index
    %c0_213 = arith.constant 0 : index
    %405 = vector.load %arg21[%c1_211, %c0_212, %c0_213] : memref<2x1x32xf32, #tpu.memory_space<vmem>>, vector<1x1x32xf32>
    %406 = vector.shape_cast %405 : vector<1x1x32xf32> to vector<1x32xf32>
    %407 = vector.broadcast %406 : vector<1x32xf32> to vector<16x32xf32>
    %408 = arith.addf %404, %407 : vector<16x32xf32>
    %c1_214 = arith.constant 1 : index
    %c0_215 = arith.constant 0 : index
    %c0_216 = arith.constant 0 : index
    %409 = vector.load %arg22[%c1_214, %c0_215, %c0_216] : memref<2x1x32xf32, #tpu.memory_space<vmem>>, vector<1x1x32xf32>
    %410 = vector.shape_cast %409 : vector<1x1x32xf32> to vector<1x32xf32>
    %c1_217 = arith.constant 1 : index
    %c0_218 = arith.constant 0 : index
    %c0_219 = arith.constant 0 : index
    %411 = vector.load %arg23[%c1_217, %c0_218, %c0_219] : memref<2x1x32xf32, #tpu.memory_space<vmem>>, vector<1x1x32xf32>
    %412 = vector.shape_cast %411 : vector<1x1x32xf32> to vector<1x32xf32>
    %cst_220 = arith.constant dense<0.000000e+00> : vector<16xf32>
    %413 = vector.multi_reduction <add>, %408, %cst_220 [1] : vector<16x32xf32> to vector<16xf32>
    %414 = vector.shape_cast %413 : vector<16xf32> to vector<16x1xf32>
    %cst_221 = arith.constant 3.200000e+01 : f32
    %415 = vector.broadcast %cst_221 : f32 to vector<16x1xf32>
    %416 = arith.divf %414, %415 : vector<16x1xf32>
    %417 = vector.broadcast %416 : vector<16x1xf32> to vector<16x32xf32>
    %418 = arith.subf %408, %417 : vector<16x32xf32>
    %419 = arith.mulf %418, %418 : vector<16x32xf32>
    %cst_222 = arith.constant dense<0.000000e+00> : vector<16xf32>
    %420 = vector.multi_reduction <add>, %419, %cst_222 [1] : vector<16x32xf32> to vector<16xf32>
    %421 = vector.shape_cast %420 : vector<16xf32> to vector<16x1xf32>
    %cst_223 = arith.constant 3.200000e+01 : f32
    %422 = vector.broadcast %cst_223 : f32 to vector<16x1xf32>
    %423 = arith.divf %421, %422 : vector<16x1xf32>
    %424 = vector.broadcast %416 : vector<16x1xf32> to vector<16x32xf32>
    %425 = arith.subf %408, %424 : vector<16x32xf32>
    %cst_224 = arith.constant 9.99999974E-6 : f32
    %426 = vector.broadcast %cst_224 : f32 to vector<16x1xf32>
    %427 = arith.addf %423, %426 : vector<16x1xf32>
    %428 = math.rsqrt %427 : vector<16x1xf32>
    %429 = vector.broadcast %428 : vector<16x1xf32> to vector<16x32xf32>
    %430 = arith.mulf %425, %429 : vector<16x32xf32>
    %431 = vector.broadcast %410 : vector<1x32xf32> to vector<16x32xf32>
    %432 = arith.mulf %430, %431 : vector<16x32xf32>
    %433 = vector.broadcast %412 : vector<1x32xf32> to vector<16x32xf32>
    %434 = arith.addf %432, %433 : vector<16x32xf32>
    %435 = arith.addf %354, %434 : vector<16x32xf32>
    %436 = arith.addf %354, %435 : vector<16x32xf32>
    %c1_225 = arith.constant 1 : index
    %c0_226 = arith.constant 0 : index
    %c0_227 = arith.constant 0 : index
    %437 = vector.load %arg28[%c1_225, %c0_226, %c0_227] : memref<2x1x32xf32, #tpu.memory_space<vmem>>, vector<1x1x32xf32>
    %438 = vector.shape_cast %437 : vector<1x1x32xf32> to vector<1x32xf32>
    %c1_228 = arith.constant 1 : index
    %c0_229 = arith.constant 0 : index
    %c0_230 = arith.constant 0 : index
    %439 = vector.load %arg29[%c1_228, %c0_229, %c0_230] : memref<2x1x32xf32, #tpu.memory_space<vmem>>, vector<1x1x32xf32>
    %440 = vector.shape_cast %439 : vector<1x1x32xf32> to vector<1x32xf32>
    %cst_231 = arith.constant dense<0.000000e+00> : vector<16xf32>
    %441 = vector.multi_reduction <add>, %436, %cst_231 [1] : vector<16x32xf32> to vector<16xf32>
    %442 = vector.shape_cast %441 : vector<16xf32> to vector<16x1xf32>
    %cst_232 = arith.constant 3.200000e+01 : f32
    %443 = vector.broadcast %cst_232 : f32 to vector<16x1xf32>
    %444 = arith.divf %442, %443 : vector<16x1xf32>
    %445 = vector.broadcast %444 : vector<16x1xf32> to vector<16x32xf32>
    %446 = arith.subf %436, %445 : vector<16x32xf32>
    %447 = arith.mulf %446, %446 : vector<16x32xf32>
    %cst_233 = arith.constant dense<0.000000e+00> : vector<16xf32>
    %448 = vector.multi_reduction <add>, %447, %cst_233 [1] : vector<16x32xf32> to vector<16xf32>
    %449 = vector.shape_cast %448 : vector<16xf32> to vector<16x1xf32>
    %cst_234 = arith.constant 3.200000e+01 : f32
    %450 = vector.broadcast %cst_234 : f32 to vector<16x1xf32>
    %451 = arith.divf %449, %450 : vector<16x1xf32>
    %452 = vector.broadcast %444 : vector<16x1xf32> to vector<16x32xf32>
    %453 = arith.subf %436, %452 : vector<16x32xf32>
    %cst_235 = arith.constant 9.99999974E-6 : f32
    %454 = vector.broadcast %cst_235 : f32 to vector<16x1xf32>
    %455 = arith.addf %451, %454 : vector<16x1xf32>
    %456 = math.rsqrt %455 : vector<16x1xf32>
    %457 = vector.broadcast %456 : vector<16x1xf32> to vector<16x32xf32>
    %458 = arith.mulf %453, %457 : vector<16x32xf32>
    %459 = vector.broadcast %438 : vector<1x32xf32> to vector<16x32xf32>
    %460 = arith.mulf %458, %459 : vector<16x32xf32>
    %461 = vector.broadcast %440 : vector<1x32xf32> to vector<16x32xf32>
    %462 = arith.addf %460, %461 : vector<16x32xf32>
    %c0_236 = arith.constant 0 : index
    %c0_237 = arith.constant 0 : index
    %463 = vector.load %arg30[%c0_236, %c0_237] : memref<16x32xf32, #tpu.memory_space<vmem>>, vector<16x32xf32>
    tpu.vector_store %arg30[%c0_236, %c0_237], %462 {strides = array<i32>} : memref<16x32xf32, #tpu.memory_space<vmem>>, vector<16x32xf32>,
    return
  }
}

</mosaic_0001>

<bundles_post_ra>
// kernel: eq.57
= control target key start
LH: loop header
LB: loop body
LE: loop exit
PB: predicated region body
PF: predicated region fallthrough
CT: control target
= control target key end

     0   :  { %vm8_vm0 = vcmask 130048   ;;  %s40_s8 = smov 16   ;;  %s41_s9 = smov 32   ;;  %vm14_vm1 = vcmask 523648   ;;  %vm20_vm2 = vcmask 392448   ;;  %vm26_vm3 = vcmask 261248   ;;  %s58_s0 = inlined_call_operand.vmem [shape: s32[4,16], index: 0, kind: input, shape index: {}]   ;;  %s59_s1 = inlined_call_operand.vmem [shape: s32[64], index: 1, kind: output, shape index: {}]  }
   0x1   :  { %v5_v0 = vld [vmem:[%s58_s0] sm:$0xf]  ;;  %s39_s0 = smov 48  }
   0x2   :  { %6 = vst [vmem:[#allocation1] sm:$0xf] %v5_v0 }
   0x9   :  { %v11_v1 = vld [vmem:[#allocation1 + $0x3] sm:$0x1]   ;;  %v23_v2 = vld [vmem:[#allocation1 + $0x1] sm:$0x1]   ;;  %v7_v3 = vld [vmem:[#allocation1] sm:$0x1]  }
   0xa   :  { %12 = vrot.lane.b32.xlu0 %v11_v1, %s39_s0  ;;  %24 = vrot.lane.b32.xlu1 %v23_v2, %s40_s8  ;;  %v17_v4 = vld [vmem:[#allocation1 + $0x2] sm:$0x1]   ;;  %9 = vst.msk [vmem:[#allocation0] sm:$0x1] %vm8_vm0, %v7_v3  }
   0xe   :  { %18 = vrot.lane.b32.xlu0 %v17_v4, %s41_s9 }
  0x7c   :  { %v13_v5 = vpop.permute.xlu0 %12   ;;  %v25_v6 = vpop.permute.xlu1 %24  }
  0x7d   :  { %15 = vst.msk [vmem:[#allocation0] sm:$0x1] %vm14_vm1, %v13_v5  }
  0x80   :  { %v19_v7 = vpop.permute.xlu0 %18  }
  0x81   :  { %21 = vst.msk [vmem:[#allocation0] sm:$0x1] %vm20_vm2, %v19_v7  }
  0x82   :  { %27 = vst.msk [vmem:[#allocation0] sm:$0x1] %vm26_vm3, %v25_v6  }
  0x89   :  { %v32_v8 = vld [vmem:[#allocation0] sm:$0x1] }
  0x8a   :  { %35 = vst [vmem:[%s59_s1] sm:$0x1] %v32_v8 }

// kernel: tile.11
= control target key start
LH: loop header
LB: loop body
LE: loop exit
PB: predicated region body
PF: predicated region fallthrough
CT: control target
= control target key end

     0   :  { %vm83_vm0 = vcmask 1047556   ;;  %vm85_vm1 = vcmask 130048   ;;  %s196_s9 = smov 48   ;;  %s197_s14 = smov 16   ;;  %vm104_vm2 = vcmask 523648   ;;  %vm125_vm3 = vcmask 392448   ;;  %s290_s0 = inlined_call_operand.vmem [shape: f32[16,4,16], index: 0, kind: input, shape index: {}]   ;;  %s291_s1 = inlined_call_operand.vmem [shape: f32[16,64], index: 1, kind: output, shape index: {}]  }
   0x1   :  { %v181_v0 = vld [vmem:[%s290_s0 + $0x1c] sm:$0xf]  ;;  %v182_v1 = vld [vmem:[%s290_s0 + $0x18] sm:$0xf]  ;;  %v183_v2 = vld [vmem:[%s290_s0 + $0x14] sm:$0xf] }
   0x2   :  { %49 = vst [vmem:[#allocation0 + $0x38] sm:$0xf] %v181_v0  ;;  %54 = vst [vmem:[#allocation0 + $0x30] sm:$0xf] %v182_v1  ;;  %v184_v3 = vld [vmem:[%s290_s0 + $0x10] sm:$0xf] }
   0x3   :  { %59 = vst [vmem:[#allocation0 + $0x28] sm:$0xf] %v183_v2  ;;  %v185_v4 = vld [vmem:[%s290_s0 + $0xc] sm:$0xf]  ;;  %v186_v5 = vld [vmem:[%s290_s0 + $0x8] sm:$0xf] }
   0x4   :  { %64 = vst [vmem:[#allocation0 + $0x20] sm:$0xf] %v184_v3  ;;  %69 = vst [vmem:[#allocation0 + $0x18] sm:$0xf] %v185_v4  ;;  %v187_v6 = vld [vmem:[%s290_s0 + $0x4] sm:$0xf] }
   0x5   :  { %74 = vst [vmem:[#allocation0 + $0x10] sm:$0xf] %v186_v5  ;;  %v79_v7 = vld [vmem:[%s290_s0] sm:$0xf]  ;;  %78 = vst [vmem:[#allocation0 + $0x8] sm:$0xf] %v187_v6 }
   0x6   :  { %80 = vst [vmem:[#allocation0] sm:$0xf] %v79_v7  ;;  %v173_v8 = vld [vmem:[%s290_s0 + $0x3c] sm:$0xf]  ;;  %v174_v9 = vld [vmem:[%s290_s0 + $0x38] sm:$0xf] }
   0x7   :  { %9 = vst [vmem:[#allocation0 + $0x78] sm:$0xf] %v173_v8  ;;  %14 = vst [vmem:[#allocation0 + $0x70] sm:$0xf] %v174_v9  ;;  %v175_v10 = vld [vmem:[%s290_s0 + $0x34] sm:$0xf] }
   0x8   :  { %v176_v11 = vld [vmem:[%s290_s0 + $0x30] sm:$0xf]  ;;  %v177_v12 = vld [vmem:[%s290_s0 + $0x2c] sm:$0xf]  ;;  %19 = vst [vmem:[#allocation0 + $0x68] sm:$0xf] %v175_v10 }
   0x9   :  { %24 = vst [vmem:[#allocation0 + $0x60] sm:$0xf] %v176_v11  ;;  %29 = vst [vmem:[#allocation0 + $0x58] sm:$0xf] %v177_v12  ;;  %v178_v13 = vld [vmem:[%s290_s0 + $0x28] sm:$0xf] }
   0xa   :  { %v179_v14 = vld [vmem:[%s290_s0 + $0x24] sm:$0xf]  ;;  %v180_v15 = vld [vmem:[%s290_s0 + $0x20] sm:$0xf]  ;;  %34 = vst [vmem:[#allocation0 + $0x50] sm:$0xf] %v178_v13 }
   0xb   :  { %39 = vst [vmem:[#allocation0 + $0x48] sm:$0xf] %v179_v14  ;;  %44 = vst [vmem:[#allocation0 + $0x40] sm:$0xf] %v180_v15  ;;  %s195_s0 = smov 32   ;;  %vm146_vm4 = vcmask 261248  }
   0xc   :  { %v120_v16 = vld [vmem:[#allocation0 + $0x2] ss:$8 sm:$0xf0]   ;;  %v99_v17 = vld [vmem:[#allocation0 + $0x3] ss:$8 sm:$0xf0]  }
   0xd   :  { %v118_v18 = vld [vmem:[#allocation0 + $0x2] ss:$8 sm:$0xf]   ;;  %v97_v19 = vld [vmem:[#allocation0 + $0x3] ss:$8 sm:$0xf]  }
   0xe   :  { %v122_v20 = vsel %vm83_vm0, %v120_v16, %v118_v18  ;;  %v101_v21 = vsel %vm83_vm0, %v99_v17, %v97_v19  ;;  %v139_v24 = vld [vmem:[#allocation0 + $0x1] ss:$8 sm:$0xf]   ;;  %v81_v32 = vld [vmem:[#allocation0] ss:$8 sm:$0xf]  }
   0xf   :  { %123 = vrot.lane.b32.xlu1 %v122_v20, %s195_s0  ;;  %102 = vrot.lane.b32.xlu0 %v101_v21, %s196_s9  ;;  %v141_v25 = vld [vmem:[#allocation0 + $0x1] ss:$8 sm:$0xf0]   ;;  %v82_v33 = vld [vmem:[#allocation0] ss:$8 sm:$0xf0]  }
  0x10   :  { %v130_v22 = vld [vmem:[#allocation0 + $0x42] ss:$8 sm:$0xf0]   ;;  %v109_v23 = vld [vmem:[#allocation0 + $0x43] ss:$8 sm:$0xf0]   ;;  %v84_v34 = vsel %vm83_vm0, %v82_v33, %v81_v32  ;;  %v143_v38 = vsel %vm83_vm0, %v141_v25, %v139_v24 }
  0x11   :  { %v151_v31 = vld [vmem:[#allocation0 + $0x41] ss:$8 sm:$0xf0]   ;;  %v90_v36 = vld [vmem:[#allocation0 + $0x40] ss:$8 sm:$0xf0]  }
  0x12   :  { %v128_v26 = vld [vmem:[#allocation0 + $0x42] ss:$8 sm:$0xf]   ;;  %v107_v27 = vld [vmem:[#allocation0 + $0x43] ss:$8 sm:$0xf]  }
  0x13   :  { %v132_v28 = vsel %vm83_vm0, %v130_v22, %v128_v26  ;;  %v111_v29 = vsel %vm83_vm0, %v109_v23, %v107_v27  ;;  %v149_v30 = vld [vmem:[#allocation0 + $0x41] ss:$8 sm:$0xf]   ;;  %v88_v35 = vld [vmem:[#allocation0 + $0x40] ss:$8 sm:$0xf]  }
  0x14   :  { %133 = vrot.lane.b32.xlu1 %v132_v28, %s195_s0  ;;  %112 = vrot.lane.b32.xlu0 %v111_v29, %s196_s9  ;;  %v153_v37 = vsel %vm83_vm0, %v151_v31, %v149_v30  ;;  %86 = vst.msk [vmem:[%s291_s1] sm:$0xff] %vm85_vm1, %v84_v34   ;;  %v92_v39 = vsel %vm83_vm0, %v90_v36, %v88_v35 }
  0x15   :  { %188 = vst.msk [vmem:[%s291_s1 + $0x8] sm:$0xff] %vm85_vm1, %v92_v39  }
  0x18   :  { %154 = vrot.lane.b32.xlu1 %v153_v37, %s197_s14  ;;  %144 = vrot.lane.b32.xlu0 %v143_v38, %s197_s14 }
  0x81   :  { %v124_v40 = vpop.permute.xlu1 %123   ;;  %v103_v41 = vpop.permute.xlu0 %102  }
  0x82   :  { %105 = vst.msk [vmem:[%s291_s1] sm:$0xff] %vm104_vm2, %v103_v41  }
  0x83   :  { %126 = vst.msk [vmem:[%s291_s1] sm:$0xff] %vm125_vm3, %v124_v40  }
  0x86   :  { %v134_v42 = vpop.permute.xlu1 %133   ;;  %v113_v43 = vpop.permute.xlu0 %112  }
  0x87   :  { %189 = vst.msk [vmem:[%s291_s1 + $0x8] sm:$0xff] %vm104_vm2, %v113_v43  }
  0x88   :  { %190 = vst.msk [vmem:[%s291_s1 + $0x8] sm:$0xff] %vm125_vm3, %v134_v42  }
  0x8a   :  { %v155_v44 = vpop.permute.xlu1 %154   ;;  %v145_v45 = vpop.permute.xlu0 %144  }
  0x8b   :  { %191 = vst.msk [vmem:[%s291_s1 + $0x8] sm:$0xff] %vm146_vm4, %v155_v44   ;;  %147 = vst.msk [vmem:[%s291_s1] sm:$0xff] %vm146_vm4, %v145_v45  }

// kernel: transformer_decoder.1
= control target key start
LH: loop header
LB: loop body
LE: loop exit
PB: predicated region body
PF: predicated region fallthrough
CT: control target
= control target key end

     0   :  { %s4302_s6 = smov 1   ;;  %s4303_s10 = smov 2   ;;  %s5197_s0 = inlined_call_operand.smem [shape: u32[31], index: -1, kind: input, shape index: {}] }
   0x1   :  { %s4346_s5 = sld [smem:[%s5197_s0]]   ;;  %s4304_s14 = smov 3  }
   0x2   :  { %s4351_s9 = sld [smem:[%s5197_s0 + %s4302_s6]]   ;;  %s4305_s18 = smov 4  }
   0x3   :  { %s4356_s13 = sld [smem:[%s5197_s0 + %s4303_s10]]   ;;  %s4306_s22 = smov 5  }
   0x4   :  { %s4361_s17 = sld [smem:[%s5197_s0 + %s4304_s14]]   ;;  %s4307_s26 = smov 6  }
   0x5   :  { %s4366_s21 = sld [smem:[%s5197_s0 + %s4305_s18]]   ;;  %s4308_s30 = smov 7  }
   0x6   :  { %s4371_s25 = sld [smem:[%s5197_s0 + %s4306_s22]]   ;;  %s4309_s4 = smov 8  }
   0x7   :  { %s4376_s29 = sld [smem:[%s5197_s0 + %s4307_s26]]   ;;  %s4310_s10 = smov 9  }
   0x8   :  { %s4381_s3 = sld [smem:[%s5197_s0 + %s4308_s30]]   ;;  %s4311_s15 = smov 10  }
   0x9   :  { %s4386_s8 = sld [smem:[%s5197_s0 + %s4309_s4]]   ;;  %s4312_s20 = smov 11  }
   0xa   :  { %5211 = sst [smem:[#allocation5_spill]] %s4361_s17  ;;  %s4313_s26 = smov 12  }
   0xb   :  { %s4391_s14 = sld [smem:[%s5197_s0 + %s4310_s10]]   ;;  %s4314_s1 = smov 13  }
   0xc   :  { %s4396_s19 = sld [smem:[%s5197_s0 + %s4311_s15]]   ;;  %s4315_s7 = smov 14  }
   0xd   :  { %s4401_s24 = sld [smem:[%s5197_s0 + %s4312_s20]]   ;;  %s4316_s15 = smov 15  }
   0xe   :  { %5212 = sst [smem:[#allocation6_spill]] %s4381_s3  ;;  %s4317_s22 = smov 16  }
   0xf   :  { %s4406_s30 = sld [smem:[%s5197_s0 + %s4313_s26]]   ;;  %s4318_s28 = smov 17  }
  0x10   :  { %s4411_s6 = sld [smem:[%s5197_s0 + %s4314_s1]]  }
  0x11   :  { %s4416_s12 = sld [smem:[%s5197_s0 + %s4315_s7]]   ;;  %s4319_s7 = smov 18  }
  0x12   :  { %s4421_s20 = sld [smem:[%s5197_s0 + %s4316_s15]]   ;;  %s4320_s15 = smov 19  }
  0x13   :  { %s4426_s27 = sld [smem:[%s5197_s0 + %s4317_s22]]   ;;  %s4321_s22 = smov 20  }
  0x14   :  { %s4431_s4 = sld [smem:[%s5197_s0 + %s4318_s28]]   ;;  %s4322_s28 = smov 21  }
  0x15   :  { %s4436_s3 = sld [smem:[%s5197_s0 + %s4319_s7]]   ;;  %s4323_s7 = smov 22  }
  0x16   :  { %5213 = sst [smem:[#allocation7_spill]] %s4411_s6 }
  0x17   :  { %s4441_s17 = sld [smem:[%s5197_s0 + %s4320_s15]]   ;;  %s4324_s15 = smov 23  }
  0x19   :  { %5214 = sst [smem:[#allocation8_spill]] %s4426_s27 }
  0x1a   :  { %5215 = sst [smem:[#allocation9_spill]] %s4431_s4 }
  0x1b   :  { %5216 = sst [smem:[#allocation10_spill]] %s4436_s3 }
  0x1c   :  { %s4446_s27 = sld [smem:[%s5197_s0 + %s4321_s22]]   ;;  %s4325_s22 = smov 24  }
  0x1d   :  { %5217 = sst [smem:[#allocation11_spill]] %s4441_s17 }
  0x1e   :  { %s4451_s4 = sld [smem:[%s5197_s0 + %s4322_s28]]   ;;  %s4326_s28 = smov 25  }
  0x1f   :  { %s4456_s3 = sld [smem:[%s5197_s0 + %s4323_s7]]   ;;  %s4327_s7 = smov 26  }
  0x20   :  { %s4461_s17 = sld [smem:[%s5197_s0 + %s4324_s15]]   ;;  %s4328_s15 = smov 27  }
  0x22   :  { %5218 = sst [smem:[#allocation12_spill]] %s4446_s27 }
  0x23   :  { %s4466_s27 = sld [smem:[%s5197_s0 + %s4325_s22]]   ;;  %s4329_s22 = smov 28  }
  0x24   :  { %5219 = sst [smem:[#allocation13_spill]] %s4451_s4 }
  0x25   :  { %5220 = sst [smem:[#allocation14_spill]] %s4456_s3 }
  0x26   :  { %5221 = sst [smem:[#allocation15_spill]] %s4461_s17 }
  0x27   :  { %s4471_s4 = sld [smem:[%s5197_s0 + %s4326_s28]]   ;;  %s4330_s28 = smov 29  }
  0x28   :  { %s4476_s3 = sld [smem:[%s5197_s0 + %s4327_s7]]   ;;  %s4331_s7 = smov 30  }
  0x29   :  { %s4481_s17 = sld [smem:[%s5197_s0 + %s4328_s15]]  }
  0x2a   :  { %s4486_s6 = sld [smem:[%s5197_s0 + %s4329_s22]]  }
  0x2d   :  { %5222 = sst [smem:[#allocation16_spill]] %s4471_s4 }
  0x2e   :  { %5223 = sst [smem:[#allocation17_spill]] %s4476_s3 }
  0x2f   :  { %s4491_s4 = sld [smem:[%s5197_s0 + %s4330_s28]]  }
  0x30   :  { %s4496_s3 = sld [smem:[%s5197_s0 + %s4331_s7]]  }
  0x31   :  { %v263_v0 = vld [vmem:[%s4386_s8 + $0x18] sm:$0xff]  ;;  %v262_v1 = vld [vmem:[%s4386_s8 + $0x10] sm:$0xff]  ;;  %vm178_vm0 = vcmask 261120   ;;  %v4501_v2 = vld [vmem:[%s4346_s5] sm:$0xff]  ;;  %s4332_s0 = smov 32  }
  0x32   :  { %3776 = vmatprep.subr.mxu1 %v263_v0  ;;  %v261_v3 = vld [vmem:[%s4386_s8 + $0x8] sm:$0xff]  ;;  %3784 = vmatprep.mubr.msk.f32.mxu1 %vm178_vm0, %v4501_v2  ;;  %v4507_v4 = vld [vmem:[%s4366_s21 + $0x38] sm:$0xff]  ;;  %v260_v6 = vld [vmem:[%s4386_s8] sm:$0xff] }
  0x33   :  { %3777 = vmatpush3.msra.mxu1 %v263_v0  ;;  %v4510_v5 = vld [vmem:[%s4366_s21 + $0x28] sm:$0xff]  ;;  %379 = vrot.lane.b32.xlu0 %v4507_v4, %s4332_s0  ;;  %v4518_v7 = vld [vmem:[%s4366_s21 + $0x30] sm:$0xff]  ;;  %v170_v8 = vld [vmem:[%s4416_s12 + $0x18] sm:$0xff] }
  0x34   :  { %3778 = vmatprep.subr.mxu1 %v262_v1  ;;  %375 = vrot.lane.b32.xlu1 %v4510_v5, %s4332_s0  ;;  %v4522_v9 = vld [vmem:[%s4366_s21 + $0x20] sm:$0xff] }
  0x35   :  { %3779 = vmatpush3.msra.mxu1 %v262_v1  ;;  %3765 = vmatprep.subr.mxu0 %v170_v8 }
  0x36   :  { %3780 = vmatprep.subr.mxu1 %v261_v3 }
  0x37   :  { %66 = vsyncpa [#allocation3], 0  ;;  %3781 = vmatpush3.msra.mxu1 %v261_v3  ;;  %v4525_v10 = vld [vmem:[%s4346_s5 + $0x8] sm:$0xff]  ;;  %3766 = vmatpush3.msra.mxu0 %v170_v8  ;;  %v169_v11 = vld [vmem:[%s4416_s12 + $0x10] sm:$0xff]  ;;  %s4333_s5 = smov 96   ;;  %vm550_vm1 = vcmask 523264  }
  0x38   :  { %3782 = vmatprep.subr.mxu1 %v260_v6  ;;  %377 = vrot.lane.b32.xlu0 %v4518_v7, %s4332_s0  ;;  %v4533_v12 = vld [vmem:[%s4366_s21 + $0x18] sm:$0xff]  ;;  %v168_v13 = vld [vmem:[%s4416_s12 + $0x8] sm:$0xff]  ;;  %v4539_v14 = vld [vmem:[%s4366_s21 + $0x10] sm:$0xff]  ;;  %s5227_s15 = sld [smem:[#allocation6_spill]] }
  0x39   :  { %3783 = vmatpush3.msra.mxu1 %v260_v6  ;;  %373 = vrot.lane.b32.xlu1 %v4522_v9, %s4332_s0  ;;  %v4546_v15 = vld [vmem:[%s4366_s21 + $0x8] sm:$0xff]  ;;  %v4549_v16 = vld [vmem:[%s4366_s21] sm:$0xff]  ;;  %v355_v49 = vld [vmem:[%s4396_s19 + $0x18] sm:$0xff]  ;;  %s5224_s21 = sld [smem:[#allocation16_spill]] }
  0x3a   :  { %3785 = vmatmul.mubr.msk.f32.vlgmr.msra.gmra.mxu1 %vm178_vm0, %v4525_v10  ;;  %3767 = vmatprep.subr.mxu0 %v169_v11  ;;  %v167_v17 = vld [vmem:[%s4416_s12] sm:$0xff]  ;;  %v130_v19 = vld [vmem:[%s4351_s9 + $0x8] sm:$0xff]  ;;  %v354_v52 = vld [vmem:[%s4396_s19 + $0x10] sm:$0xff]  ;;  %s5225_s12 = sld [smem:[#allocation7_spill]] }
  0x3b   :  { %3768 = vmatpush3.msra.mxu0 %v169_v11  ;;  %v129_v18 = vld [vmem:[%s4351_s9] sm:$0xff]  ;;  %v353_v54 = vld [vmem:[%s4396_s19 + $0x8] sm:$0xff]  ;;  %v4635_v55 = vld [vmem:[%s4376_s29 + $0x38] sm:$0xff]  ;;  %s4334_s9 = smov 64   ;;  %s5228_s16 = sld [smem:[#allocation8_spill]] }
  0x3c   :  { %371 = vrot.lane.b32.xlu0 %v4533_v12, %s4332_s0  ;;  %3769 = vmatprep.subr.mxu0 %v168_v13  ;;  %v3421_v22 = vld [vmem:[%s4391_s14] ss:$0 sm:$0xff]  ;;  %v132_v59 = vld [vmem:[%s4356_s13 + $0x8] sm:$0xff]  ;;  %v150_v6 = vld [vmem:[%s4371_s25 + $0x38] sm:$0xff]  ;;  %s5229_s18 = sld [smem:[#allocation9_spill]] }
  0x3d   :  { %369 = vrot.lane.b32.xlu1 %v4539_v14, %s4332_s0  ;;  %3770 = vmatpush3.msra.mxu0 %v168_v13  ;;  %v4625_v50 = vld [vmem:[%s4421_s20] ss:$0 sm:$0xff]  ;;  %v149_v8 = vld [vmem:[%s4371_s25 + $0x30] sm:$0xff]  ;;  %v148_v11 = vld [vmem:[%s4371_s25 + $0x28] sm:$0xff]  ;;  %s5226_s20 = sld [smem:[#allocation5_spill]] }
  0x3e   :  { %3771 = vmatprep.subr.mxu0 %v167_v17  ;;  %3773 = vmatprep.mubr.msk.f32.mxu0 %vm178_vm0, %v129_v18  ;;  %v352_v56 = vld [vmem:[%s4396_s19] sm:$0xff]  ;;  %v144_v18 = vld [vmem:[%s4371_s25 + $0x8] sm:$0xff]  ;;  %s5230_s22 = sld [smem:[#allocation10_spill]] }
  0x3f   :  { %3772 = vmatpush3.msra.mxu0 %v167_v17  ;;  %v131_v61 = vld [vmem:[%s4356_s13] sm:$0xff]  ;;  %3806 = vmatprep.subr.mxu1 %v150_v6  ;;  %v146_v17 = vld [vmem:[%s4371_s25 + $0x18] sm:$0xff]  ;;  %s5231_s23 = sld [smem:[#allocation17_spill]] }
  0x40   :  { %367 = vrot.lane.b32.xlu0 %v4546_v15, %s4332_s0  ;;  %3774 = vmatmul.mubr.msk.f32.vlgmr.msra.gmra.mxu0 %vm178_vm0, %v130_v19  ;;  %v147_v13 = vld [vmem:[%s4371_s25 + $0x20] sm:$0xff]  ;;  %s5232_s26 = sld [smem:[#allocation12_spill]] }
  0x41   :  { %365 = vrot.lane.b32.xlu1 %v4549_v16, %s4332_s0  ;;  %3807 = vmatpush3.msra.mxu1 %v150_v6  ;;  %s5233_s28 = sld [smem:[#allocation11_spill]] }
  0x42   :  { %3808 = vmatprep.subr.mxu1 %v149_v8  ;;  %s5234_s1 = sld [smem:[#allocation13_spill]] }
  0x43   :  { %3809 = vmatpush3.msra.mxu1 %v149_v8  ;;  %s5235_s2 = sld [smem:[#allocation14_spill]] }
  0x44   :  { %3810 = vmatprep.subr.mxu1 %v148_v11  ;;  %s5236_s7 = sld [smem:[#allocation15_spill]] }
  0x45   :  { %3811 = vmatpush3.msra.mxu1 %v148_v11  ;;  %v4732_v11 = vld [vmem:[%s4376_s29 + $0x28] sm:$0xff] }
  0x46   :  { %3812 = vmatprep.subr.mxu1 %v147_v13 }
  0x47   :  { %3813 = vmatpush3.msra.mxu1 %v147_v13 }
  0x48   :  { %3814 = vmatprep.subr.mxu1 %v146_v17 }
  0x49   :  { %3815 = vmatpush3.msra.mxu1 %v146_v17 }
  0xa5   :  { %v4560_v20 = vpop.permute.xlu0 %379 }
  0xa6   :  { %v4562_v21 = vpop.permute.xlu1 %375 }
  0xaa   :  { %v4565_v23 = vpop.permute.xlu0 %377 }
  0xab   :  { %v4569_v26 = vpop.permute.xlu1 %373 }
  0xae   :  { %v4580_v31 = vpop.permute.xlu0 %371 }
  0xaf   :  { %v4585_v33 = vpop.permute.xlu1 %369 }
  0xb2   :  { %v4593_v36 = vpop.permute.xlu0 %367 }
  0xb3   :  { %v4598_v38 = vpop.permute.xlu1 %365 }
  0xfa   :  { %v3786_v24 = vpop.f32.mrf.mxu1 }
  0xfb   :  { %v4567_v25 = vadd.f32 %v3786_v24, %v3421_v22 }
  0xfc   :  { %v343_v27 = vpop.f32.mrf.mxu1 }
  0xfd   :  { %v4571_v28 = vadd.f32 %v3421_v22, %v343_v27  ;;  %v396_v29 = vmul.f32 %v4560_v20, %v4567_v25  ;;  %v394_v32 = vmul.f32 %v4562_v21, %v4567_v25  ;;  %v392_v35 = vmul.f32 %v4580_v31, %v4567_v25 }
  0xfe   :  { %v390_v39 = vmul.f32 %v4593_v36, %v4567_v25 }
  0xff   :  { %451 = vrot.lane.b32.xlu0 %v396_v29, %s4333_s5  ;;  %3803 = vmatprep.mubr.msk.f32.mxu0 %vm178_vm0, %v4571_v28  ;;  %v395_v30 = vmul.f32 %v4565_v23, %v4571_v28  ;;  %v393_v34 = vmul.f32 %v4569_v26, %v4571_v28  ;;  %v391_v37 = vmul.f32 %v4585_v33, %v4571_v28 }
 0x100   :  { %v389_v40 = vmul.f32 %v4598_v38, %v4571_v28  ;;  %v3775_v51 = vpop.f32.mrf.mxu0 }
 0x101   :  { %449 = vrot.lane.b32.xlu1 %v395_v30, %s4333_s5  ;;  %v4631_v53 = vadd.f32 %v3775_v51, %v4625_v50 }
 0x102   :  { %v4644_v58 = vpop.f32.mrf.mxu0 }
 0x103   :  { %447 = vrot.lane.b32.xlu0 %v394_v32, %s4333_s5  ;;  %v4640_v57 = vmul.f32 %v4631_v53, %v4635_v55 }
 0x105   :  { %445 = vrot.lane.b32.xlu1 %v393_v34, %s4333_s5 }
 0x107   :  { %443 = vrot.lane.b32.xlu0 %v392_v35, %s4333_s5 }
 0x109   :  { %441 = vrot.lane.b32.xlu1 %v391_v37, %s4333_s5 }
 0x10b   :  { %439 = vrot.lane.b32.xlu0 %v390_v39, %s4333_s5 }
 0x10d   :  { %437 = vrot.lane.b32.xlu1 %v389_v40, %s4333_s5 }
 0x171   :  { %v452_v41 = vpop.permute.xlu0 %451 }
 0x172   :  { %3787 = vmatprep.subr.msk.mxu0 %vm178_vm0, %v452_v41 }
 0x173   :  { %3788 = vmatpush3.xpose.msk.msra.mxu0 %vm178_vm0, %v452_v41  ;;  %v450_v42 = vpop.permute.xlu1 %449 }
 0x174   :  { %3789 = vmatprep.subr.msk.mxu0 %vm178_vm0, %v450_v42 }
 0x175   :  { %v448_v43 = vpop.permute.xlu0 %447 }
 0x177   :  { %3790 = vmatpush3.xpose.msk.msra.mxu0 %vm178_vm0, %v450_v42  ;;  %v446_v44 = vpop.permute.xlu1 %445 }
 0x178   :  { %3791 = vmatprep.subr.msk.mxu0 %vm178_vm0, %v448_v43 }
 0x179   :  { %v444_v45 = vpop.permute.xlu0 %443 }
 0x17b   :  { %3792 = vmatpush3.xpose.msk.msra.mxu0 %vm178_vm0, %v448_v43  ;;  %v442_v46 = vpop.permute.xlu1 %441 }
 0x17c   :  { %3793 = vmatprep.subr.msk.mxu0 %vm178_vm0, %v446_v44 }
 0x17d   :  { %v440_v47 = vpop.permute.xlu0 %439 }
 0x17f   :  { %3794 = vmatpush3.xpose.msk.msra.mxu0 %vm178_vm0, %v446_v44  ;;  %v438_v48 = vpop.permute.xlu1 %437 }
 0x180   :  { %3795 = vmatprep.subr.msk.mxu0 %vm178_vm0, %v444_v45 }
 0x183   :  { %3796 = vmatpush3.xpose.msk.msra.mxu0 %vm178_vm0, %v444_v45 }
 0x184   :  { %3797 = vmatprep.subr.msk.mxu0 %vm178_vm0, %v442_v46 }
 0x187   :  { %3798 = vmatpush3.xpose.msk.msra.mxu0 %vm178_vm0, %v442_v46 }
 0x188   :  { %3799 = vmatprep.subr.msk.mxu0 %vm178_vm0, %v440_v47 }
 0x18b   :  { %3800 = vmatpush3.xpose.msk.msra.mxu0 %vm178_vm0, %v440_v47 }
 0x18c   :  { %3801 = vmatprep.subr.msk.mxu0 %vm178_vm0, %v438_v48 }
 0x18f   :  { %3802 = vmatpush3.xpose.msk.msra.mxu0 %vm178_vm0, %v438_v48 }
 0x190   :  { %3844 = vmatprep.subr.mxu0 %v355_v49 }
 0x192   :  { %3804 = vmatmul.mubr.msk.f32.vlgmr.msra.gmra.mxu0 %vm178_vm0, %v4567_v25 }
 0x193   :  { %3845 = vmatpush3.msra.mxu0 %v355_v49 }
 0x194   :  { %3846 = vmatprep.subr.mxu0 %v354_v52 }
 0x195   :  { %3847 = vmatpush3.msra.mxu0 %v354_v52 }
 0x196   :  { %3848 = vmatprep.subr.mxu0 %v353_v54 }
 0x197   :  { %3849 = vmatpush3.msra.mxu0 %v353_v54 }
 0x198   :  { %3850 = vmatprep.subr.mxu0 %v352_v56 }
 0x199   :  { %3851 = vmatpush3.msra.mxu0 %v352_v56 }
 0x19a   :  { %3866 = vmatprep.subr.msk.mxu0 %vm178_vm0, %v4640_v57 }
 0x252   :  { %v3805_v60 = vpop.f32.mrf.mxu0 }
 0x253   :  { %v547_v62 = vadd.f32 %v3805_v60, %v132_v59 }
 0x254   :  { %v541_v63 = vpop.f32.mrf.mxu0 }
 0x255   :  { %v542_v0 = vadd.f32 %v541_v63, %v131_v61  ;;  %v554_v1 = vsel %vm550_vm1, %v547_v62, -inf }
 0x256   :  { %555 = vmax.xlane.f32.xlu1 %v554_v1 }
 0x257   :  { %v551_v3 = vsel %vm550_vm1, %v542_v0, -inf }
 0x258   :  { %552 = vmax.xlane.f32.xlu0 %v551_v3  ;;  %v4723_v3 = vld [vmem:[%s4376_s29 + $0x30] sm:$0xff] }
 0x267   :  { %409 = vrot.lane.b32.xlu1 %v4518_v7, %s4334_s9  ;;  %v145_v7 = vld [vmem:[%s4371_s25 + $0x10] sm:$0xff] }
 0x268   :  { %3816 = vmatprep.subr.mxu1 %v145_v7 }
 0x269   :  { %3817 = vmatpush3.msra.mxu1 %v145_v7  ;;  %v4753_v7 = vld [vmem:[%s4376_s29 + $0x10] sm:$0xff] }
 0x26a   :  { %3818 = vmatprep.subr.mxu1 %v144_v18 }
 0x26b   :  { %405 = vrot.lane.b32.xlu1 %v4522_v9, %s4334_s9  ;;  %v143_v9 = vld [vmem:[%s4371_s25] sm:$0xff]  ;;  %3819 = vmatpush3.msra.mxu1 %v144_v18 }
 0x26c   :  { %3820 = vmatprep.subr.mxu1 %v143_v9 }
 0x26d   :  { %3821 = vmatpush3.msra.mxu1 %v143_v9  ;;  %v4760_v9 = vld [vmem:[%s4376_s29 + $0x8] sm:$0xff] }
 0x26e   :  { %411 = vrot.lane.b32.xlu0 %v4507_v4, %s4334_s9 }
 0x26f   :  { %401 = vrot.lane.b32.xlu1 %v4539_v14, %s4334_s9 }
 0x272   :  { %407 = vrot.lane.b32.xlu0 %v4510_v5, %s4334_s9 }
 0x273   :  { %397 = vrot.lane.b32.xlu1 %v4549_v16, %s4334_s9 }
 0x276   :  { %403 = vrot.lane.b32.xlu0 %v4533_v12, %s4334_s9 }
 0x27a   :  { %399 = vrot.lane.b32.xlu0 %v4546_v15, %s4334_s9 }
 0x2df   :  { %v556_v4 = vpop.xlane.xlu1 %555 }
 0x2e0   :  { %v558_v14 = vsub.f32 %v547_v62, %v556_v4  ;;  %v993_v4 = vmul.f32 %v4631_v53, %v4760_v9 }
 0x2e1   :  { %v553_v19 = vpop.xlane.xlu0 %552 }
 0x2e2   :  { %v557_v22 = vsub.f32 %v542_v0, %v553_v19  ;;  %v561_v24 = vmul.f32 1.442695, %v558_v14  ;;  %v4720_v0 = vadd.f32 %v4625_v50, %v4644_v58  ;;  %v997_v50 = vmul.f32 %v4631_v53, %v4732_v11  ;;  %v4739_v58 = vld [vmem:[%s4376_s29 + $0x20] sm:$0xff] }
 0x2e3   :  { %v4674_v5 = vpop.permute.xlu1 %409  ;;  %v4767_v14 = vld [vmem:[%s4376_s29] sm:$0xff] }
 0x2e4   :  { %v559_v27 = vmul.f32 1.442695, %v557_v22  ;;  %v427_v16 = vmul.f32 %v4674_v5, %v4571_v28  ;;  %v998_v8 = vmul.f32 %v4720_v0, %v4723_v3  ;;  %v996_v13 = vmul.f32 %v4720_v0, %v4739_v58  ;;  %v3438_v22 = vld [vmem:[%s4401_s24] ss:$0 sm:$0xff] }
 0x2e5   :  { %v4678_v29 = vpop.permute.xlu0 %411  ;;  %v994_v18 = vmul.f32 %v4720_v0, %v4753_v7  ;;  %v992_v19 = vmul.f32 %v4720_v0, %v4767_v14 }
 0x2e6   :  { %4172 = vpow2.f32 %v559_v27  ;;  %v428_v12 = vmul.f32 %v4678_v29, %v4567_v25  ;;  %668 = vrot.lane.b32.xlu1 %v427_v16, %s4334_s9 }
 0x2e7   :  { %4174 = vpow2.f32 %v561_v24  ;;  %v4683_v15 = vpop.permute.xlu1 %405 }
 0x2e8   :  { %v425_v30 = vmul.f32 %v4683_v15, %v4571_v28  ;;  %670 = vrot.lane.b32.xlu0 %v428_v12, %s4334_s9 }
 0x2e9   :  { %v4688_v32 = vpop.permute.xlu0 %407 }
 0x2ea   :  { %v426_v34 = vmul.f32 %v4688_v32, %v4567_v25  ;;  %664 = vrot.lane.b32.xlu1 %v425_v30, %s4334_s9 }
 0x2eb   :  { %v4693_v35 = vpop.permute.xlu1 %401 }
 0x2ec   :  { %v423_v37 = vmul.f32 %v4693_v35, %v4571_v28  ;;  %666 = vrot.lane.b32.xlu0 %v426_v34, %s4334_s9 }
 0x2ed   :  { %v4698_v39 = vpop.permute.xlu0 %403 }
 0x2ee   :  { %v424_v40 = vmul.f32 %v4698_v39, %v4567_v25  ;;  %660 = vrot.lane.b32.xlu1 %v423_v37, %s4334_s9 }
 0x2ef   :  { %v4703_v41 = vpop.permute.xlu1 %397 }
 0x2f0   :  { %v421_v42 = vmul.f32 %v4703_v41, %v4571_v28  ;;  %662 = vrot.lane.b32.xlu0 %v424_v40, %s4334_s9 }
 0x2f1   :  { %v4708_v43 = vpop.permute.xlu0 %399 }
 0x2f2   :  { %v422_v44 = vmul.f32 %v4708_v43, %v4567_v25  ;;  %656 = vrot.lane.b32.xlu1 %v421_v42, %s4334_s9 }
 0x2f3   :  { %v4173_v45 = vpop.eup %4172 }
 0x2f4   :  { %v4175_v46 = vpop.eup %4174  ;;  %3822 = vmatprep.mubr.msk.f32.mxu1 %vm550_vm1, %v4173_v45  ;;  %658 = vrot.lane.b32.xlu0 %v422_v44, %s4334_s9 }
 0x2f5   :  { %3823 = vmatmul.mubr.msk.f32.vlgmr.msra.gmra.mxu1 %vm550_vm1, %v4175_v46 }
 0x358   :  { %v669_v47 = vpop.permute.xlu1 %668 }
 0x35a   :  { %v671_v48 = vpop.permute.xlu0 %670 }
 0x35b   :  { %3825 = vmatprep.subr.mxu1 %v671_v48 }
 0x35c   :  { %v665_v28 = vpop.permute.xlu1 %664  ;;  %3826 = vmatpush3.msra.mxu1 %v671_v48 }
 0x35d   :  { %3827 = vmatprep.subr.mxu1 %v669_v47 }
 0x35e   :  { %3828 = vmatpush3.msra.mxu1 %v669_v47  ;;  %v667_v49 = vpop.permute.xlu0 %666 }
 0x35f   :  { %3829 = vmatprep.subr.mxu1 %v667_v49 }
 0x360   :  { %3830 = vmatpush3.msra.mxu1 %v667_v49  ;;  %v661_v25 = vpop.permute.xlu1 %660 }
 0x361   :  { %3831 = vmatprep.subr.mxu1 %v665_v28 }
 0x362   :  { %3832 = vmatpush3.msra.mxu1 %v665_v28  ;;  %v663_v51 = vpop.permute.xlu0 %662 }
 0x363   :  { %3833 = vmatprep.subr.mxu1 %v663_v51 }
 0x364   :  { %3834 = vmatpush3.msra.mxu1 %v663_v51  ;;  %v657_v54 = vpop.permute.xlu1 %656  ;;  %v897_v51 = vld [vmem:[%s4406_s30 + $0x10] sm:$0xff] }
 0x365   :  { %3835 = vmatprep.subr.mxu1 %v661_v25 }
 0x366   :  { %3836 = vmatpush3.msra.mxu1 %v661_v25  ;;  %v659_v52 = vpop.permute.xlu0 %658  ;;  %v898_v25 = vld [vmem:[%s4406_s30 + $0x18] sm:$0xff] }
 0x367   :  { %3837 = vmatprep.subr.mxu1 %v659_v52 }
 0x368   :  { %3838 = vmatpush3.msra.mxu1 %v659_v52  ;;  %v896_v52 = vld [vmem:[%s4406_s30 + $0x8] sm:$0xff] }
 0x369   :  { %3839 = vmatprep.subr.mxu1 %v657_v54 }
 0x36a   :  { %3840 = vmatpush3.msra.mxu1 %v657_v54  ;;  %v895_v54 = vld [vmem:[%s4406_s30] sm:$0xff] }
 0x36b   :  { %3855 = vmatprep.subr.mxu1 %v898_v25 }
 0x3b5   :  { %v3824_v56 = vpop.f32.mrf.mxu1 }
 0x3b6   :  { %4176 = vrcp.f32 %v3824_v56 }
 0x3b7   :  { %v635_v59 = vpop.f32.mrf.mxu1 }
 0x3b8   :  { %4178 = vrcp.f32 %v635_v59 }
 0x3c3   :  { %v4177_v60 = vpop.eup %4176 }
 0x3c4   :  { %v647_v63 = vmul.f32 %v4177_v60, %v4175_v46 }
 0x3c5   :  { %v4179_v61 = vpop.eup %4178 }
 0x3c6   :  { %v646_v62 = vmul.f32 %v4179_v61, %v4173_v45 }
 0x3c8   :  { %3841 = vmatprep.mubr.msk.f32.mxu1 %vm550_vm1, %v646_v62 }
 0x3c9   :  { %3842 = vmatmul.mubr.msk.f32.vlgmr.msra.gmra.mxu1 %vm550_vm1, %v647_v63 }
 0x3ca   :  { %3856 = vmatpush3.msra.mxu1 %v898_v25  ;;  %v161_v25 = vld [vmem:[%s5227_s15 + $0x10] sm:$0xff] }
 0x3cb   :  { %3857 = vmatprep.subr.mxu1 %v897_v51 }
 0x3cc   :  { %3858 = vmatpush3.msra.mxu1 %v897_v51 }
 0x3cd   :  { %3859 = vmatprep.subr.mxu1 %v896_v52 }
 0x3ce   :  { %3860 = vmatpush3.msra.mxu1 %v896_v52 }
 0x3cf   :  { %3861 = vmatprep.subr.mxu1 %v895_v54 }
 0x3d0   :  { %3862 = vmatpush3.msra.mxu1 %v895_v54 }
 0x489   :  { %v3843_v1 = vpop.f32.mrf.mxu1 }
 0x48b   :  { %v752_v6 = vpop.f32.mrf.mxu1 }
 0x48c   :  { %3852 = vmatprep.mubr.msk.f32.mxu0 %vm178_vm0, %v752_v6  ;;  %v3441_v6 = vld [vmem:[%s4466_s27] ss:$0 sm:$0xff] }
 0x48d   :  { %3853 = vmatmul.mubr.msk.f32.vlgmr.msra.gmra.mxu0 %vm178_vm0, %v3843_v1 }
 0x48e   :  { %3867 = vmatpush3.xpose.msk.msra.mxu0 %vm178_vm0, %v4640_v57  ;;  %v4746_v57 = vld [vmem:[%s4376_s29 + $0x18] sm:$0xff] }
 0x48f   :  { %3868 = vmatprep.subr.msk.mxu0 %vm178_vm0, %v998_v8  ;;  %v995_v17 = vmul.f32 %v4631_v53, %v4746_v57 }
 0x492   :  { %3869 = vmatpush3.xpose.msk.msra.mxu0 %vm178_vm0, %v998_v8 }
 0x493   :  { %3870 = vmatprep.subr.msk.mxu0 %vm178_vm0, %v997_v50 }
 0x496   :  { %3871 = vmatpush3.xpose.msk.msra.mxu0 %vm178_vm0, %v997_v50  ;;  %v3442_v50 = vld [vmem:[%s5224_s21] ss:$0 sm:$0xff] }
 0x497   :  { %3872 = vmatprep.subr.msk.mxu0 %vm178_vm0, %v996_v13 }
 0x49a   :  { %3873 = vmatpush3.xpose.msk.msra.mxu0 %vm178_vm0, %v996_v13 }
 0x49b   :  { %3874 = vmatprep.subr.msk.mxu0 %vm178_vm0, %v995_v17 }
 0x49e   :  { %3875 = vmatpush3.xpose.msk.msra.mxu0 %vm178_vm0, %v995_v17 }
 0x49f   :  { %3876 = vmatprep.subr.msk.mxu0 %vm178_vm0, %v994_v18 }
 0x4a2   :  { %3877 = vmatpush3.xpose.msk.msra.mxu0 %vm178_vm0, %v994_v18 }
 0x4a3   :  { %3878 = vmatprep.subr.msk.mxu0 %vm178_vm0, %v993_v4 }
 0x4a6   :  { %3879 = vmatpush3.xpose.msk.msra.mxu0 %vm178_vm0, %v993_v4 }
 0x4a7   :  { %3880 = vmatprep.subr.msk.mxu0 %vm178_vm0, %v992_v19 }
 0x4aa   :  { %3881 = vmatpush3.xpose.msk.msra.mxu0 %vm178_vm0, %v992_v19 }
 0x54d   :  { %v3854_v24 = vpop.f32.mrf.mxu0 }
 0x54e   :  { %v845_v27 = vadd.f32 %v3854_v24, %v3438_v22 }
 0x54f   :  { %v839_v16 = vpop.f32.mrf.mxu0 }
 0x550   :  { %v840_v12 = vadd.f32 %v3438_v22, %v839_v16  ;;  %v849_v30 = vadd.f32 %v845_v27, %v4525_v10  ;;  %v3443_v27 = vld [vmem:[%s5225_s12] ss:$0 sm:$0xff] }
 0x552   :  { %v855_v34 = vsel %vm178_vm0, %v849_v30, 0.0  ;;  %v848_v37 = vadd.f32 %v840_v12, %v4501_v2 }
 0x553   :  { %856 = vadd.xlane.f32.xlu1 %v855_v34  ;;  %v134_v34 = vld [vmem:[%s5226_s20 + $0x8] sm:$0xff] }
 0x554   :  { %v852_v40 = vsel %vm178_vm0, %v848_v37, 0.0 }
 0x555   :  { %853 = vadd.xlane.f32.xlu0 %v852_v40  ;;  %v133_v40 = vld [vmem:[%s5226_s20] sm:$0xff] }
 0x5dc   :  { %v857_v42 = vpop.xlane.xlu1 %856 }
 0x5dd   :  { %v860_v44 = vmul.f32 0.03125, %v857_v42 }
 0x5de   :  { %v854_v45 = vpop.xlane.xlu0 %853 }
 0x5df   :  { %v859_v46 = vmul.f32 0.03125, %v854_v45  ;;  %v862_v47 = vsub.f32 %v849_v30, %v860_v44 }
 0x5e1   :  { %v861_v48 = vsub.f32 %v848_v37, %v859_v46  ;;  %v864_v49 = vmul.f32 %v862_v47, %v862_v47 }
 0x5e3   :  { %v863_v28 = vmul.f32 %v861_v48, %v861_v48  ;;  %v868_v2 = vsel %vm178_vm0, %v864_v49, 0.0  ;;  %v163_v49 = vld [vmem:[%s5227_s15 + $0x20] sm:$0xff] }
 0x5e5   :  { %v865_v10 = vsel %vm178_vm0, %v863_v28, 0.0  ;;  %v165_v28 = vld [vmem:[%s5227_s15 + $0x30] sm:$0xff] }
 0x5e6   :  { %866 = vadd.xlane.f32.xlu0 %v865_v10  ;;  %v164_v10 = vld [vmem:[%s5227_s15 + $0x28] sm:$0xff] }
 0x5ea   :  { %869 = vadd.xlane.f32.xlu0 %v868_v2  ;;  %v162_v2 = vld [vmem:[%s5227_s15 + $0x18] sm:$0xff] }
 0x66f   :  { %v867_v56 = vpop.xlane.xlu0 %866 }
 0x670   :  { %v871_v59 = vmul.f32 0.03125, %v867_v56 }
 0x672   :  { %v873_v60 = vadd.f32 1e-05, %v871_v59 }
 0x673   :  { %v870_v61 = vpop.xlane.xlu0 %869 }
 0x674   :  { %4180 = vrsqrt.f32 %v873_v60  ;;  %v872_v62 = vmul.f32 0.03125, %v870_v61 }
 0x676   :  { %v874_v63 = vadd.f32 1e-05, %v872_v62 }
 0x678   :  { %4182 = vrsqrt.f32 %v874_v63 }
 0x681   :  { %v4181_v1 = vpop.eup %4180 }
 0x682   :  { %v877_v8 = vmul.f32 %v4181_v1, %v861_v48  ;;  %v166_v48 = vld [vmem:[%s5227_s15 + $0x38] sm:$0xff] }
 0x683   :  { %3885 = vmatprep.subr.mxu1 %v166_v48 }
 0x684   :  { %v885_v13 = vmul.f32 %v3441_v6, %v877_v8 }
 0x685   :  { %v4183_v17 = vpop.eup %4182 }
 0x686   :  { %v878_v18 = vmul.f32 %v4183_v17, %v862_v47  ;;  %v4788_v4 = vadd.f32 %v3442_v50, %v885_v13 }
 0x688   :  { %v886_v19 = vmul.f32 %v3441_v6, %v878_v18  ;;  %3863 = vmatprep.mubr.msk.f32.mxu1 %vm178_vm0, %v4788_v4 }
 0x68a   :  { %v4792_v22 = vadd.f32 %v3442_v50, %v886_v19 }
 0x68c   :  { %3864 = vmatmul.mubr.msk.f32.vlgmr.msra.gmra.mxu1 %vm178_vm0, %v4792_v22 }
 0x68d   :  { %3886 = vmatpush3.msra.mxu1 %v166_v48 }
 0x68e   :  { %3887 = vmatprep.subr.mxu1 %v165_v28 }
 0x68f   :  { %3888 = vmatpush3.msra.mxu1 %v165_v28 }
 0x690   :  { %3889 = vmatprep.subr.mxu1 %v164_v10 }
 0x691   :  { %3890 = vmatpush3.msra.mxu1 %v164_v10 }
 0x692   :  { %3891 = vmatprep.subr.mxu1 %v163_v49 }
 0x693   :  { %3892 = vmatpush3.msra.mxu1 %v163_v49 }
 0x694   :  { %3893 = vmatprep.subr.mxu1 %v162_v2 }
 0x695   :  { %3894 = vmatpush3.msra.mxu1 %v162_v2  ;;  %v988_v2 = vld [vmem:[%s5228_s16 + $0x8] sm:$0xff] }
 0x696   :  { %3895 = vmatprep.subr.mxu1 %v161_v25 }
 0x697   :  { %3896 = vmatpush3.msra.mxu1 %v161_v25  ;;  %v987_v25 = vld [vmem:[%s5228_s16] sm:$0xff] }
 0x74c   :  { %v3865_v24 = vpop.f32.mrf.mxu1 }
 0x74d   :  { %v984_v30 = vadd.f32 %v3865_v24, %v3443_v27 }
 0x74e   :  { %v978_v16 = vpop.f32.mrf.mxu1 }
 0x74f   :  { %v979_v12 = vadd.f32 %v3443_v27, %v978_v16  ;;  %v990_v27 = vld [vmem:[%s5228_s16 + $0x18] sm:$0xff]  ;;  %v989_v16 = vld [vmem:[%s5228_s16 + $0x10] sm:$0xff] }
 0x750   :  { %3923 = vmatprep.subr.mxu0 %v990_v27 }
 0x751   :  { %3882 = vmatprep.mubr.msk.f32.mxu0 %vm178_vm0, %v979_v12 }
 0x752   :  { %3883 = vmatmul.mubr.msk.f32.vlgmr.msra.gmra.mxu0 %vm178_vm0, %v984_v30 }
 0x753   :  { %3924 = vmatpush3.msra.mxu0 %v990_v27 }
 0x754   :  { %3925 = vmatprep.subr.mxu0 %v989_v16 }
 0x755   :  { %3926 = vmatpush3.msra.mxu0 %v989_v16 }
 0x756   :  { %3927 = vmatprep.subr.mxu0 %v988_v2 }
 0x757   :  { %3928 = vmatpush3.msra.mxu0 %v988_v2  ;;  %v1634_v2 = vld [vmem:[%s5232_s26] sm:$0xff] }
 0x758   :  { %3929 = vmatprep.subr.mxu0 %v987_v25 }
 0x759   :  { %3930 = vmatpush3.msra.mxu0 %v987_v25  ;;  %v3465_v25 = vld [vmem:[%s5233_s28] ss:$0 sm:$0xff] }
 0x812   :  { %v3884_v37 = vpop.f32.mrf.mxu0 }
 0x813   :  { %v1142_v42 = vadd.f32 %v3884_v37, %v134_v34 }
 0x814   :  { %v1136_v44 = vpop.f32.mrf.mxu0 }
 0x815   :  { %v1137_v45 = vadd.f32 %v1136_v44, %v133_v40  ;;  %v1148_v46 = vsel %vm550_vm1, %v1142_v42, -inf }
 0x816   :  { %1149 = vmax.xlane.f32.xlu0 %v1148_v46 }
 0x817   :  { %v1145_v47 = vsel %vm550_vm1, %v1137_v45, -inf }
 0x818   :  { %1146 = vmax.xlane.f32.xlu1 %v1145_v47 }
 0x829   :  { %1022 = vrot.lane.b32.xlu1 %v4635_v55, %s4332_s0  ;;  %v160_v55 = vld [vmem:[%s5227_s15 + $0x8] sm:$0xff] }
 0x82a   :  { %3897 = vmatprep.subr.mxu1 %v160_v55 }
 0x82b   :  { %3898 = vmatpush3.msra.mxu1 %v160_v55 }
 0x82c   :  { %1020 = vrot.lane.b32.xlu0 %v4723_v3, %s4332_s0  ;;  %v159_v3 = vld [vmem:[%s5227_s15] sm:$0xff] }
 0x82d   :  { %1018 = vrot.lane.b32.xlu1 %v4732_v11, %s4332_s0  ;;  %3899 = vmatprep.subr.mxu1 %v159_v3 }
 0x82e   :  { %3900 = vmatpush3.msra.mxu1 %v159_v3 }
 0x830   :  { %1014 = vrot.lane.b32.xlu0 %v4746_v57, %s4332_s0 }
 0x831   :  { %1016 = vrot.lane.b32.xlu1 %v4739_v58, %s4332_s0 }
 0x834   :  { %1010 = vrot.lane.b32.xlu0 %v4760_v9, %s4332_s0 }
 0x835   :  { %1012 = vrot.lane.b32.xlu1 %v4753_v7, %s4332_s0 }
 0x839   :  { %1008 = vrot.lane.b32.xlu1 %v4767_v14, %s4332_s0 }
 0x89f   :  { %v1150_v11 = vpop.xlane.xlu0 %1149 }
 0x8a0   :  { %v1152_v57 = vsub.f32 %v1142_v42, %v1150_v11  ;;  %v3460_v11 = vld [vmem:[%s5229_s18] ss:$0 sm:$0xff] }
 0x8a1   :  { %v1147_v51 = vpop.xlane.xlu1 %1146 }
 0x8a2   :  { %v1151_v52 = vsub.f32 %v1137_v45, %v1147_v51  ;;  %v1155_v58 = vmul.f32 1.442695, %v1152_v57 }
 0x8a3   :  { %v1021_v54 = vpop.permute.xlu0 %1020 }
 0x8a4   :  { %v1153_v56 = vmul.f32 1.442695, %v1151_v52  ;;  %v1038_v59 = vmul.f32 %v1021_v54, %v4720_v0 }
 0x8a5   :  { %v1023_v60 = vpop.permute.xlu1 %1022 }
 0x8a6   :  { %4184 = vpow2.f32 %v1153_v56  ;;  %v1039_v9 = vmul.f32 %v1023_v60, %v4631_v53  ;;  %1262 = vrot.lane.b32.xlu1 %v1038_v59, %s4333_s5 }
 0x8a7   :  { %4186 = vpow2.f32 %v1155_v58  ;;  %v1015_v7 = vpop.permute.xlu0 %1014 }
 0x8a8   :  { %1264 = vrot.lane.b32.xlu0 %v1039_v9, %s4333_s5  ;;  %v1035_v63 = vmul.f32 %v1015_v7, %v4631_v53 }
 0x8a9   :  { %v1019_v14 = vpop.permute.xlu1 %1018 }
 0x8aa   :  { %v1037_v61 = vmul.f32 %v1019_v14, %v4631_v53 }
 0x8ab   :  { %v1011_v6 = vpop.permute.xlu0 %1010 }
 0x8ac   :  { %1260 = vrot.lane.b32.xlu0 %v1037_v61, %s4333_s5  ;;  %v1033_v50 = vmul.f32 %v1011_v6, %v4631_v53 }
 0x8ad   :  { %v1017_v62 = vpop.permute.xlu1 %1016 }
 0x8ae   :  { %v1036_v1 = vmul.f32 %v1017_v62, %v4720_v0 }
 0x8b0   :  { %1256 = vrot.lane.b32.xlu0 %v1035_v63, %s4333_s5  ;;  %1258 = vrot.lane.b32.xlu1 %v1036_v1, %s4333_s5 }
 0x8b1   :  { %v1013_v8 = vpop.permute.xlu1 %1012 }
 0x8b2   :  { %v1034_v13 = vmul.f32 %v1013_v8, %v4720_v0  ;;  %v1491_v8 = vld [vmem:[%s5230_s22 + $0x18] sm:$0xff] }
 0x8b3   :  { %v4185_v17 = vpop.eup %4184 }
 0x8b4   :  { %v4187_v18 = vpop.eup %4186  ;;  %3901 = vmatprep.mubr.msk.f32.mxu1 %vm550_vm1, %v4185_v17  ;;  %1252 = vrot.lane.b32.xlu0 %v1033_v50, %s4333_s5  ;;  %v1490_v50 = vld [vmem:[%s5230_s22 + $0x10] sm:$0xff] }
 0x8b5   :  { %1254 = vrot.lane.b32.xlu1 %v1034_v13, %s4333_s5  ;;  %3902 = vmatmul.mubr.msk.f32.vlgmr.msra.gmra.mxu1 %vm550_vm1, %v4187_v18  ;;  %v1009_v19 = vpop.permute.xlu1 %1008  ;;  %v1489_v13 = vld [vmem:[%s5230_s22 + $0x8] sm:$0xff] }
 0x8b6   :  { %v1032_v24 = vmul.f32 %v1009_v19, %v4720_v0 }
 0x8b9   :  { %1250 = vrot.lane.b32.xlu1 %v1032_v24, %s4333_s5 }
 0x918   :  { %v1263_v30 = vpop.permute.xlu1 %1262 }
 0x91a   :  { %v1265_v12 = vpop.permute.xlu0 %1264 }
 0x91b   :  { %3904 = vmatprep.subr.mxu1 %v1265_v12 }
 0x91c   :  { %3905 = vmatpush3.msra.mxu1 %v1265_v12 }
 0x91d   :  { %3906 = vmatprep.subr.mxu1 %v1263_v30 }
 0x91e   :  { %v1261_v34 = vpop.permute.xlu0 %1260  ;;  %3907 = vmatpush3.msra.mxu1 %v1263_v30 }
 0x91f   :  { %3908 = vmatprep.subr.mxu1 %v1261_v34 }
 0x920   :  { %3909 = vmatpush3.msra.mxu1 %v1261_v34  ;;  %v3463_v34 = vld [vmem:[%s5231_s23] ss:$0 sm:$0xff] }
 0x922   :  { %v1259_v37 = vpop.permute.xlu1 %1258  ;;  %v1257_v40 = vpop.permute.xlu0 %1256 }
 0x923   :  { %3910 = vmatprep.subr.mxu1 %v1259_v37 }
 0x924   :  { %3911 = vmatpush3.msra.mxu1 %v1259_v37 }
 0x925   :  { %3912 = vmatprep.subr.mxu1 %v1257_v40 }
 0x926   :  { %3913 = vmatpush3.msra.mxu1 %v1257_v40  ;;  %v1253_v44 = vpop.permute.xlu0 %1252  ;;  %v3464_v40 = vld [vmem:[%s4481_s17] ss:$0 sm:$0xff] }
 0x927   :  { %v1255_v42 = vpop.permute.xlu1 %1254 }
 0x928   :  { %3914 = vmatprep.subr.mxu1 %v1255_v42 }
 0x929   :  { %3915 = vmatpush3.msra.mxu1 %v1255_v42 }
 0x92a   :  { %3916 = vmatprep.subr.mxu1 %v1253_v44 }
 0x92b   :  { %3917 = vmatpush3.msra.mxu1 %v1253_v44  ;;  %v1251_v45 = vpop.permute.xlu1 %1250 }
 0x92c   :  { %3918 = vmatprep.subr.mxu1 %v1251_v45 }
 0x92d   :  { %3919 = vmatpush3.msra.mxu1 %v1251_v45 }
 0x92e   :  { %3934 = vmatprep.subr.mxu1 %v1491_v8 }
 0x975   :  { %v3903_v46 = vpop.f32.mrf.mxu1 }
 0x976   :  { %4188 = vrcp.f32 %v3903_v46 }
 0x977   :  { %v1229_v47 = vpop.f32.mrf.mxu1 }
 0x978   :  { %4190 = vrcp.f32 %v1229_v47 }
 0x983   :  { %v4189_v48 = vpop.eup %4188 }
 0x984   :  { %v1241_v49 = vmul.f32 %v4189_v48, %v4187_v18 }
 0x985   :  { %v4191_v28 = vpop.eup %4190 }
 0x986   :  { %v1240_v10 = vmul.f32 %v4191_v28, %v4185_v17  ;;  %v1488_v17 = vld [vmem:[%s5230_s22] sm:$0xff]  ;;  %v1637_v28 = vld [vmem:[%s5232_s26 + $0x18] sm:$0xff] }
 0x987   :  { %3945 = vmatprep.subr.mxu0 %v1637_v28 }
 0x988   :  { %3920 = vmatprep.mubr.msk.f32.mxu1 %vm550_vm1, %v1240_v10  ;;  %v1636_v10 = vld [vmem:[%s5232_s26 + $0x10] sm:$0xff] }
 0x989   :  { %3921 = vmatmul.mubr.msk.f32.vlgmr.msra.gmra.mxu1 %vm550_vm1, %v1241_v49  ;;  %v1635_v49 = vld [vmem:[%s5232_s26 + $0x8] sm:$0xff] }
 0x98a   :  { %3935 = vmatpush3.msra.mxu1 %v1491_v8 }
 0x98b   :  { %3936 = vmatprep.subr.mxu1 %v1490_v50 }
 0x98c   :  { %3937 = vmatpush3.msra.mxu1 %v1490_v50 }
 0x98d   :  { %3938 = vmatprep.subr.mxu1 %v1489_v13 }
 0x98e   :  { %3939 = vmatpush3.msra.mxu1 %v1489_v13 }
 0x98f   :  { %3940 = vmatprep.subr.mxu1 %v1488_v17 }
 0x990   :  { %3941 = vmatpush3.msra.mxu1 %v1488_v17 }
 0xa49   :  { %v3922_v55 = vpop.f32.mrf.mxu1 }
 0xa4b   :  { %v1346_v3 = vpop.f32.mrf.mxu1 }
 0xa4c   :  { %3931 = vmatprep.mubr.msk.f32.mxu0 %vm178_vm0, %v1346_v3 }
 0xa4d   :  { %3932 = vmatmul.mubr.msk.f32.vlgmr.msra.gmra.mxu0 %vm178_vm0, %v3922_v55 }
 0xa4e   :  { %3946 = vmatpush3.msra.mxu0 %v1637_v28 }
 0xa4f   :  { %3947 = vmatprep.subr.mxu0 %v1636_v10 }
 0xa50   :  { %3948 = vmatpush3.msra.mxu0 %v1636_v10 }
 0xa51   :  { %3949 = vmatprep.subr.mxu0 %v1635_v49 }
 0xa52   :  { %3950 = vmatpush3.msra.mxu0 %v1635_v49 }
 0xa53   :  { %3951 = vmatprep.subr.mxu0 %v1634_v2 }
 0xa54   :  { %3952 = vmatpush3.msra.mxu0 %v1634_v2 }
 0xb0d   :  { %v3933_v57 = vpop.f32.mrf.mxu0 }
 0xb0e   :  { %v1439_v51 = vadd.f32 %v3933_v57, %v3460_v11 }
 0xb0f   :  { %v1433_v52 = vpop.f32.mrf.mxu0 }
 0xb10   :  { %v1434_v58 = vadd.f32 %v3460_v11, %v1433_v52  ;;  %v1443_v54 = vadd.f32 %v1439_v51, %v4792_v22 }
 0xb12   :  { %v1449_v56 = vsel %vm178_vm0, %v1443_v54, 0.0  ;;  %v1442_v59 = vadd.f32 %v1434_v58, %v4788_v4 }
 0xb13   :  { %1450 = vadd.xlane.f32.xlu1 %v1449_v56 }
 0xb14   :  { %v1446_v60 = vsel %vm178_vm0, %v1442_v59, 0.0 }
 0xb15   :  { %1447 = vadd.xlane.f32.xlu0 %v1446_v60 }
 0xb9c   :  { %v1451_v9 = vpop.xlane.xlu1 %1450 }
 0xb9d   :  { %v1453_v7 = vmul.f32 0.03125, %v1451_v9 }
 0xb9e   :  { %v1448_v14 = vpop.xlane.xlu0 %1447 }
 0xb9f   :  { %v1452_v61 = vmul.f32 0.03125, %v1448_v14  ;;  %v1455_v62 = vsub.f32 %v1443_v54, %v1453_v7 }
 0xba1   :  { %v1454_v63 = vsub.f32 %v1442_v59, %v1452_v61  ;;  %v1457_v6 = vmul.f32 %v1455_v62, %v1455_v62 }
 0xba3   :  { %v1456_v1 = vmul.f32 %v1454_v63, %v1454_v63  ;;  %v1461_v4 = vsel %vm178_vm0, %v1457_v6, 0.0 }
 0xba5   :  { %v1458_v22 = vsel %vm178_vm0, %v1456_v1, 0.0 }
 0xba6   :  { %1459 = vadd.xlane.f32.xlu0 %v1458_v22 }
 0xbaa   :  { %1462 = vadd.xlane.f32.xlu0 %v1461_v4 }
 0xc2f   :  { %v1460_v18 = vpop.xlane.xlu0 %1459 }
 0xc30   :  { %v1464_v19 = vmul.f32 0.03125, %v1460_v18 }
 0xc32   :  { %v1466_v24 = vadd.f32 1e-05, %v1464_v19 }
 0xc33   :  { %v1463_v27 = vpop.xlane.xlu0 %1462 }
 0xc34   :  { %4192 = vrsqrt.f32 %v1466_v24  ;;  %v1465_v16 = vmul.f32 0.03125, %v1463_v27 }
 0xc36   :  { %v1467_v12 = vadd.f32 1e-05, %v1465_v16 }
 0xc38   :  { %4194 = vrsqrt.f32 %v1467_v12 }
 0xc41   :  { %v4193_v30 = vpop.eup %4192 }
 0xc42   :  { %v1470_v37 = vmul.f32 %v4193_v30, %v1454_v63 }
 0xc44   :  { %v1478_v42 = vmul.f32 %v3463_v34, %v1470_v37 }
 0xc45   :  { %v4195_v44 = vpop.eup %4194 }
 0xc46   :  { %v1471_v45 = vmul.f32 %v4195_v44, %v1455_v62  ;;  %v4866_v46 = vadd.f32 %v3464_v40, %v1478_v42 }
 0xc48   :  { %v1479_v47 = vmul.f32 %v3463_v34, %v1471_v45  ;;  %3942 = vmatprep.mubr.msk.f32.mxu1 %vm178_vm0, %v4866_v46 }
 0xc4a   :  { %v4870_v48 = vadd.f32 %v3464_v40, %v1479_v47 }
 0xc4c   :  { %3943 = vmatmul.mubr.msk.f32.vlgmr.msra.gmra.mxu1 %vm178_vm0, %v4870_v48 }
 0xd0c   :  { %v3944_v55 = vpop.f32.mrf.mxu1 }
 0xd0d   :  { %v1577_v3 = vadd.f32 %v3944_v55, %v3465_v25 }
 0xd0e   :  { %v1571_v11 = vpop.f32.mrf.mxu1 }
 0xd0f   :  { %v1583_v57 = vmul.f32 0.70710677, %v1577_v3  ;;  %v1572_v51 = vadd.f32 %v3465_v25, %v1571_v11 }
 0xd11   :  { %v1585_v52 = vand.u32 2147483647, %v1583_v57  ;;  %v1582_v58 = vmul.f32 0.70710677, %v1572_v51  ;;  %vm1625_vm2 = vcmp.lt.f32.partialorder %v1583_v57, 0.0 }
 0xd13   :  { %v1587_v54 = vmul.f32 0.3275911, %v1585_v52  ;;  %v1584_v56 = vand.u32 2147483647, %v1582_v58  ;;  %v1613_v7 = vmul.f32 %v1585_v52, %v1585_v52  ;;  %vm1624_vm3 = vcmp.lt.f32.partialorder %v1582_v58, 0.0 }
 0xd15   :  { %v1589_v59 = vadd.f32 1.0, %v1587_v54  ;;  %v1586_v60 = vmul.f32 0.3275911, %v1584_v56  ;;  %v1612_v14 = vmul.f32 %v1584_v56, %v1584_v56  ;;  %v1615_v61 = vsub.f32 0.0, %v1613_v7 }
 0xd17   :  { %4196 = vrcp.f32 %v1589_v59  ;;  %v1588_v9 = vadd.f32 1.0, %v1586_v60  ;;  %v1614_v63 = vsub.f32 0.0, %v1612_v14  ;;  %v1618_v22 = vmul.f32 1.442695, %v1615_v61  ;;  %v3468_v61 = vld [vmem:[%s5234_s1] ss:$0 sm:$0xff] }
 0xd18   :  { %v1580_v59 = vmul.f32 0.5, %v1572_v51 }
 0xd19   :  { %4198 = vrcp.f32 %v1588_v9  ;;  %v1616_v50 = vmul.f32 1.442695, %v1614_v63  ;;  %v1581_v9 = vmul.f32 0.5, %v1577_v3 }
 0xd1a   :  { %4200 = vpow2.f32 %v1618_v22 }
 0xd1b   :  { %4202 = vpow2.f32 %v1616_v50 }
 0xd24   :  { %v4197_v62 = vpop.eup %4196 }
 0xd25   :  { %v1595_v1 = vmul.f32 1.0614054, %v4197_v62 }
 0xd26   :  { %v4199_v6 = vpop.eup %4198 }
 0xd27   :  { %v1597_v4 = vadd.f32 -1.4531521, %v1595_v1  ;;  %v1594_v8 = vmul.f32 1.0614054, %v4199_v6  ;;  %v4201_v44 = vpop.eup %4200 }
 0xd28   :  { %v4203_v10 = vpop.eup %4202 }
 0xd29   :  { %v1599_v13 = vmul.f32 %v4197_v62, %v1597_v4  ;;  %v1596_v17 = vadd.f32 -1.4531521, %v1594_v8 }
 0xd2b   :  { %v1601_v18 = vadd.f32 1.4214138, %v1599_v13  ;;  %v1598_v19 = vmul.f32 %v4199_v6, %v1596_v17 }
 0xd2d   :  { %v1603_v24 = vmul.f32 %v4197_v62, %v1601_v18  ;;  %v1600_v27 = vadd.f32 1.4214138, %v1598_v19 }
 0xd2f   :  { %v1605_v16 = vadd.f32 -0.28449672, %v1603_v24  ;;  %v1602_v12 = vmul.f32 %v4199_v6, %v1600_v27 }
 0xd31   :  { %v1607_v30 = vmul.f32 %v4197_v62, %v1605_v16  ;;  %v1604_v34 = vadd.f32 -0.28449672, %v1602_v12 }
 0xd33   :  { %v1609_v37 = vadd.f32 0.2548296, %v1607_v30  ;;  %v1606_v40 = vmul.f32 %v4199_v6, %v1604_v34 }
 0xd35   :  { %v1611_v42 = vmul.f32 %v4197_v62, %v1609_v37  ;;  %v1608_v45 = vadd.f32 0.2548296, %v1606_v40  ;;  %v3471_v40 = vld [vmem:[%s5235_s2] ss:$0 sm:$0xff] }
 0xd37   :  { %v1621_v47 = vmul.f32 %v4201_v44, %v1611_v42  ;;  %v1610_v28 = vmul.f32 %v4199_v6, %v1608_v45  ;;  %v3472_v45 = vld [vmem:[%s5236_s7] ss:$0 sm:$0xff] }
 0xd39   :  { %v1623_v49 = vsub.f32 1.0, %v1621_v47  ;;  %v1620_v2 = vmul.f32 %v4203_v10, %v1610_v28 }
 0xd3b   :  { %v1627_v25 = vsub.f32 0.0, %v1623_v49  ;;  %v1622_v55 = vsub.f32 1.0, %v1620_v2 }
 0xd3d   :  { %v1629_v11 = vsel %vm1625_vm2, %v1627_v25, %v1623_v49  ;;  %v1626_v52 = vsub.f32 0.0, %v1622_v55 }
 0xd3e   :  { %v1631_v54 = vadd.f32 1.0, %v1629_v11 }
 0xd3f   :  { %v1628_v56 = vsel %vm1624_vm3, %v1626_v52, %v1622_v55 }
 0xd40   :  { %v1630_v60 = vadd.f32 1.0, %v1628_v56  ;;  %v1633_v14 = vmul.f32 %v1631_v54, %v1581_v9 }
 0xd42   :  { %v1632_v7 = vmul.f32 %v1630_v60, %v1580_v59 }
 0xd44   :  { %3953 = vmatprep.mubr.msk.f32.mxu0 %vm178_vm0, %v1632_v7 }
 0xd45   :  { %3954 = vmatmul.mubr.msk.f32.vlgmr.msra.gmra.mxu0 %vm178_vm0, %v1633_v14 }
 0xe05   :  { %v3955_v62 = vpop.f32.mrf.mxu0 }
 0xe06   :  { %v1723_v63 = vadd.f32 %v3955_v62, %v3468_v61 }
 0xe07   :  { %v1717_v1 = vpop.f32.mrf.mxu0 }
 0xe08   :  { %v1718_v57 = vadd.f32 %v3468_v61, %v1717_v1  ;;  %v1731_v22 = vsel %vm178_vm0, %v1723_v63, 0.0  ;;  %v3478_v1 = vld [vmem:[%s4386_s8 + $0x38] sm:$0xff] }
 0xe09   :  { %1732 = vadd.xlane.f32.xlu0 %v1731_v22  ;;  %3956 = vmatprep.subr.mxu1 %v3478_v1  ;;  %v3476_v22 = vld [vmem:[%s4386_s8 + $0x28] sm:$0xff] }
 0xe0a   :  { %v1728_v58 = vsel %vm178_vm0, %v1718_v57, 0.0  ;;  %3957 = vmatpush3.msra.mxu1 %v3478_v1 }
 0xe0b   :  { %1729 = vadd.xlane.f32.xlu1 %v1728_v58  ;;  %v3475_v58 = vld [vmem:[%s4386_s8 + $0x20] sm:$0xff] }
 0xe92   :  { %v1733_v51 = vpop.xlane.xlu0 %1732 }
 0xe93   :  { %v1735_v6 = vmul.f32 0.03125, %v1733_v51  ;;  %v4252_v51 = vld [vmem:[%s4371_s25 + $0x38] sm:$0xff] }
 0xe94   :  { %v1730_v3 = vpop.xlane.xlu1 %1729 }
 0xe95   :  { %v1737_v4 = vsub.f32 %v1723_v63, %v1735_v6  ;;  %v1734_v8 = vmul.f32 0.03125, %v1730_v3 }
 0xe97   :  { %v1736_v50 = vsub.f32 %v1718_v57, %v1734_v8  ;;  %v1739_v13 = vmul.f32 %v1737_v4, %v1737_v4  ;;  %v3477_v57 = vld [vmem:[%s4386_s8 + $0x30] sm:$0xff] }
 0xe98   :  { %3958 = vmatprep.subr.mxu1 %v3477_v57 }
 0xe99   :  { %v1743_v17 = vsel %vm178_vm0, %v1739_v13, 0.0  ;;  %v1738_v18 = vmul.f32 %v1736_v50, %v1736_v50  ;;  %3959 = vmatpush3.msra.mxu1 %v3477_v57 }
 0xe9a   :  { %1744 = vadd.xlane.f32.xlu0 %v1743_v17  ;;  %3960 = vmatprep.subr.mxu1 %v3476_v22 }
 0xe9b   :  { %v1740_v19 = vsel %vm178_vm0, %v1738_v18, 0.0  ;;  %3961 = vmatpush3.msra.mxu1 %v3476_v22  ;;  %v3473_v18 = vld [vmem:[%s4486_s6] ss:$0 sm:$0xff] }
 0xe9c   :  { %1741 = vadd.xlane.f32.xlu1 %v1740_v19  ;;  %3962 = vmatprep.subr.mxu1 %v3475_v58 }
 0xe9d   :  { %3963 = vmatpush3.msra.mxu1 %v3475_v58 }
 0xe9e   :  { %3986 = vmatprep.subr.mxu1 %v4252_v51 }
 0xf23   :  { %v1745_v24 = vpop.xlane.xlu0 %1744 }
 0xf24   :  { %v1747_v27 = vmul.f32 0.03125, %v1745_v24 }
 0xf25   :  { %v1742_v16 = vpop.xlane.xlu1 %1741 }
 0xf26   :  { %v1749_v12 = vadd.f32 1e-05, %v1747_v27  ;;  %v1746_v30 = vmul.f32 0.03125, %v1742_v16 }
 0xf28   :  { %4204 = vrsqrt.f32 %v1749_v12  ;;  %v1748_v34 = vadd.f32 1e-05, %v1746_v30  ;;  %v3474_v12 = vld [vmem:[%s4491_s4] ss:$0 sm:$0xff] }
 0xf2a   :  { %4206 = vrsqrt.f32 %v1748_v34 }
 0xf35   :  { %v4205_v37 = vpop.eup %4204 }
 0xf36   :  { %v1753_v42 = vmul.f32 %v4205_v37, %v1737_v4 }
 0xf37   :  { %v4207_v44 = vpop.eup %4206 }
 0xf38   :  { %v1761_v47 = vmul.f32 %v3471_v40, %v1753_v42  ;;  %v1752_v28 = vmul.f32 %v4207_v44, %v1736_v50  ;;  %v4254_v42 = vld [vmem:[%s4371_s25 + $0x28] sm:$0xff]  ;;  %v4255_v44 = vld [vmem:[%s4371_s25 + $0x20] sm:$0xff] }
 0xf3a   :  { %v1769_v10 = vadd.f32 %v3472_v45, %v1761_v47  ;;  %v1760_v49 = vmul.f32 %v3471_v40, %v1752_v28  ;;  %v4253_v40 = vld [vmem:[%s4371_s25 + $0x30] sm:$0xff]  ;;  %v4258_v28 = vld [vmem:[%s4371_s25 + $0x8] sm:$0xff] }
 0xf3b   :  { %v4257_v47 = vld [vmem:[%s4371_s25 + $0x10] sm:$0xff] }
 0xf3c   :  { %v1771_v2 = vadd.f32 %v1769_v10, %v4870_v48  ;;  %v1768_v25 = vadd.f32 %v3472_v45, %v1760_v49  ;;  %v4256_v45 = vld [vmem:[%s4371_s25 + $0x18] sm:$0xff]  ;;  %v4259_v10 = vld [vmem:[%s4371_s25] sm:$0xff] }
 0xf3d   :  { %v3480_v49 = vld [vmem:[%s4391_s14 + $0x1] ss:$0 sm:$0xff] }
 0xf3e   :  { %v1773_v55 = vadd.f32 %v1771_v2, %v4870_v48  ;;  %v1770_v11 = vadd.f32 %v1768_v25, %v4866_v46 }
 0xf40   :  { %v1779_v52 = vsel %vm178_vm0, %v1773_v55, 0.0  ;;  %v1772_v54 = vadd.f32 %v1770_v11, %v4866_v46 }
 0xf41   :  { %1780 = vadd.xlane.f32.xlu0 %v1779_v52 }
 0xf42   :  { %v1776_v56 = vsel %vm178_vm0, %v1772_v54, 0.0 }
 0xf43   :  { %1777 = vadd.xlane.f32.xlu1 %v1776_v56 }
 0xfca   :  { %v1781_v59 = vpop.xlane.xlu0 %1780 }
 0xfcb   :  { %v1783_v60 = vmul.f32 0.03125, %v1781_v59 }
 0xfcc   :  { %v1778_v9 = vpop.xlane.xlu1 %1777 }
 0xfcd   :  { %v1785_v7 = vsub.f32 %v1773_v55, %v1783_v60  ;;  %v1782_v14 = vmul.f32 0.03125, %v1778_v9 }
 0xfcf   :  { %v1784_v48 = vsub.f32 %v1772_v54, %v1782_v14  ;;  %v1787_v61 = vmul.f32 %v1785_v7, %v1785_v7 }
 0xfd1   :  { %v1791_v62 = vsel %vm178_vm0, %v1787_v61, 0.0  ;;  %v1786_v63 = vmul.f32 %v1784_v48, %v1784_v48  ;;  %v4260_v61 = vld [vmem:[%s4356_s13 + $0x8] sm:$0xff] }
 0xfd2   :  { %1792 = vadd.xlane.f32.xlu0 %v1791_v62 }
 0xfd3   :  { %v1788_v46 = vsel %vm178_vm0, %v1786_v63, 0.0 }
 0xfd4   :  { %1789 = vadd.xlane.f32.xlu1 %v1788_v46  ;;  %v4261_v46 = vld [vmem:[%s4356_s13] sm:$0xff]  ;;  %s4335_s13 = smov [#allocation2]  }
0x105b   :  { %v1793_v6 = vpop.xlane.xlu0 %1792 }
0x105c   :  { %v1795_v3 = vmul.f32 0.03125, %v1793_v6 }
0x105d   :  { %v1790_v4 = vpop.xlane.xlu1 %1789 }
0x105e   :  { %v1797_v8 = vadd.f32 1e-05, %v1795_v3  ;;  %v1794_v50 = vmul.f32 0.03125, %v1790_v4 }
0x1060   :  { %4208 = vrsqrt.f32 %v1797_v8  ;;  %v1796_v13 = vadd.f32 1e-05, %v1794_v50 }
0x1062   :  { %4210 = vrsqrt.f32 %v1796_v13 }
0x106d   :  { %v4209_v17 = vpop.eup %4208 }
0x106e   :  { %v1801_v19 = vmul.f32 %v4209_v17, %v1785_v7 }
0x106f   :  { %v4211_v24 = vpop.eup %4210 }
0x1070   :  { %v1800_v27 = vmul.f32 %v4211_v24, %v1784_v48  ;;  %v1809_v16 = vmul.f32 %v3473_v18, %v1801_v19 }
0x1072   :  { %v1808_v30 = vmul.f32 %v3473_v18, %v1800_v27  ;;  %v4905_v37 = vadd.f32 %v3474_v12, %v1809_v16 }
0x1074   :  { %v4903_v34 = vadd.f32 %v3474_v12, %v1808_v30 }
0x1076   :  { %3964 = vmatprep.mubr.msk.f32.mxu1 %vm178_vm0, %v4903_v34 }
0x1077   :  { %3965 = vmatmul.mubr.msk.f32.vlgmr.msra.gmra.mxu1 %vm178_vm0, %v4905_v37 }
0x1078   :  { %3987 = vmatpush3.msra.mxu1 %v4252_v51 }
0x1079   :  { %3988 = vmatprep.subr.mxu1 %v4253_v40 }
0x107a   :  { %3989 = vmatpush3.msra.mxu1 %v4253_v40  ;;  %v3486_v40 = vld [vmem:[%s4396_s19 + $0x38] sm:$0xff] }
0x107b   :  { %3990 = vmatprep.subr.mxu1 %v4254_v42 }
0x107c   :  { %3991 = vmatpush3.msra.mxu1 %v4254_v42  ;;  %v3485_v42 = vld [vmem:[%s4396_s19 + $0x30] sm:$0xff] }
0x107d   :  { %3992 = vmatprep.subr.mxu1 %v4255_v44 }
0x107e   :  { %3993 = vmatpush3.msra.mxu1 %v4255_v44 }
0x107f   :  { %3994 = vmatprep.subr.mxu1 %v4256_v45 }
0x1080   :  { %3995 = vmatpush3.msra.mxu1 %v4256_v45 }
0x1081   :  { %3996 = vmatprep.subr.mxu1 %v4257_v47 }
0x1082   :  { %3997 = vmatpush3.msra.mxu1 %v4257_v47 }
0x1083   :  { %3998 = vmatprep.subr.mxu1 %v4258_v28 }
0x1084   :  { %3999 = vmatpush3.msra.mxu1 %v4258_v28 }
0x1085   :  { %4000 = vmatprep.subr.mxu1 %v4259_v10 }
0x1086   :  { %4001 = vmatpush3.msra.mxu1 %v4259_v10 }
0x1137   :  { %v3966_v2 = vpop.f32.mrf.mxu1 }
0x1138   :  { %v4919_v25 = vadd.f32 %v3966_v2, %v3480_v49  ;;  %v3484_v2 = vld [vmem:[%s4396_s19 + $0x28] sm:$0xff] }
0x1139   :  { %v1903_v55 = vpop.f32.mrf.mxu1 }
0x113a   :  { %v1904_v11 = vadd.f32 %v3480_v49, %v1903_v55  ;;  %v1926_v52 = vmul.f32 %v4919_v25, %v4560_v20  ;;  %v1924_v56 = vmul.f32 %v4919_v25, %v4562_v21  ;;  %v1922_v59 = vmul.f32 %v4919_v25, %v4580_v31 }
0x113b   :  { %v1920_v60 = vmul.f32 %v4919_v25, %v4593_v36  ;;  %v1934_v6 = vmul.f32 %v4919_v25, %v4678_v29  ;;  %v1932_v4 = vmul.f32 %v4919_v25, %v4688_v32  ;;  %v1928_v29 = vmul.f32 %v4919_v25, %v4708_v43 }
0x113c   :  { %1957 = vrot.lane.b32.xlu1 %v1926_v52, %s4333_s5  ;;  %3983 = vmatprep.mubr.msk.f32.mxu0 %vm178_vm0, %v1904_v11  ;;  %v1925_v54 = vmul.f32 %v1904_v11, %v4565_v23  ;;  %v1923_v20 = vmul.f32 %v1904_v11, %v4569_v26  ;;  %v1921_v23 = vmul.f32 %v1904_v11, %v4585_v33  ;;  %v3502_v52 = vld [vmem:[%s4401_s24 + $0x1] ss:$0 sm:$0xff] }
0x113d   :  { %v1919_v21 = vmul.f32 %v1904_v11, %v4598_v38  ;;  %v1933_v58 = vmul.f32 %v1904_v11, %v4674_v5  ;;  %v1931_v51 = vmul.f32 %v1904_v11, %v4683_v15  ;;  %v1929_v3 = vmul.f32 %v1904_v11, %v4693_v35 }
0x113e   :  { %1955 = vrot.lane.b32.xlu0 %v1925_v54, %s4333_s5  ;;  %v1927_v5 = vmul.f32 %v1904_v11, %v4703_v41  ;;  %v1930_v15 = vmul.f32 %v4919_v25, %v4698_v39 }
0x1140   :  { %1953 = vrot.lane.b32.xlu1 %v1924_v56, %s4333_s5 }
0x1142   :  { %1949 = vrot.lane.b32.xlu0 %v1922_v59, %s4333_s5 }
0x1144   :  { %1951 = vrot.lane.b32.xlu1 %v1923_v20, %s4333_s5 }
0x1146   :  { %1945 = vrot.lane.b32.xlu0 %v1920_v60, %s4333_s5 }
0x1148   :  { %1947 = vrot.lane.b32.xlu1 %v1921_v23, %s4333_s5 }
0x114c   :  { %1943 = vrot.lane.b32.xlu1 %v1919_v21, %s4333_s5 }
0x11ae   :  { %v1958_v31 = vpop.permute.xlu1 %1957 }
0x11af   :  { %3967 = vmatprep.subr.msk.mxu0 %vm178_vm0, %v1958_v31 }
0x11b0   :  { %3968 = vmatpush3.xpose.msk.msra.mxu0 %vm178_vm0, %v1958_v31  ;;  %v1956_v26 = vpop.permute.xlu0 %1955 }
0x11b1   :  { %3969 = vmatprep.subr.msk.mxu0 %vm178_vm0, %v1956_v26 }
0x11b2   :  { %v1954_v9 = vpop.permute.xlu1 %1953 }
0x11b4   :  { %3970 = vmatpush3.xpose.msk.msra.mxu0 %vm178_vm0, %v1956_v26  ;;  %v1950_v36 = vpop.permute.xlu0 %1949  ;;  %v5000_v26 = vld [vmem:[%s4376_s29 + $0x38] sm:$0xff] }
0x11b5   :  { %3971 = vmatprep.subr.msk.mxu0 %vm178_vm0, %v1954_v9 }
0x11b6   :  { %v1952_v33 = vpop.permute.xlu1 %1951 }
0x11b8   :  { %3972 = vmatpush3.xpose.msk.msra.mxu0 %vm178_vm0, %v1954_v9  ;;  %v1946_v7 = vpop.permute.xlu0 %1945  ;;  %v5005_v9 = vld [vmem:[%s4376_s29 + $0x28] sm:$0xff] }
0x11b9   :  { %3973 = vmatprep.subr.msk.mxu0 %vm178_vm0, %v1952_v33 }
0x11ba   :  { %v1948_v38 = vpop.permute.xlu1 %1947 }
0x11bc   :  { %3974 = vmatpush3.xpose.msk.msra.mxu0 %vm178_vm0, %v1952_v33  ;;  %v5010_v33 = vld [vmem:[%s4376_s29 + $0x20] sm:$0xff] }
0x11bd   :  { %3975 = vmatprep.subr.msk.mxu0 %vm178_vm0, %v1950_v36 }
0x11be   :  { %v1944_v14 = vpop.permute.xlu1 %1943 }
0x11c0   :  { %3976 = vmatpush3.xpose.msk.msra.mxu0 %vm178_vm0, %v1950_v36 }
0x11c1   :  { %3977 = vmatprep.subr.msk.mxu0 %vm178_vm0, %v1948_v38 }
0x11c4   :  { %3978 = vmatpush3.xpose.msk.msra.mxu0 %vm178_vm0, %v1948_v38 }
0x11c5   :  { %3979 = vmatprep.subr.msk.mxu0 %vm178_vm0, %v1946_v7 }
0x11c8   :  { %3980 = vmatpush3.xpose.msk.msra.mxu0 %vm178_vm0, %v1946_v7 }
0x11c9   :  { %3981 = vmatprep.subr.msk.mxu0 %vm178_vm0, %v1944_v14 }
0x11cc   :  { %3982 = vmatpush3.xpose.msk.msra.mxu0 %vm178_vm0, %v1944_v14 }
0x11cd   :  { %4024 = vmatprep.subr.mxu0 %v3486_v40 }
0x11cf   :  { %3984 = vmatmul.mubr.msk.f32.vlgmr.msra.gmra.mxu0 %vm178_vm0, %v4919_v25  ;;  %v3483_v25 = vld [vmem:[%s4396_s19 + $0x20] sm:$0xff] }
0x11d0   :  { %4025 = vmatpush3.msra.mxu0 %v3486_v40 }
0x11d1   :  { %4026 = vmatprep.subr.mxu0 %v3485_v42 }
0x11d2   :  { %4027 = vmatpush3.msra.mxu0 %v3485_v42 }
0x11d3   :  { %4028 = vmatprep.subr.mxu0 %v3484_v2 }
0x11d4   :  { %4029 = vmatpush3.msra.mxu0 %v3484_v2 }
0x11d5   :  { %4030 = vmatprep.subr.mxu0 %v3483_v25 }
0x11d6   :  { %4031 = vmatpush3.msra.mxu0 %v3483_v25 }
0x128f   :  { %v3985_v48 = vpop.f32.mrf.mxu0 }
0x1290   :  { %v2053_v62 = vadd.f32 %v4260_v61, %v3985_v48 }
0x1291   :  { %v2047_v63 = vpop.f32.mrf.mxu0 }
0x1292   :  { %v2048_v1 = vadd.f32 %v4261_v46, %v2047_v63  ;;  %v2059_v57 = vsel %vm550_vm1, %v2053_v62, -inf }
0x1293   :  { %2060 = vmax.xlane.f32.xlu1 %v2059_v57  ;;  %v5031_v57 = vld [vmem:[%s4376_s29 + $0x30] sm:$0xff] }
0x1294   :  { %v2056_v22 = vsel %vm550_vm1, %v2048_v1, -inf }
0x1295   :  { %2057 = vmax.xlane.f32.xlu0 %v2056_v22  ;;  %v3512_v22 = vld [vmem:[%s4406_s30 + $0x38] sm:$0xff] }
0x12a4   :  { %2173 = vrot.lane.b32.xlu1 %v1933_v58, %s4334_s9  ;;  %v5037_v58 = vld [vmem:[%s4376_s29 + $0x18] sm:$0xff] }
0x12a8   :  { %2169 = vrot.lane.b32.xlu1 %v1931_v51, %s4334_s9 }
0x12ab   :  { %2175 = vrot.lane.b32.xlu0 %v1934_v6, %s4334_s9  ;;  %v3511_v6 = vld [vmem:[%s4406_s30 + $0x30] sm:$0xff] }
0x12ac   :  { %2165 = vrot.lane.b32.xlu1 %v1929_v3, %s4334_s9  ;;  %v3510_v3 = vld [vmem:[%s4406_s30 + $0x28] sm:$0xff] }
0x12af   :  { %2171 = vrot.lane.b32.xlu0 %v1932_v4, %s4334_s9  ;;  %v5044_v4 = vld [vmem:[%s4376_s29 + $0x8] sm:$0xff] }
0x12b0   :  { %2161 = vrot.lane.b32.xlu1 %v1927_v5, %s4334_s9 }
0x12b3   :  { %2167 = vrot.lane.b32.xlu0 %v1930_v15, %s4334_s9  ;;  %v3509_v15 = vld [vmem:[%s4406_s30 + $0x20] sm:$0xff] }
0x12b7   :  { %2163 = vrot.lane.b32.xlu0 %v1928_v29, %s4334_s9 }
0x131c   :  { %v2061_v35 = vpop.xlane.xlu1 %2060 }
0x131d   :  { %v2063_v8 = vsub.f32 %v2053_v62, %v2061_v35  ;;  %v4270_v35 = vld [vmem:[%s5227_s15 + $0x38] sm:$0xff] }
0x131e   :  { %v2058_v50 = vpop.xlane.xlu0 %2057 }
0x131f   :  { %v2062_v32 = vsub.f32 %v2048_v1, %v2058_v50  ;;  %v2066_v13 = vmul.f32 1.442695, %v2063_v8 }
0x1320   :  { %v2174_v18 = vpop.permute.xlu1 %2173 }
0x1321   :  { %v2064_v41 = vmul.f32 1.442695, %v2062_v32 }
0x1322   :  { %v2176_v17 = vpop.permute.xlu0 %2175 }
0x1323   :  { %4212 = vpow2.f32 %v2064_v41  ;;  %4005 = vmatprep.subr.mxu1 %v2176_v17 }
0x1324   :  { %4214 = vpow2.f32 %v2066_v13  ;;  %v2170_v43 = vpop.permute.xlu1 %2169 }
0x1326   :  { %v2172_v24 = vpop.permute.xlu0 %2171 }
0x1328   :  { %v2166_v16 = vpop.permute.xlu1 %2165 }
0x132a   :  { %v2168_v27 = vpop.permute.xlu0 %2167 }
0x132c   :  { %v2162_v30 = vpop.permute.xlu1 %2161 }
0x132e   :  { %v2164_v12 = vpop.permute.xlu0 %2163 }
0x1330   :  { %v4213_v19 = vpop.eup %4212 }
0x1331   :  { %v4215_v39 = vpop.eup %4214  ;;  %4002 = vmatprep.mubr.msk.f32.mxu1 %vm550_vm1, %v4213_v19 }
0x1332   :  { %4003 = vmatmul.mubr.msk.f32.vlgmr.msra.gmra.mxu1 %vm550_vm1, %v4215_v39 }
0x1333   :  { %4006 = vmatpush3.msra.mxu1 %v2176_v17 }
0x1334   :  { %4007 = vmatprep.subr.mxu1 %v2174_v18 }
0x1335   :  { %4008 = vmatpush3.msra.mxu1 %v2174_v18 }
0x1336   :  { %4009 = vmatprep.subr.mxu1 %v2172_v24 }
0x1337   :  { %4010 = vmatpush3.msra.mxu1 %v2172_v24 }
0x1338   :  { %4011 = vmatprep.subr.mxu1 %v2170_v43 }
0x1339   :  { %4012 = vmatpush3.msra.mxu1 %v2170_v43 }
0x133a   :  { %4013 = vmatprep.subr.mxu1 %v2168_v27 }
0x133b   :  { %4014 = vmatpush3.msra.mxu1 %v2168_v27 }
0x133c   :  { %4015 = vmatprep.subr.mxu1 %v2166_v16 }
0x133d   :  { %4016 = vmatpush3.msra.mxu1 %v2166_v16 }
0x133e   :  { %4017 = vmatprep.subr.mxu1 %v2164_v12 }
0x133f   :  { %4018 = vmatpush3.msra.mxu1 %v2164_v12 }
0x1340   :  { %4019 = vmatprep.subr.mxu1 %v2162_v30 }
0x1341   :  { %4020 = vmatpush3.msra.mxu1 %v2162_v30 }
0x1342   :  { %4035 = vmatprep.subr.mxu1 %v3512_v22 }
0x13f2   :  { %v4004_v44 = vpop.f32.mrf.mxu1 }
0x13f3   :  { %4216 = vrcp.f32 %v4004_v44 }
0x13f4   :  { %v2140_v45 = vpop.f32.mrf.mxu1 }
0x13f5   :  { %4218 = vrcp.f32 %v2140_v45 }
0x1400   :  { %v4217_v47 = vpop.eup %4216 }
0x1401   :  { %v2152_v49 = vmul.f32 %v4217_v47, %v4215_v39  ;;  %v3507_v47 = vld [vmem:[%s4466_s27 + $0x1] ss:$0 sm:$0xff] }
0x1402   :  { %v4219_v28 = vpop.eup %4218 }
0x1403   :  { %v2151_v10 = vmul.f32 %v4219_v28, %v4213_v19 }
0x1405   :  { %4021 = vmatprep.mubr.msk.f32.mxu1 %vm550_vm1, %v2151_v10 }
0x1406   :  { %4022 = vmatmul.mubr.msk.f32.vlgmr.msra.gmra.mxu1 %vm550_vm1, %v2152_v49  ;;  %v3508_v49 = vld [vmem:[%s5224_s21 + $0x1] ss:$0 sm:$0xff] }
0x1407   :  { %4036 = vmatpush3.msra.mxu1 %v3512_v22 }
0x1408   :  { %4037 = vmatprep.subr.mxu1 %v3511_v6 }
0x1409   :  { %4038 = vmatpush3.msra.mxu1 %v3511_v6 }
0x140a   :  { %4039 = vmatprep.subr.mxu1 %v3510_v3 }
0x140b   :  { %4040 = vmatpush3.msra.mxu1 %v3510_v3 }
0x140c   :  { %4041 = vmatprep.subr.mxu1 %v3509_v15 }
0x140d   :  { %4042 = vmatpush3.msra.mxu1 %v3509_v15 }
0x140e   :  { %4065 = vmatprep.subr.mxu1 %v4270_v35 }
0x14c6   :  { %v4023_v55 = vpop.f32.mrf.mxu1 }
0x14c8   :  { %v2257_v11 = vpop.f32.mrf.mxu1 }
0x14c9   :  { %4032 = vmatprep.mubr.msk.f32.mxu0 %vm178_vm0, %v2257_v11 }
0x14ca   :  { %4033 = vmatmul.mubr.msk.f32.vlgmr.msra.gmra.mxu0 %vm178_vm0, %v4023_v55 }
0x158a   :  { %v4034_v54 = vpop.f32.mrf.mxu0 }
0x158b   :  { %v2350_v56 = vadd.f32 %v4034_v54, %v3502_v52 }
0x158c   :  { %v2344_v59 = vpop.f32.mrf.mxu0 }
0x158d   :  { %v2345_v20 = vadd.f32 %v3502_v52, %v2344_v59  ;;  %v2354_v60 = vadd.f32 %v2350_v56, %v4905_v37  ;;  %v5020_v37 = vld [vmem:[%s4376_s29] sm:$0xff]  ;;  %v4271_v59 = vld [vmem:[%s5227_s15 + $0x30] sm:$0xff] }
0x158f   :  { %v2362_v23 = vsel %vm178_vm0, %v2354_v60, 0.0  ;;  %v2353_v21 = vadd.f32 %v2345_v20, %v4903_v34  ;;  %v5015_v34 = vld [vmem:[%s4376_s29 + $0x10] sm:$0xff]  ;;  %v4272_v20 = vld [vmem:[%s5227_s15 + $0x28] sm:$0xff] }
0x1590   :  { %2363 = vadd.xlane.f32.xlu1 %v2362_v23  ;;  %v4274_v23 = vld [vmem:[%s5227_s15 + $0x18] sm:$0xff] }
0x1591   :  { %v2359_v31 = vsel %vm178_vm0, %v2353_v21, 0.0 }
0x1592   :  { %2360 = vadd.xlane.f32.xlu0 %v2359_v31  ;;  %v4276_v31 = vld [vmem:[%s5227_s15 + $0x8] sm:$0xff] }
0x15a1   :  { %2516 = vrot.lane.b32.xlu1 %v5000_v26, %s4334_s9 }
0x15a5   :  { %2512 = vrot.lane.b32.xlu1 %v5005_v9, %s4334_s9 }
0x15a9   :  { %2510 = vrot.lane.b32.xlu1 %v5010_v33, %s4334_s9 }
0x15ad   :  { %2506 = vrot.lane.b32.xlu1 %v5015_v34, %s4334_s9 }
0x15b1   :  { %2502 = vrot.lane.b32.xlu1 %v5020_v37, %s4334_s9 }
0x1619   :  { %v2364_v36 = vpop.xlane.xlu1 %2363 }
0x161a   :  { %v2366_v38 = vmul.f32 0.03125, %v2364_v36  ;;  %v4277_v36 = vld [vmem:[%s5227_s15] sm:$0xff] }
0x161b   :  { %v2361_v7 = vpop.xlane.xlu0 %2360 }
0x161c   :  { %v2365_v14 = vmul.f32 0.03125, %v2361_v7  ;;  %v5024_v48 = vsub.f32 %v2354_v60, %v2366_v38  ;;  %v4273_v60 = vld [vmem:[%s5227_s15 + $0x20] sm:$0xff] }
0x161d   :  { %v2517_v51 = vpop.permute.xlu1 %2516 }
0x161e   :  { %v2367_v61 = vsub.f32 %v2353_v21, %v2365_v14  ;;  %v2370_v46 = vmul.f32 %v5024_v48, %v5024_v48  ;;  %v2533_v5 = vmul.f32 %v2517_v51, %v4631_v53  ;;  %v4275_v21 = vld [vmem:[%s5227_s15 + $0x10] sm:$0xff] }
0x1620   :  { %v2369_v62 = vmul.f32 %v2367_v61, %v2367_v61  ;;  %v2374_v1 = vsel %vm178_vm0, %v2370_v46, 0.0 }
0x1621   :  { %v2513_v29 = vpop.permute.xlu1 %2512 }
0x1622   :  { %v2371_v63 = vsel %vm178_vm0, %v2369_v62, 0.0  ;;  %v2531_v8 = vmul.f32 %v2513_v29, %v4631_v53 }
0x1623   :  { %2372 = vadd.xlane.f32.xlu0 %v2371_v63 }
0x1625   :  { %v2511_v18 = vpop.permute.xlu1 %2510 }
0x1626   :  { %v2530_v16 = vmul.f32 %v2511_v18, %v4720_v0 }
0x1627   :  { %2375 = vadd.xlane.f32.xlu0 %v2374_v1  ;;  %v3514_v1 = vld [vmem:[%s5225_s12 + $0x1] ss:$0 sm:$0xff] }
0x1629   :  { %v2507_v43 = vpop.permute.xlu1 %2506 }
0x162a   :  { %v2528_v40 = vmul.f32 %v2507_v43, %v4720_v0 }
0x162d   :  { %v2503_v45 = vpop.permute.xlu1 %2502 }
0x162e   :  { %v2526_v2 = vmul.f32 %v2503_v45, %v4720_v0 }
0x163d   :  { %2514 = vrot.lane.b32.xlu0 %v5031_v57, %s4334_s9 }
0x1641   :  { %2508 = vrot.lane.b32.xlu0 %v5037_v58, %s4334_s9 }
0x1645   :  { %2504 = vrot.lane.b32.xlu0 %v5044_v4, %s4334_s9 }
0x1649   :  { %2588 = vrot.lane.b32.xlu0 %v2533_v5, %s4334_s9  ;;  %v4278_v5 = vld [vmem:[%s5226_s20 + $0x8] sm:$0xff] }
0x164d   :  { %2584 = vrot.lane.b32.xlu0 %v2531_v8, %s4334_s9 }
0x16ac   :  { %v2373_v50 = vpop.xlane.xlu0 %2372 }
0x16ad   :  { %v2377_v32 = vmul.f32 0.03125, %v2373_v50 }
0x16af   :  { %v2379_v13 = vadd.f32 1e-05, %v2377_v32 }
0x16b0   :  { %v2376_v41 = vpop.xlane.xlu0 %2375 }
0x16b1   :  { %4220 = vrsqrt.f32 %v2379_v13  ;;  %v2378_v17 = vmul.f32 0.03125, %v2376_v41 }
0x16b3   :  { %v2380_v19 = vadd.f32 1e-05, %v2378_v17 }
0x16b4   :  { %v2515_v39 = vpop.permute.xlu0 %2514 }
0x16b5   :  { %4222 = vrsqrt.f32 %v2380_v19  ;;  %v2532_v24 = vmul.f32 %v2515_v39, %v4720_v0 }
0x16b7   :  { %2586 = vrot.lane.b32.xlu1 %v2532_v24, %s4334_s9 }
0x16b8   :  { %v2509_v27 = vpop.permute.xlu0 %2508 }
0x16b9   :  { %v2529_v12 = vmul.f32 %v2509_v27, %v4631_v53 }
0x16bb   :  { %2582 = vrot.lane.b32.xlu1 %v2530_v16, %s4334_s9  ;;  %2580 = vrot.lane.b32.xlu0 %v2529_v12, %s4334_s9 }
0x16bc   :  { %v2505_v30 = vpop.permute.xlu0 %2504 }
0x16bd   :  { %v2527_v42 = vmul.f32 %v2505_v30, %v4631_v53 }
0x16be   :  { %v4221_v44 = vpop.eup %4220 }
0x16bf   :  { %2578 = vrot.lane.b32.xlu1 %v2528_v40, %s4334_s9  ;;  %2576 = vrot.lane.b32.xlu0 %v2527_v42, %s4334_s9  ;;  %v2383_v28 = vmul.f32 %v4221_v44, %v2367_v61 }
0x16c0   :  { %v2589_v10 = vpop.permute.xlu0 %2588 }
0x16c1   :  { %4046 = vmatprep.subr.msk.mxu0 %vm178_vm0, %v2589_v10  ;;  %v2391_v25 = vmul.f32 %v3507_v47, %v2383_v28  ;;  %v3519_v28 = vld [vmem:[%s5228_s16 + $0x30] sm:$0xff] }
0x16c2   :  { %v4223_v55 = vpop.eup %4222  ;;  %4047 = vmatpush3.xpose.msk.msra.mxu0 %vm178_vm0, %v2589_v10 }
0x16c3   :  { %2574 = vrot.lane.b32.xlu1 %v2526_v2, %s4334_s9  ;;  %v2384_v11 = vmul.f32 %v4223_v55, %v5024_v48  ;;  %v5071_v52 = vadd.f32 %v3508_v49, %v2391_v25 }
0x16c4   :  { %v2585_v7 = vpop.permute.xlu0 %2584 }
0x16c5   :  { %v2392_v54 = vmul.f32 %v3507_v47, %v2384_v11  ;;  %4043 = vmatprep.mubr.msk.f32.mxu1 %vm178_vm0, %v5071_v52  ;;  %v3520_v47 = vld [vmem:[%s5228_s16 + $0x38] sm:$0xff] }
0x16c7   :  { %v5075_v56 = vadd.f32 %v3508_v49, %v2392_v54 }
0x16c9   :  { %4044 = vmatmul.mubr.msk.f32.vlgmr.msra.gmra.mxu1 %vm178_vm0, %v5075_v56 }
0x16ca   :  { %4066 = vmatpush3.msra.mxu1 %v4270_v35  ;;  %v4279_v35 = vld [vmem:[%s5226_s20] sm:$0xff] }
0x16cb   :  { %4067 = vmatprep.subr.mxu1 %v4271_v59 }
0x16cc   :  { %4068 = vmatpush3.msra.mxu1 %v4271_v59 }
0x16cd   :  { %4069 = vmatprep.subr.mxu1 %v4272_v20 }
0x16ce   :  { %4070 = vmatpush3.msra.mxu1 %v4272_v20 }
0x16cf   :  { %4071 = vmatprep.subr.mxu1 %v4273_v60 }
0x16d0   :  { %4072 = vmatpush3.msra.mxu1 %v4273_v60 }
0x16d1   :  { %4073 = vmatprep.subr.mxu1 %v4274_v23 }
0x16d2   :  { %4074 = vmatpush3.msra.mxu1 %v4274_v23 }
0x16d3   :  { %4075 = vmatprep.subr.mxu1 %v4275_v21 }
0x16d4   :  { %4076 = vmatpush3.msra.mxu1 %v4275_v21 }
0x16d5   :  { %4077 = vmatprep.subr.mxu1 %v4276_v31 }
0x16d6   :  { %4078 = vmatpush3.msra.mxu1 %v4276_v31  ;;  %v3518_v31 = vld [vmem:[%s5228_s16 + $0x28] sm:$0xff] }
0x16d7   :  { %4079 = vmatprep.subr.mxu1 %v4277_v36 }
0x16d8   :  { %4080 = vmatpush3.msra.mxu1 %v4277_v36  ;;  %v3517_v36 = vld [vmem:[%s5228_s16 + $0x20] sm:$0xff] }
0x1729   :  { %v2587_v38 = vpop.permute.xlu1 %2586 }
0x172a   :  { %4048 = vmatprep.subr.msk.mxu0 %vm178_vm0, %v2587_v38 }
0x172b   :  { %4049 = vmatpush3.xpose.msk.msra.mxu0 %vm178_vm0, %v2587_v38 }
0x172c   :  { %4050 = vmatprep.subr.msk.mxu0 %vm178_vm0, %v2585_v7 }
0x172d   :  { %v2583_v14 = vpop.permute.xlu1 %2582  ;;  %v2581_v48 = vpop.permute.xlu0 %2580 }
0x172f   :  { %4051 = vmatpush3.xpose.msk.msra.mxu0 %vm178_vm0, %v2585_v7 }
0x1730   :  { %4052 = vmatprep.subr.msk.mxu0 %vm178_vm0, %v2583_v14 }
0x1731   :  { %v2579_v61 = vpop.permute.xlu1 %2578  ;;  %v2577_v62 = vpop.permute.xlu0 %2576 }
0x1733   :  { %4053 = vmatpush3.xpose.msk.msra.mxu0 %vm178_vm0, %v2583_v14  ;;  %v3536_v14 = vld [vmem:[%s5229_s18 + $0x1] ss:$0 sm:$0xff] }
0x1734   :  { %4054 = vmatprep.subr.msk.mxu0 %vm178_vm0, %v2581_v48 }
0x1735   :  { %v2575_v63 = vpop.permute.xlu1 %2574 }
0x1737   :  { %4055 = vmatpush3.xpose.msk.msra.mxu0 %vm178_vm0, %v2581_v48 }
0x1738   :  { %4056 = vmatprep.subr.msk.mxu0 %vm178_vm0, %v2579_v61 }
0x173b   :  { %4057 = vmatpush3.xpose.msk.msra.mxu0 %vm178_vm0, %v2579_v61 }
0x173c   :  { %4058 = vmatprep.subr.msk.mxu0 %vm178_vm0, %v2577_v62 }
0x173f   :  { %4059 = vmatpush3.xpose.msk.msra.mxu0 %vm178_vm0, %v2577_v62 }
0x1740   :  { %4060 = vmatprep.subr.msk.mxu0 %vm178_vm0, %v2575_v63 }
0x1743   :  { %4061 = vmatpush3.xpose.msk.msra.mxu0 %vm178_vm0, %v2575_v63 }
0x1744   :  { %4103 = vmatprep.subr.mxu0 %v3520_v47 }
0x1789   :  { %v4045_v46 = vpop.f32.mrf.mxu1 }
0x178a   :  { %v2492_v6 = vadd.f32 %v4045_v46, %v3514_v1 }
0x178b   :  { %v2486_v22 = vpop.f32.mrf.mxu1 }
0x178c   :  { %v2487_v51 = vadd.f32 %v3514_v1, %v2486_v22 }
0x178e   :  { %4062 = vmatprep.mubr.msk.f32.mxu0 %vm178_vm0, %v2487_v51 }
0x178f   :  { %4063 = vmatmul.mubr.msk.f32.vlgmr.msra.gmra.mxu0 %vm178_vm0, %v2492_v6 }
0x1790   :  { %4104 = vmatpush3.msra.mxu0 %v3520_v47 }
0x1791   :  { %4105 = vmatprep.subr.mxu0 %v3519_v28 }
0x1792   :  { %4106 = vmatpush3.msra.mxu0 %v3519_v28 }
0x1793   :  { %4107 = vmatprep.subr.mxu0 %v3518_v31 }
0x1794   :  { %4108 = vmatpush3.msra.mxu0 %v3518_v31 }
0x1795   :  { %4109 = vmatprep.subr.mxu0 %v3517_v36 }
0x1796   :  { %4110 = vmatpush3.msra.mxu0 %v3517_v36 }
0x184f   :  { %v4064_v3 = vpop.f32.mrf.mxu0 }
0x1850   :  { %v2684_v15 = vadd.f32 %v4278_v5, %v4064_v3 }
0x1851   :  { %v2678_v29 = vpop.f32.mrf.mxu0 }
0x1852   :  { %v2679_v8 = vadd.f32 %v4279_v35, %v2678_v29  ;;  %v2690_v50 = vsel %vm550_vm1, %v2684_v15, -inf }
0x1853   :  { %2691 = vmax.xlane.f32.xlu1 %v2690_v50 }
0x1854   :  { %v2687_v32 = vsel %vm550_vm1, %v2679_v8, -inf }
0x1855   :  { %2688 = vmax.xlane.f32.xlu0 %v2687_v32  ;;  %v3546_v32 = vld [vmem:[%s5230_s22 + $0x38] sm:$0xff] }
0x1864   :  { %2546 = vrot.lane.b32.xlu1 %v5031_v57, %s4333_s5 }
0x1868   :  { %2542 = vrot.lane.b32.xlu1 %v5010_v33, %s4333_s5 }
0x186b   :  { %2548 = vrot.lane.b32.xlu0 %v5000_v26, %s4333_s5 }
0x186c   :  { %2538 = vrot.lane.b32.xlu1 %v5015_v34, %s4333_s5 }
0x186f   :  { %2544 = vrot.lane.b32.xlu0 %v5005_v9, %s4333_s5 }
0x1870   :  { %2534 = vrot.lane.b32.xlu1 %v5020_v37, %s4333_s5 }
0x1873   :  { %2540 = vrot.lane.b32.xlu0 %v5037_v58, %s4333_s5 }
0x1877   :  { %2536 = vrot.lane.b32.xlu0 %v5044_v4, %s4333_s5 }
0x18dc   :  { %v2692_v57 = vpop.xlane.xlu1 %2691 }
0x18dd   :  { %v2694_v33 = vsub.f32 %v2684_v15, %v2692_v57  ;;  %v3545_v57 = vld [vmem:[%s5230_s22 + $0x30] sm:$0xff] }
0x18de   :  { %v2689_v13 = vpop.xlane.xlu0 %2688 }
0x18df   :  { %v2693_v41 = vsub.f32 %v2679_v8, %v2689_v13  ;;  %v2697_v26 = vmul.f32 1.442695, %v2694_v33  ;;  %v3544_v33 = vld [vmem:[%s5230_s22 + $0x28] sm:$0xff]  ;;  %v3543_v13 = vld [vmem:[%s5230_s22 + $0x20] sm:$0xff] }
0x18e0   :  { %v2547_v17 = vpop.permute.xlu1 %2546 }
0x18e1   :  { %v2695_v18 = vmul.f32 1.442695, %v2693_v41  ;;  %v2564_v34 = vmul.f32 %v2547_v17, %v4720_v0 }
0x18e2   :  { %v2549_v19 = vpop.permute.xlu0 %2548 }
0x18e3   :  { %4224 = vpow2.f32 %v2695_v18  ;;  %v2565_v9 = vmul.f32 %v2549_v19, %v4631_v53  ;;  %2804 = vrot.lane.b32.xlu1 %v2564_v34, %s4332_s0 }
0x18e4   :  { %4226 = vpow2.f32 %v2697_v26  ;;  %v2543_v37 = vpop.permute.xlu1 %2542 }
0x18e5   :  { %v2562_v58 = vmul.f32 %v2543_v37, %v4720_v0  ;;  %2806 = vrot.lane.b32.xlu0 %v2565_v9, %s4332_s0  ;;  %v3541_v37 = vld [vmem:[%s5231_s23 + $0x1] ss:$0 sm:$0xff] }
0x18e6   :  { %v2545_v4 = vpop.permute.xlu0 %2544 }
0x18e7   :  { %v2563_v39 = vmul.f32 %v2545_v4, %v4631_v53  ;;  %2800 = vrot.lane.b32.xlu1 %v2562_v58, %s4332_s0  ;;  %v3542_v4 = vld [vmem:[%s4481_s17 + $0x1] ss:$0 sm:$0xff]  ;;  %s3377_s17 = sshll.u32 %s4335_s13, 4  ;;  %s3378_s17 = int_to_ptr.vmem [resolvable:$true] %s3377_s17 }
0x18e8   :  { %v2539_v24 = vpop.permute.xlu1 %2538  ;;  %s4280_s25 = scalar_lea.vmem %s3378_s17, 256  ;;  %p4285_p1 = scmp.lt.s32.totalorder %s3378_s17, %s3378_s17 }
0x18e9   :  { %v2560_v43 = vmul.f32 %v2539_v24, %v4720_v0  ;;  %2802 = vrot.lane.b32.xlu0 %v2563_v39, %s4332_s0  ;;  %p4281_p0 = scmp.ne.s32.totalorder %s3378_s17, %s4280_s25  ;;  %p4286_p2 = scmp.lt.s32.totalorder %s4280_s25, %s4280_s25 }
0x18ea   :  { %v2541_v27 = vpop.permute.xlu0 %2540 }
0x18eb   :  { %v2561_v16 = vmul.f32 %v2541_v27, %v4631_v53  ;;  %2796 = vrot.lane.b32.xlu1 %v2560_v43, %s4332_s0  ;;  %p4287_p3 = por %p4286_p2, %p4285_p1 }
0x18ec   :  { %v2535_v12 = vpop.permute.xlu1 %2534 }
0x18ed   :  { %v2558_v30 = vmul.f32 %v2535_v12, %v4720_v0  ;;  %2798 = vrot.lane.b32.xlu0 %v2561_v16, %s4332_s0  ;;  %p4288_p4 = pnand %p4287_p3, %p4281_p0 }
0x18ee   :  { %v2537_v40 = vpop.permute.xlu0 %2536 }
0x18ef   :  { %v2559_v42 = vmul.f32 %v2537_v40, %v4631_v53  ;;  %2792 = vrot.lane.b32.xlu1 %v2558_v30, %s4332_s0  ;;  %v3554_v30 = vld [vmem:[%s5232_s26 + $0x38] sm:$0xff]  ;;  %v3553_v40 = vld [vmem:[%s5232_s26 + $0x30] sm:$0xff] }
0x18f0   :  { %v4225_v44 = vpop.eup %4224  ;;  %4125 = vmatprep.subr.mxu0 %v3554_v30 }
0x18f1   :  { %v4227_v45 = vpop.eup %4226  ;;  %4081 = vmatprep.mubr.msk.f32.mxu1 %vm550_vm1, %v4225_v44  ;;  %2794 = vrot.lane.b32.xlu0 %v2559_v42, %s4332_s0  ;;  %v3552_v42 = vld [vmem:[%s5232_s26 + $0x28] sm:$0xff] }
0x18f2   :  { %4082 = vmatmul.mubr.msk.f32.vlgmr.msra.gmra.mxu1 %vm550_vm1, %v4227_v45 }
0x1955   :  { %v2805_v0 = vpop.permute.xlu1 %2804 }
0x1957   :  { %v2807_v10 = vpop.permute.xlu0 %2806 }
0x1958   :  { %4084 = vmatprep.subr.mxu1 %v2807_v10 }
0x1959   :  { %v2801_v53 = vpop.permute.xlu1 %2800  ;;  %4085 = vmatpush3.msra.mxu1 %v2807_v10 }
0x195a   :  { %4086 = vmatprep.subr.mxu1 %v2805_v0 }
0x195b   :  { %4087 = vmatpush3.msra.mxu1 %v2805_v0  ;;  %v2803_v49 = vpop.permute.xlu0 %2802 }
0x195c   :  { %4088 = vmatprep.subr.mxu1 %v2803_v49 }
0x195d   :  { %4089 = vmatpush3.msra.mxu1 %v2803_v49  ;;  %v2797_v2 = vpop.permute.xlu1 %2796 }
0x195e   :  { %4090 = vmatprep.subr.mxu1 %v2801_v53 }
0x195f   :  { %4091 = vmatpush3.msra.mxu1 %v2801_v53  ;;  %v2799_v25 = vpop.permute.xlu0 %2798 }
0x1960   :  { %4092 = vmatprep.subr.mxu1 %v2799_v25 }
0x1961   :  { %4093 = vmatpush3.msra.mxu1 %v2799_v25  ;;  %v2793_v11 = vpop.permute.xlu1 %2792 }
0x1962   :  { %4094 = vmatprep.subr.mxu1 %v2797_v2 }
0x1963   :  { %4095 = vmatpush3.msra.mxu1 %v2797_v2  ;;  %v2795_v55 = vpop.permute.xlu0 %2794 }
0x1964   :  { %4096 = vmatprep.subr.mxu1 %v2795_v55 }
0x1965   :  { %4097 = vmatpush3.msra.mxu1 %v2795_v55 }
0x1966   :  { %4098 = vmatprep.subr.mxu1 %v2793_v11 }
0x1967   :  { %4099 = vmatpush3.msra.mxu1 %v2793_v11 }
0x1968   :  { %4114 = vmatprep.subr.mxu1 %v3546_v32 }
0x19b2   :  { %v4083_v54 = vpop.f32.mrf.mxu1 }
0x19b3   :  { %4228 = vrcp.f32 %v4083_v54 }
0x19b4   :  { %v2771_v59 = vpop.f32.mrf.mxu1 }
0x19b5   :  { %4230 = vrcp.f32 %v2771_v59 }
0x19c0   :  { %v4229_v20 = vpop.eup %4228 }
0x19c1   :  { %v2783_v21 = vmul.f32 %v4229_v20, %v4227_v45  ;;  %v3548_v45 = vld [vmem:[%s5233_s28 + $0x1] ss:$0 sm:$0xff] }
0x19c2   :  { %v4231_v60 = vpop.eup %4230 }
0x19c3   :  { %v2782_v23 = vmul.f32 %v4231_v60, %v4225_v44  ;;  %v3551_v44 = vld [vmem:[%s5232_s26 + $0x20] sm:$0xff] }
0x19c5   :  { %4100 = vmatprep.mubr.msk.f32.mxu1 %vm550_vm1, %v2782_v23 }
0x19c6   :  { %4101 = vmatmul.mubr.msk.f32.vlgmr.msra.gmra.mxu1 %vm550_vm1, %v2783_v21 }
0x19c7   :  { %4115 = vmatpush3.msra.mxu1 %v3546_v32 }
0x19c8   :  { %4116 = vmatprep.subr.mxu1 %v3545_v57 }
0x19c9   :  { %4117 = vmatpush3.msra.mxu1 %v3545_v57 }
0x19ca   :  { %4118 = vmatprep.subr.mxu1 %v3544_v33 }
0x19cb   :  { %4119 = vmatpush3.msra.mxu1 %v3544_v33 }
0x19cc   :  { %4120 = vmatprep.subr.mxu1 %v3543_v13 }
0x19cd   :  { %4121 = vmatpush3.msra.mxu1 %v3543_v13 }
0x1a86   :  { %v4102_v38 = vpop.f32.mrf.mxu1 }
0x1a88   :  { %v2888_v7 = vpop.f32.mrf.mxu1 }
0x1a89   :  { %4111 = vmatprep.mubr.msk.f32.mxu0 %vm178_vm0, %v2888_v7 }
0x1a8a   :  { %4112 = vmatmul.mubr.msk.f32.vlgmr.msra.gmra.mxu0 %vm178_vm0, %v4102_v38 }
0x1a8b   :  { %4126 = vmatpush3.msra.mxu0 %v3554_v30 }
0x1a8c   :  { %4127 = vmatprep.subr.mxu0 %v3553_v40 }
0x1a8d   :  { %4128 = vmatpush3.msra.mxu0 %v3553_v40 }
0x1a8e   :  { %4129 = vmatprep.subr.mxu0 %v3552_v42 }
0x1a8f   :  { %4130 = vmatpush3.msra.mxu0 %v3552_v42 }
0x1a90   :  { %4131 = vmatprep.subr.mxu0 %v3551_v44 }
0x1a91   :  { %4132 = vmatpush3.msra.mxu0 %v3551_v44 }
0x1b4a   :  { %v4113_v48 = vpop.f32.mrf.mxu0 }
0x1b4b   :  { %v2981_v61 = vadd.f32 %v4113_v48, %v3536_v14 }
0x1b4c   :  { %v2975_v62 = vpop.f32.mrf.mxu0 }
0x1b4d   :  { %v2985_v63 = vadd.f32 %v2981_v61, %v5075_v56  ;;  %v2976_v46 = vadd.f32 %v3536_v14, %v2975_v62 }
0x1b4f   :  { %v2984_v1 = vadd.f32 %v2976_v46, %v5071_v52  ;;  %v2993_v22 = vsel %vm178_vm0, %v2985_v63, 0.0 }
0x1b50   :  { %2994 = vadd.xlane.f32.xlu1 %v2993_v22 }
0x1b51   :  { %v2990_v51 = vsel %vm178_vm0, %v2984_v1, 0.0 }
0x1b52   :  { %2991 = vadd.xlane.f32.xlu0 %v2990_v51 }
0x1bd9   :  { %v2995_v6 = vpop.xlane.xlu1 %2994 }
0x1bda   :  { %v2997_v3 = vmul.f32 0.03125, %v2995_v6 }
0x1bdb   :  { %v2992_v5 = vpop.xlane.xlu0 %2991 }
0x1bdc   :  { %v2996_v15 = vmul.f32 0.03125, %v2992_v5  ;;  %v2999_v29 = vsub.f32 %v2985_v63, %v2997_v3 }
0x1bde   :  { %v2998_v35 = vsub.f32 %v2984_v1, %v2996_v15  ;;  %v3001_v52 = vmul.f32 %v2999_v29, %v2999_v29 }
0x1be0   :  { %v3000_v56 = vmul.f32 %v2998_v35, %v2998_v35  ;;  %v3005_v50 = vsel %vm178_vm0, %v3001_v52, 0.0 }
0x1be2   :  { %v3002_v8 = vsel %vm178_vm0, %v3000_v56, 0.0 }
0x1be3   :  { %3003 = vadd.xlane.f32.xlu0 %v3002_v8 }
0x1be7   :  { %3006 = vadd.xlane.f32.xlu0 %v3005_v50 }
0x1c6c   :  { %v3004_v41 = vpop.xlane.xlu0 %3003 }
0x1c6d   :  { %v3008_v26 = vmul.f32 0.03125, %v3004_v41 }
0x1c6f   :  { %v3010_v17 = vadd.f32 1e-05, %v3008_v26 }
0x1c70   :  { %v3007_v18 = vpop.xlane.xlu0 %3006 }
0x1c71   :  { %4232 = vrsqrt.f32 %v3010_v17  ;;  %v3009_v34 = vmul.f32 0.03125, %v3007_v18 }
0x1c73   :  { %v3011_v19 = vadd.f32 1e-05, %v3009_v34 }
0x1c75   :  { %4234 = vrsqrt.f32 %v3011_v19 }
0x1c7e   :  { %v4233_v9 = vpop.eup %4232 }
0x1c7f   :  { %v3014_v58 = vmul.f32 %v4233_v9, %v2998_v35 }
0x1c81   :  { %v3022_v39 = vmul.f32 %v3541_v37, %v3014_v58 }
0x1c82   :  { %v4235_v24 = vpop.eup %4234 }
0x1c83   :  { %v3015_v43 = vmul.f32 %v4235_v24, %v2999_v29  ;;  %v5162_v27 = vadd.f32 %v3542_v4, %v3022_v39  ;;  %v3556_v24 = vld [vmem:[%s5234_s1 + $0x1] ss:$0 sm:$0xff] }
0x1c85   :  { %v3023_v16 = vmul.f32 %v3541_v37, %v3015_v43  ;;  %4122 = vmatprep.mubr.msk.f32.mxu1 %vm178_vm0, %v5162_v27 }
0x1c87   :  { %v5166_v12 = vadd.f32 %v3542_v4, %v3023_v16 }
0x1c89   :  { %4123 = vmatmul.mubr.msk.f32.vlgmr.msra.gmra.mxu1 %vm178_vm0, %v5166_v12 }
0x1d49   :  { %v4124_v47 = vpop.f32.mrf.mxu1 }
0x1d4a   :  { %v3123_v28 = vadd.f32 %v4124_v47, %v3548_v45 }
0x1d4b   :  { %v3117_v0 = vpop.f32.mrf.mxu1 }
0x1d4c   :  { %v3129_v10 = vmul.f32 0.70710677, %v3123_v28  ;;  %v3118_v53 = vadd.f32 %v3548_v45, %v3117_v0  ;;  %v3127_v58 = vmul.f32 0.5, %v3123_v28 }
0x1d4e   :  { %v3131_v49 = vand.u32 2147483647, %v3129_v10  ;;  %v3128_v2 = vmul.f32 0.70710677, %v3118_v53  ;;  %vm3171_vm4 = vcmp.lt.f32.partialorder %v3129_v10, 0.0  ;;  %v3126_v9 = vmul.f32 0.5, %v3118_v53 }
0x1d50   :  { %v3133_v25 = vmul.f32 0.3275911, %v3131_v49  ;;  %v3130_v55 = vand.u32 2147483647, %v3128_v2  ;;  %v3159_v20 = vmul.f32 %v3131_v49, %v3131_v49  ;;  %vm3170_vm5 = vcmp.lt.f32.partialorder %v3128_v2, 0.0 }
0x1d52   :  { %v3135_v11 = vadd.f32 1.0, %v3133_v25  ;;  %v3132_v54 = vmul.f32 0.3275911, %v3130_v55  ;;  %v3158_v60 = vmul.f32 %v3130_v55, %v3130_v55  ;;  %v3161_v23 = vsub.f32 0.0, %v3159_v20 }
0x1d54   :  { %4236 = vrcp.f32 %v3135_v11  ;;  %v3134_v59 = vadd.f32 1.0, %v3132_v54  ;;  %v3160_v31 = vsub.f32 0.0, %v3158_v60  ;;  %v3164_v38 = vmul.f32 1.442695, %v3161_v23 }
0x1d56   :  { %4238 = vrcp.f32 %v3134_v59  ;;  %v3162_v61 = vmul.f32 1.442695, %v3160_v31  ;;  %v3561_v31 = vld [vmem:[%s5235_s2 + $0x1] ss:$0 sm:$0xff] }
0x1d57   :  { %4240 = vpow2.f32 %v3164_v38 }
0x1d58   :  { %4242 = vpow2.f32 %v3162_v61 }
0x1d61   :  { %v4237_v21 = vpop.eup %4236 }
0x1d62   :  { %v3141_v36 = vmul.f32 1.0614054, %v4237_v21 }
0x1d63   :  { %v4239_v7 = vpop.eup %4238 }
0x1d64   :  { %v3143_v14 = vadd.f32 -1.4531521, %v3141_v36  ;;  %v3140_v48 = vmul.f32 1.0614054, %v4239_v7  ;;  %v4241_v8 = vpop.eup %4240 }
0x1d65   :  { %v4243_v57 = vpop.eup %4242 }
0x1d66   :  { %v3145_v62 = vmul.f32 %v4237_v21, %v3143_v14  ;;  %v3142_v63 = vadd.f32 -1.4531521, %v3140_v48 }
0x1d68   :  { %v3147_v46 = vadd.f32 1.4214138, %v3145_v62  ;;  %v3144_v1 = vmul.f32 %v4239_v7, %v3142_v63 }
0x1d6a   :  { %v3149_v22 = vmul.f32 %v4237_v21, %v3147_v46  ;;  %v3146_v51 = vadd.f32 1.4214138, %v3144_v1 }
0x1d6c   :  { %v3151_v6 = vadd.f32 -0.28449672, %v3149_v22  ;;  %v3148_v3 = vmul.f32 %v4239_v7, %v3146_v51 }
0x1d6e   :  { %v3153_v5 = vmul.f32 %v4237_v21, %v3151_v6  ;;  %v3150_v15 = vadd.f32 -0.28449672, %v3148_v3 }
0x1d70   :  { %v3155_v29 = vadd.f32 0.2548296, %v3153_v5  ;;  %v3152_v35 = vmul.f32 %v4239_v7, %v3150_v15 }
0x1d72   :  { %v3157_v56 = vmul.f32 %v4237_v21, %v3155_v29  ;;  %v3154_v52 = vadd.f32 0.2548296, %v3152_v35 }
0x1d74   :  { %v3167_v50 = vmul.f32 %v4241_v8, %v3157_v56  ;;  %v3156_v32 = vmul.f32 %v4239_v7, %v3154_v52  ;;  %v3562_v7 = vld [vmem:[%s5236_s7 + $0x1] ss:$0 sm:$0xff] }
0x1d76   :  { %v3169_v33 = vsub.f32 1.0, %v3167_v50  ;;  %v3166_v13 = vmul.f32 %v4243_v57, %v3156_v32 }
0x1d78   :  { %v3173_v41 = vsub.f32 0.0, %v3169_v33  ;;  %v3168_v26 = vsub.f32 1.0, %v3166_v13 }
0x1d7a   :  { %v3175_v17 = vsel %vm3171_vm4, %v3173_v41, %v3169_v33  ;;  %v3172_v18 = vsub.f32 0.0, %v3168_v26 }
0x1d7b   :  { %v3177_v34 = vadd.f32 1.0, %v3175_v17 }
0x1d7c   :  { %v3174_v19 = vsel %vm3170_vm5, %v3172_v18, %v3168_v26  ;;  %v3565_v18 = vld [vmem:[%s4486_s6 + $0x1] ss:$0 sm:$0xff] }
0x1d7d   :  { %v3176_v37 = vadd.f32 1.0, %v3174_v19  ;;  %v3179_v39 = vmul.f32 %v3177_v34, %v3127_v58 }
0x1d7f   :  { %v3178_v4 = vmul.f32 %v3176_v37, %v3126_v9  ;;  %v3566_v9 = vld [vmem:[%s4491_s4 + $0x1] ss:$0 sm:$0xff] }
0x1d81   :  { %4133 = vmatprep.mubr.msk.f32.mxu0 %vm178_vm0, %v3178_v4 }
0x1d82   :  { %4134 = vmatmul.mubr.msk.f32.vlgmr.msra.gmra.mxu0 %vm178_vm0, %v3179_v39 }
0x1e42   :  { %v4135_v43 = vpop.f32.mrf.mxu0 }
0x1e43   :  { %v3271_v16 = vadd.f32 %v4135_v43, %v3556_v24 }
0x1e44   :  { %v3265_v30 = vpop.f32.mrf.mxu0 }
0x1e45   :  { %v3266_v40 = vadd.f32 %v3556_v24, %v3265_v30  ;;  %v3281_v42 = vsel %vm178_vm0, %v3271_v16, 0.0 }
0x1e46   :  { %3282 = vadd.xlane.f32.xlu0 %v3281_v42 }
0x1e47   :  { %v3278_v44 = vsel %vm178_vm0, %v3266_v40, 0.0 }
0x1e48   :  { %3279 = vadd.xlane.f32.xlu1 %v3278_v44 }
0x1ecf   :  { %v3283_v45 = vpop.xlane.xlu0 %3282 }
0x1ed0   :  { %v3285_v47 = vmul.f32 0.03125, %v3283_v45 }
0x1ed1   :  { %v3280_v28 = vpop.xlane.xlu1 %3279 }
0x1ed2   :  { %v3287_v0 = vsub.f32 %v3271_v16, %v3285_v47  ;;  %v3284_v10 = vmul.f32 0.03125, %v3280_v28 }
0x1ed4   :  { %v3286_v53 = vsub.f32 %v3266_v40, %v3284_v10  ;;  %v3289_v49 = vmul.f32 %v3287_v0, %v3287_v0 }
0x1ed6   :  { %v3293_v2 = vsel %vm178_vm0, %v3289_v49, 0.0  ;;  %v3288_v25 = vmul.f32 %v3286_v53, %v3286_v53 }
0x1ed7   :  { %3294 = vadd.xlane.f32.xlu0 %v3293_v2 }
0x1ed8   :  { %v3290_v55 = vsel %vm178_vm0, %v3288_v25, 0.0 }
0x1ed9   :  { %3291 = vadd.xlane.f32.xlu1 %v3290_v55 }
0x1f60   :  { %v3295_v11 = vpop.xlane.xlu0 %3294 }
0x1f61   :  { %v3297_v54 = vmul.f32 0.03125, %v3295_v11 }
0x1f62   :  { %v3292_v59 = vpop.xlane.xlu1 %3291 }
0x1f63   :  { %v3299_v20 = vadd.f32 1e-05, %v3297_v54  ;;  %v3296_v60 = vmul.f32 0.03125, %v3292_v59 }
0x1f65   :  { %4244 = vrsqrt.f32 %v3299_v20  ;;  %v3298_v23 = vadd.f32 1e-05, %v3296_v60 }
0x1f67   :  { %4246 = vrsqrt.f32 %v3298_v23 }
0x1f72   :  { %v4245_v21 = vpop.eup %4244 }
0x1f73   :  { %v3303_v36 = vmul.f32 %v4245_v21, %v3287_v0 }
0x1f74   :  { %v4247_v38 = vpop.eup %4246 }
0x1f75   :  { %v3311_v14 = vmul.f32 %v3561_v31, %v3303_v36  ;;  %v3302_v48 = vmul.f32 %v4247_v38, %v3286_v53 }
0x1f77   :  { %v3319_v61 = vadd.f32 %v3562_v7, %v3311_v14  ;;  %v3310_v62 = vmul.f32 %v3561_v31, %v3302_v48 }
0x1f79   :  { %v3321_v63 = vadd.f32 %v3319_v61, %v5166_v12  ;;  %v3318_v46 = vadd.f32 %v3562_v7, %v3310_v62 }
0x1f7b   :  { %v3323_v1 = vadd.f32 %v3321_v63, %v5166_v12  ;;  %v3320_v22 = vadd.f32 %v3318_v46, %v5162_v27 }
0x1f7d   :  { %v3331_v51 = vsel %vm178_vm0, %v3323_v1, 0.0  ;;  %v3322_v6 = vadd.f32 %v3320_v22, %v5162_v27 }
0x1f7e   :  { %3332 = vadd.xlane.f32.xlu0 %v3331_v51 }
0x1f7f   :  { %v3328_v3 = vsel %vm178_vm0, %v3322_v6, 0.0 }
0x1f80   :  { %3329 = vadd.xlane.f32.xlu1 %v3328_v3 }
0x2007   :  { %v3333_v5 = vpop.xlane.xlu0 %3332 }
0x2008   :  { %v3335_v15 = vmul.f32 0.03125, %v3333_v5 }
0x2009   :  { %v3330_v29 = vpop.xlane.xlu1 %3329 }
0x200a   :  { %v3337_v35 = vsub.f32 %v3323_v1, %v3335_v15  ;;  %v3334_v56 = vmul.f32 0.03125, %v3330_v29 }
0x200c   :  { %v3336_v8 = vsub.f32 %v3322_v6, %v3334_v56  ;;  %v3339_v52 = vmul.f32 %v3337_v35, %v3337_v35 }
0x200e   :  { %v3343_v12 = vsel %vm178_vm0, %v3339_v52, 0.0  ;;  %v3338_v50 = vmul.f32 %v3336_v8, %v3336_v8 }
0x200f   :  { %3344 = vadd.xlane.f32.xlu0 %v3343_v12 }
0x2010   :  { %v3340_v32 = vsel %vm178_vm0, %v3338_v50, 0.0 }
0x2011   :  { %3341 = vadd.xlane.f32.xlu1 %v3340_v32 }
0x2098   :  { %v3345_v27 = vpop.xlane.xlu0 %3344 }
0x2099   :  { %v3347_v57 = vmul.f32 0.03125, %v3345_v27 }
0x209a   :  { %v3342_v33 = vpop.xlane.xlu1 %3341 }
0x209b   :  { %v3349_v13 = vadd.f32 1e-05, %v3347_v57  ;;  %v3346_v41 = vmul.f32 0.03125, %v3342_v33 }
0x209d   :  { %4248 = vrsqrt.f32 %v3349_v13  ;;  %v3348_v26 = vadd.f32 1e-05, %v3346_v41 }
0x209f   :  { %4250 = vrsqrt.f32 %v3348_v26 }
0x20aa   :  { %v4249_v17 = vpop.eup %4248 }
0x20ab   :  { %v3353_v34 = vmul.f32 %v4249_v17, %v3337_v35 }
0x20ac   :  { %v4251_v19 = vpop.eup %4250 }
0x20ad   :  { %v3352_v37 = vmul.f32 %v4251_v19, %v3336_v8  ;;  %v3361_v58 = vmul.f32 %v3565_v18, %v3353_v34 }
0x20af   :  { %v3360_v4 = vmul.f32 %v3565_v18, %v3352_v37  ;;  %v3369_v39 = vadd.f32 %v3566_v9, %v3361_v58 }
0x20b1   :  { %v3368_v24 = vadd.f32 %v3566_v9, %v3360_v4  ;;  %3371 = vst.msk [vmem:[#allocation2 + $0x8] sm:$0xff] %vm178_vm0, %v3369_v39 }
0x20b3   :  { %3370 = vst.msk [vmem:[#allocation2] sm:$0xff] %vm178_vm0, %v3368_v24 }
0x20b4   :  { %4291 = shalt.err (!%p4288_p4)
}
0x20b5   :  { %s4336_s29 = smov 128   ;;  %s4337_s8 = smov 8  }
0x20b6   :  { %3383 = dma.vmem_to_hbm [thread:$0]  %s3378_s17, 256, %s4496_s3, [#allocation3], %s4336_s29, %s4336_s29, %s4337_s8  }
0x20b7   :  { %4300 = dma.done.wait [#allocation3], 256  }
0x20b8   :  { %4301 = vsyncadd [#allocation3], 4294967040 }
0x20b9   :  { %3387 = vsyncpa [#allocation3], 1 }

</bundles_post_ra>
